<compile_context>
chip_gen: v7x
topology: tpu7x:2x2x1
jax: 0.10.0
libtpu: 0.0.40
codegen_flags: <defaults>
</compile_context>

<pallas_src>
import jax
import jax.numpy as jnp
from jax.experimental import pallas as pl
from jax.experimental.pallas import tpu as pltpu

# ----- small, self-consistent shapes (module defaults hard-code 24738 which
# ----- only matches signal_size=1626; we scale everything down analogously).
SIGNAL_SIZE = 64
KSIZE = 11
C1, C2 = 31, 62
NUM_CLASSES = 17
D1, D2, D3 = 128, 96, 64            # scaled-down stand-ins for 4927 / 2785 / 1574

L1_CONV = SIGNAL_SIZE - KSIZE + 1   # 54  (conv1 output length)
L1 = L1_CONV // 2                   # 27  (after maxpool k=2,s=2)  == cnn1_size
L2_CONV = L1 - KSIZE + 1            # 17  (conv2 output length)
L2 = L2_CONV // 2                   # 8   (after maxpool)          == cnn2_size
FLAT = C2 * L2                      # 496 (PyTorch channel-major flatten size)

# lane-padded widths used inside the kernel
C1P, C2P = 32, 64
D1P, D2P, D3P = 128, 128, 128
NCP = 128
FLATP = L2 * C2P                    # 512 (kernel position-major padded flatten)

# Toeplitz-matmul output widths (parity-major pooled layout, 128-multiples)
POOL1_POS = 28                      # conv1 positions padded 54 -> 56 = 2*28 pairs
W1_HALF = POOL1_POS * C1P           # 896
W1_OUT = 2 * W1_HALF                # 1792 = 14*128
W2_HALF = L2 * C2P                  # 512 (== FLATP)
W2_OUT = 2 * W2_HALF                # 1024 = 8*128

TB_MAX = 256                        # max batch rows per grid step


def ircnn_kernel(sig_ref,
                 w1_ref, s1_ref, t1_ref,
                 w2_ref, s2_ref, t2_ref,
                 wd1_ref, bd1_ref,
                 wd2_ref, bd2_ref,
                 wd3_ref, bd3_ref,
                 wf_ref, bf_ref,
                 out_ref):
    bf16 = jnp.bfloat16
    f32 = jnp.float32
    sig = sig_ref[...].astype(bf16)                                # (TB, 64)

    # ---- CNN1: Conv1d(1->31) + folded-BN + ReLU + MaxPool(2,2)
    # One bf16 Toeplitz matmul; column order parity*896 + pair*32 + channel,
    # so the pool is a max of two 128-aligned halves (no reshape/relayout).
    a1 = jnp.dot(sig, w1_ref[...], preferred_element_type=f32)      # (TB, 1792)
    a1 = jnp.maximum(a1 * s1_ref[...] + t1_ref[...], 0.0)
    p1 = jnp.maximum(a1[:, :W1_HALF], a1[:, W1_HALF:]).astype(bf16)  # (TB, 896)

    # ---- CNN2: Conv1d(31->62) + folded-BN + ReLU + MaxPool(2,2)
    a2 = jnp.dot(p1, w2_ref[...], preferred_element_type=f32)       # (TB, 1024)
    a2 = jnp.maximum(a2 * s2_ref[...] + t2_ref[...], 0.0)
    # pooled result IS the kernel flatten layout (position-major, padded chans)
    h = jnp.maximum(a2[:, :W2_HALF], a2[:, W2_HALF:]).astype(bf16)  # (TB, 512)

    # ---- DENSE1/2/3 (+ReLU; dropout = identity in eval) and FCN.
    # bf16 weights/activations, f32 accumulation; bias+ReLU on f32 acc, then
    # a single bf16 cast feeds the next matmul.
    h = jnp.maximum(jnp.dot(h, wd1_ref[...], preferred_element_type=f32)
                    + bd1_ref[...], 0.0).astype(bf16)
    h = jnp.maximum(jnp.dot(h, wd2_ref[...], preferred_element_type=f32)
                    + bd2_ref[...], 0.0).astype(bf16)
    h = jnp.maximum(jnp.dot(h, wd3_ref[...], preferred_element_type=f32)
                    + bd3_ref[...], 0.0).astype(bf16)
    out_ref[...] = (jnp.dot(h, wf_ref[...], preferred_element_type=f32)
                    + bf_ref[...])


def make_params(key):
    """Synthetic PyTorch-layout params + folded/padded kernel params."""
    keys = jax.random.split(key, 20)
    nrm = lambda k, shape, s=0.1: s * jax.random.normal(k, shape, dtype=jnp.float32)
    eps = 1e-5

    # --- raw parameters in PyTorch layouts (used by the reference)
    w1_pt = nrm(keys[0], (C1, 1, KSIZE)); b1 = nrm(keys[1], (C1,))
    g1 = 1.0 + nrm(keys[2], (C1,)); be1 = nrm(keys[3], (C1,))
    rm1 = nrm(keys[4], (C1,)); rv1 = 1.0 + 0.1 * jnp.abs(nrm(keys[5], (C1,)))

    w2_pt = nrm(keys[6], (C2, C1, KSIZE)); b2 = nrm(keys[7], (C2,))
    g2 = 1.0 + nrm(keys[8], (C2,)); be2 = nrm(keys[9], (C2,))
    rm2 = nrm(keys[10], (C2,)); rv2 = 1.0 + 0.1 * jnp.abs(nrm(keys[11], (C2,)))

    wd1_pt = nrm(keys[12], (D1, FLAT), 0.05); bd1 = nrm(keys[13], (D1,))
    wd2_pt = nrm(keys[14], (D2, D1), 0.05);   bd2 = nrm(keys[15], (D2,))
    wd3_pt = nrm(keys[16], (D3, D2), 0.05);   bd3 = nrm(keys[17], (D3,))
    wf_pt = nrm(keys[18], (NUM_CLASSES, D3), 0.05); bf = nrm(keys[19], (NUM_CLASSES,))

    raw = (w1_pt, b1, g1, be1, rm1, rv1,
           w2_pt, b2, g2, be2, rm2, rv2,
           wd1_pt, bd1, wd2_pt, bd2, wd3_pt, bd3, wf_pt, bf)

    # --- fold eval-mode BN into per-channel scale/shift
    s1 = g1 / jnp.sqrt(rv1 + eps); t1 = be1 + (b1 - rm1) * s1
    s2 = g2 / jnp.sqrt(rv2 + eps); t2 = be2 + (b2 - rm2) * s2

    padc = lambda v, n: jnp.pad(v, (0, n - v.shape[0]))       # zero-pad channels

    # ---- CNN1 banded-Toeplitz weight (SIGNAL_SIZE, W1_OUT).
    # Column j = parity*896 + pair*32 + channel; conv position l = 2*pair+parity.
    # W1big[s, j] = w1[c, 0, s - l]  for 0 <= s-l < K, c < 31, l < 54, else 0.
    j1 = jnp.arange(W1_OUT)
    par1 = j1 // W1_HALF
    rem1 = j1 % W1_HALF
    c_1 = rem1 % C1P
    l_1 = 2 * (rem1 // C1P) + par1
    srow = jnp.arange(SIGNAL_SIZE)[:, None]
    k_1 = srow - l_1[None, :]
    col_ok1 = (c_1 < C1) & (l_1 < L1_CONV)
    valid1 = (k_1 >= 0) & (k_1 < KSIZE) & col_ok1[None, :]
    w1flat = w1_pt[:, 0, :]                                   # (C1, K)
    vals1 = w1flat[jnp.clip(c_1, 0, C1 - 1)[None, :], jnp.clip(k_1, 0, KSIZE - 1)]
    w1big = jnp.where(valid1, vals1, 0.0)                     # (64, 1792)
    s1big = jnp.where(col_ok1, s1[jnp.clip(c_1, 0, C1 - 1)], 0.0).reshape(1, W1_OUT)
    t1big = jnp.where(col_ok1, t1[jnp.clip(c_1, 0, C1 - 1)], 0.0).reshape(1, W1_OUT)

    # ---- CNN2 banded-Toeplitz weight (W1_HALF, W2_OUT).
    # Row i = pooled1 position l1*32 + channel c1.
    # Column j = parity*512 + pair*64 + channel c2; conv2 position l2 = 2*pair+parity
    # (only positions 0..15 are kept — position 16 is dropped by MaxPool(2,2)).
    i2 = jnp.arange(W1_HALF)
    l1_idx = i2 // C1P
    c1_idx = i2 % C1P
    j2 = jnp.arange(W2_OUT)
    par2 = j2 // W2_HALF
    rem2 = j2 % W2_HALF
    c2_idx = rem2 % C2P
    l2_idx = 2 * (rem2 // C2P) + par2
    k_2 = l1_idx[:, None] - l2_idx[None, :]
    valid2 = ((k_2 >= 0) & (k_2 < KSIZE)
              & (c1_idx[:, None] < C1) & (c2_idx[None, :] < C2))
    vals2 = w2_pt[jnp.clip(c2_idx, 0, C2 - 1)[None, :],
                  jnp.clip(c1_idx, 0, C1 - 1)[:, None],
                  jnp.clip(k_2, 0, KSIZE - 1)]
    w2big = jnp.where(valid2, vals2, 0.0)                     # (896, 1024)
    s2big = jnp.where(c2_idx < C2, s2[jnp.clip(c2_idx, 0, C2 - 1)], 0.0).reshape(1, W2_OUT)
    t2big = jnp.where(c2_idx < C2, t2[jnp.clip(c2_idx, 0, C2 - 1)], 0.0).reshape(1, W2_OUT)

    # ---- dense1: gather rows from PyTorch channel-major flatten (q = c*L2 + m)
    # into the kernel's padded position-major flatten (r = m*C2P + c)
    src = jnp.zeros((FLAT, D1P), jnp.float32).at[:, :D1].set(wd1_pt.T)   # (496,128)
    r = jnp.arange(FLATP)
    m_idx, c_idx = r // C2P, r % C2P
    valid = c_idx < C2
    q = jnp.where(valid, c_idx * L2 + m_idx, 0)
    wd1 = jnp.where(valid[:, None], src[q], 0.0)                         # (512,128)
    bd1p = padc(bd1, D1P).reshape(1, D1P)

    wd2 = jnp.zeros((D1P, D2P), jnp.float32).at[:D1, :D2].set(wd2_pt.T)
    bd2p = padc(bd2, D2P).reshape(1, D2P)
    wd3 = jnp.zeros((D2P, D3P), jnp.float32).at[:D2, :D3].set(wd3_pt.T)
    bd3p = padc(bd3, D3P).reshape(1, D3P)
    wf = jnp.zeros((D3P, NCP), jnp.float32).at[:D3, :NUM_CLASSES].set(wf_pt.T)
    bfp = padc(bf, NCP).reshape(1, NCP)

    bf16 = jnp.bfloat16
    kernel_params = (w1big.astype(bf16), s1big, t1big,
                     w2big.astype(bf16), s2big, t2big,
                     wd1.astype(bf16), bd1p,
                     wd2.astype(bf16), bd2p,
                     wd3.astype(bf16), bd3p,
                     wf.astype(bf16), bfp)
    return kernel_params, raw


@jax.jit
def ircnn_forward(signal, kernel_params):
    B = signal.shape[0]
    # Batch tile: cap at TB_MAX; for smaller batches pick ~B/2 (sublane-aligned)
    # so there are >=2 grid steps whenever possible (keeps both v7x TCs busy).
    if B >= 2 * TB_MAX:
        tb = TB_MAX
    else:
        tb = max(8, ((B + 15) // 16) * 8)
    b_pad = ((B + tb - 1) // tb) * tb
    n_grid = b_pad // tb

    sig = jnp.zeros((b_pad, SIGNAL_SIZE), jnp.float32).at[:B].set(signal)

    in_specs = ([pl.BlockSpec((tb, SIGNAL_SIZE), lambda i: (i, 0))] +
                [pl.BlockSpec(p.shape, lambda i: (0, 0)) for p in kernel_params])
    out_spec = pl.BlockSpec((tb, NCP), lambda i: (i, 0))

    macs_per_row = (SIGNAL_SIZE * W1_OUT + W1_HALF * W2_OUT
                    + FLATP * D1P + D1P * D2P + D2P * D3P + D3P * NCP)
    flops = 2 * b_pad * macs_per_row
    bytes_accessed = (4 * b_pad * (SIGNAL_SIZE + NCP)
                      + sum(int(p.size) * jnp.dtype(p.dtype).itemsize
                            for p in kernel_params))

    out = pl.pallas_call(
        ircnn_kernel,
        out_shape=jax.ShapeDtypeStruct((b_pad, NCP), jnp.float32),
        grid=(n_grid,),
        in_specs=in_specs,
        out_specs=out_spec,
        compiler_params=pltpu.CompilerParams(
            dimension_semantics=("parallel",),
            vmem_limit_bytes=48 * 1024 * 1024),
        cost_estimate=pl.CostEstimate(flops=flops, transcendentals=0,
                                      bytes_accessed=bytes_accessed),
    )(sig, *kernel_params)
    return out[:B, :NUM_CLASSES]


def ircnn_reference(signal, raw):
    """Pure-JAX mirror of the PyTorch module (eval mode), bf16 dense matmuls."""
    (w1_pt, b1, g1, be1, rm1, rv1,
     w2_pt, b2, g2, be2, rm2, rv2,
     wd1_pt, bd1, wd2_pt, bd2, wd3_pt, bd3, wf_pt, bf) = raw
    eps = 1e-5
    bf16 = jnp.bfloat16

    def conv_bn_relu_pool(x, w, b, g, be, rm, rv):
        y = jax.lax.conv_general_dilated(
            x, w, window_strides=(1,), padding='VALID',
            dimension_numbers=('NCH', 'OIH', 'NCH'))
        y = y + b[None, :, None]
        y = (y - rm[None, :, None]) / jnp.sqrt(rv + eps)[None, :, None]
        y = y * g[None, :, None] + be[None, :, None]
        y = jnp.maximum(y, 0.0)
        L = y.shape[-1]
        y = y[..., :2 * (L // 2)].reshape(y.shape[0], y.shape[1], L // 2, 2)
        return y.max(axis=-1)

    x = signal[:, None, :]                                   # (B, 1, L) NCL
    x = conv_bn_relu_pool(x, w1_pt, b1, g1, be1, rm1, rv1)
    x = conv_bn_relu_pool(x, w2_pt, b2, g2, be2, rm2, rv2)
    h = x.reshape(x.shape[0], -1)                            # channel-major flatten

    def dense(h, w_pt, b, relu=True):
        y = jnp.dot(h.astype(bf16), w_pt.T.astype(bf16),
                    preferred_element_type=jnp.float32) + b
        return jnp.maximum(y, 0.0) if relu else y

    h = dense(h, wd1_pt, bd1)
    h = dense(h, wd2_pt, bd2)
    h = dense(h, wd3_pt, bd3)
    return dense(h, wf_pt, bf, relu=False)


if __name__ == "__main__":
    key = jax.random.PRNGKey(0)
    k_sig, k_par = jax.random.split(key)
    batch = 2
    signal = jax.random.normal(k_sig, (batch, SIGNAL_SIZE), dtype=jnp.float32)
    kernel_params, raw = make_params(k_par)

    out = jax.block_until_ready(ircnn_forward(signal, kernel_params))
    ref = jax.block_until_ready(ircnn_reference(signal, raw))

    assert out.shape == (batch, NUM_CLASSES), out.shape
    # kernel runs both convs in bf16 (f32 accumulation); reference convs are f32
    # and both dense chains are bf16 — 2e-2 tolerance covers the rounding/order gap
    assert jnp.allclose(out, ref, rtol=2e-2, atol=2e-2), (out, ref)
    print("KERNEL_OK")
</pallas_src>

<mosaic_0001>
module attributes {stable_mosaic.version = 11 : i64} {
  func.func @ircnn_kernel(%arg0: i32, %arg1: memref<8x64xf32, #tpu.memory_space<vmem>>, %arg2: memref<64x1792xbf16, #tpu.memory_space<vmem>>, %arg3: memref<1x1792xf32, #tpu.memory_space<vmem>>, %arg4: memref<1x1792xf32, #tpu.memory_space<vmem>>, %arg5: memref<896x1024xbf16, #tpu.memory_space<vmem>>, %arg6: memref<1x1024xf32, #tpu.memory_space<vmem>>, %arg7: memref<1x1024xf32, #tpu.memory_space<vmem>>, %arg8: memref<512x128xbf16, #tpu.memory_space<vmem>>, %arg9: memref<1x128xf32, #tpu.memory_space<vmem>>, %arg10: memref<128x128xbf16, #tpu.memory_space<vmem>>, %arg11: memref<1x128xf32, #tpu.memory_space<vmem>>, %arg12: memref<128x128xbf16, #tpu.memory_space<vmem>>, %arg13: memref<1x128xf32, #tpu.memory_space<vmem>>, %arg14: memref<128x128xbf16, #tpu.memory_space<vmem>>, %arg15: memref<1x128xf32, #tpu.memory_space<vmem>>, %arg16: memref<8x128xf32, #tpu.memory_space<vmem>>) attributes {dimension_semantics = [#tpu.dimension_semantics<parallel>], iteration_bounds = array<i64: 1>, scalar_prefetch = 0 : i64, scratch_operands = 0 : i64, tpu.core_type = #tpu.core_type<tc>, window_params = [{transform_indices = @transform_0, window_bounds = array<i64: 8, 64>}, {pipeline_mode = #tpu.pipeline_mode<synchronous>, transform_indices = @transform_1, window_bounds = array<i64: 64, 1792>}, {pipeline_mode = #tpu.pipeline_mode<synchronous>, transform_indices = @transform_2, window_bounds = array<i64: 1, 1792>}, {pipeline_mode = #tpu.pipeline_mode<synchronous>, transform_indices = @transform_3, window_bounds = array<i64: 1, 1792>}, {pipeline_mode = #tpu.pipeline_mode<synchronous>, transform_indices = @transform_4, window_bounds = array<i64: 896, 1024>}, {pipeline_mode = #tpu.pipeline_mode<synchronous>, transform_indices = @transform_5, window_bounds = array<i64: 1, 1024>}, {pipeline_mode = #tpu.pipeline_mode<synchronous>, transform_indices = @transform_6, window_bounds = array<i64: 1, 1024>}, {pipeline_mode = #tpu.pipeline_mode<synchronous>, transform_indices = @transform_7, window_bounds = array<i64: 512, 128>}, {pipeline_mode = #tpu.pipeline_mode<synchronous>, transform_indices = @transform_8, window_bounds = array<i64: 1, 128>}, {pipeline_mode = #tpu.pipeline_mode<synchronous>, transform_indices = @transform_9, window_bounds = array<i64: 128, 128>}, {pipeline_mode = #tpu.pipeline_mode<synchronous>, transform_indices = @transform_10, window_bounds = array<i64: 1, 128>}, {pipeline_mode = #tpu.pipeline_mode<synchronous>, transform_indices = @transform_11, window_bounds = array<i64: 128, 128>}, {pipeline_mode = #tpu.pipeline_mode<synchronous>, transform_indices = @transform_12, window_bounds = array<i64: 1, 128>}, {pipeline_mode = #tpu.pipeline_mode<synchronous>, transform_indices = @transform_13, window_bounds = array<i64: 128, 128>}, {pipeline_mode = #tpu.pipeline_mode<synchronous>, transform_indices = @transform_14, window_bounds = array<i64: 1, 128>}, {transform_indices = @transform_15, window_bounds = array<i64: 8, 128>}]} {
    %c0 = arith.constant 0 : index
    %c0_0 = arith.constant 0 : index
    %0 = vector.load %arg1[%c0, %c0_0] : memref<8x64xf32, #tpu.memory_space<vmem>>, vector<8x64xf32>
    %1 = arith.truncf %0 : vector<8x64xf32> to vector<8x64xbf16>
    %c0_1 = arith.constant 0 : index
    %c0_2 = arith.constant 0 : index
    %2 = vector.load %arg2[%c0_1, %c0_2] : memref<64x1792xbf16, #tpu.memory_space<vmem>>, vector<64x1792xbf16>
    %cst = arith.constant dense<0.000000e+00> : vector<8x1792xf32>
    %3 = tpu.matmul %1, %2, %cst {dimension_numbers = #tpu.dot_dimension_numbers<[1], [0], [0], [1], [0, 0, 1, 1], [], []>} : vector<8x64xbf16>, vector<64x1792xbf16>, vector<8x1792xf32> -> vector<8x1792xf32>
    %c0_3 = arith.constant 0 : index
    %c0_4 = arith.constant 0 : index
    %4 = vector.load %arg3[%c0_3, %c0_4] : memref<1x1792xf32, #tpu.memory_space<vmem>>, vector<1x1792xf32>
    %5 = vector.broadcast %4 : vector<1x1792xf32> to vector<8x1792xf32>
    %6 = arith.mulf %3, %5 : vector<8x1792xf32>
    %c0_5 = arith.constant 0 : index
    %c0_6 = arith.constant 0 : index
    %7 = vector.load %arg4[%c0_5, %c0_6] : memref<1x1792xf32, #tpu.memory_space<vmem>>, vector<1x1792xf32>
    %8 = vector.broadcast %7 : vector<1x1792xf32> to vector<8x1792xf32>
    %9 = arith.addf %6, %8 : vector<8x1792xf32>
    %cst_7 = arith.constant 0.000000e+00 : f32
    %10 = vector.broadcast %cst_7 : f32 to vector<8x1792xf32>
    %11 = arith.maximumf %9, %10 : vector<8x1792xf32>
    %12 = vector.extract_strided_slice %11 {offsets = [0, 0], sizes = [8, 896], strides = [1, 1]} : vector<8x1792xf32> to vector<8x896xf32>
    %13 = vector.extract_strided_slice %11 {offsets = [0, 896], sizes = [8, 896], strides = [1, 1]} : vector<8x1792xf32> to vector<8x896xf32>
    %14 = arith.maximumf %12, %13 : vector<8x896xf32>
    %15 = arith.truncf %14 : vector<8x896xf32> to vector<8x896xbf16>
    %c0_8 = arith.constant 0 : index
    %c0_9 = arith.constant 0 : index
    %16 = vector.load %arg5[%c0_8, %c0_9] : memref<896x1024xbf16, #tpu.memory_space<vmem>>, vector<896x1024xbf16>
    %cst_10 = arith.constant dense<0.000000e+00> : vector<8x1024xf32>
    %17 = tpu.matmul %15, %16, %cst_10 {dimension_numbers = #tpu.dot_dimension_numbers<[1], [0], [0], [1], [0, 0, 1, 1], [], []>} : vector<8x896xbf16>, vector<896x1024xbf16>, vector<8x1024xf32> -> vector<8x1024xf32>
    %c0_11 = arith.constant 0 : index
    %c0_12 = arith.constant 0 : index
    %18 = vector.load %arg6[%c0_11, %c0_12] : memref<1x1024xf32, #tpu.memory_space<vmem>>, vector<1x1024xf32>
    %19 = vector.broadcast %18 : vector<1x1024xf32> to vector<8x1024xf32>
    %20 = arith.mulf %17, %19 : vector<8x1024xf32>
    %c0_13 = arith.constant 0 : index
    %c0_14 = arith.constant 0 : index
    %21 = vector.load %arg7[%c0_13, %c0_14] : memref<1x1024xf32, #tpu.memory_space<vmem>>, vector<1x1024xf32>
    %22 = vector.broadcast %21 : vector<1x1024xf32> to vector<8x1024xf32>
    %23 = arith.addf %20, %22 : vector<8x1024xf32>
    %cst_15 = arith.constant 0.000000e+00 : f32
    %24 = vector.broadcast %cst_15 : f32 to vector<8x1024xf32>
    %25 = arith.maximumf %23, %24 : vector<8x1024xf32>
    %26 = vector.extract_strided_slice %25 {offsets = [0, 0], sizes = [8, 512], strides = [1, 1]} : vector<8x1024xf32> to vector<8x512xf32>
    %27 = vector.extract_strided_slice %25 {offsets = [0, 512], sizes = [8, 512], strides = [1, 1]} : vector<8x1024xf32> to vector<8x512xf32>
    %28 = arith.maximumf %26, %27 : vector<8x512xf32>
    %29 = arith.truncf %28 : vector<8x512xf32> to vector<8x512xbf16>
    %c0_16 = arith.constant 0 : index
    %c0_17 = arith.constant 0 : index
    %30 = vector.load %arg8[%c0_16, %c0_17] : memref<512x128xbf16, #tpu.memory_space<vmem>>, vector<512x128xbf16>
    %cst_18 = arith.constant dense<0.000000e+00> : vector<8x128xf32>
    %31 = tpu.matmul %29, %30, %cst_18 {dimension_numbers = #tpu.dot_dimension_numbers<[1], [0], [0], [1], [0, 0, 1, 1], [], []>} : vector<8x512xbf16>, vector<512x128xbf16>, vector<8x128xf32> -> vector<8x128xf32>
    %c0_19 = arith.constant 0 : index
    %c0_20 = arith.constant 0 : index
    %32 = vector.load %arg9[%c0_19, %c0_20] : memref<1x128xf32, #tpu.memory_space<vmem>>, vector<1x128xf32>
    %33 = vector.broadcast %32 : vector<1x128xf32> to vector<8x128xf32>
    %34 = arith.addf %31, %33 : vector<8x128xf32>
    %cst_21 = arith.constant 0.000000e+00 : f32
    %35 = vector.broadcast %cst_21 : f32 to vector<8x128xf32>
    %36 = arith.maximumf %34, %35 : vector<8x128xf32>
    %37 = arith.truncf %36 : vector<8x128xf32> to vector<8x128xbf16>
    %c0_22 = arith.constant 0 : index
    %c0_23 = arith.constant 0 : index
    %38 = vector.load %arg10[%c0_22, %c0_23] : memref<128x128xbf16, #tpu.memory_space<vmem>>, vector<128x128xbf16>
    %cst_24 = arith.constant dense<0.000000e+00> : vector<8x128xf32>
    %39 = tpu.matmul %37, %38, %cst_24 {dimension_numbers = #tpu.dot_dimension_numbers<[1], [0], [0], [1], [0, 0, 1, 1], [], []>} : vector<8x128xbf16>, vector<128x128xbf16>, vector<8x128xf32> -> vector<8x128xf32>
    %c0_25 = arith.constant 0 : index
    %c0_26 = arith.constant 0 : index
    %40 = vector.load %arg11[%c0_25, %c0_26] : memref<1x128xf32, #tpu.memory_space<vmem>>, vector<1x128xf32>
    %41 = vector.broadcast %40 : vector<1x128xf32> to vector<8x128xf32>
    %42 = arith.addf %39, %41 : vector<8x128xf32>
    %cst_27 = arith.constant 0.000000e+00 : f32
    %43 = vector.broadcast %cst_27 : f32 to vector<8x128xf32>
    %44 = arith.maximumf %42, %43 : vector<8x128xf32>
    %45 = arith.truncf %44 : vector<8x128xf32> to vector<8x128xbf16>
    %c0_28 = arith.constant 0 : index
    %c0_29 = arith.constant 0 : index
    %46 = vector.load %arg12[%c0_28, %c0_29] : memref<128x128xbf16, #tpu.memory_space<vmem>>, vector<128x128xbf16>
    %cst_30 = arith.constant dense<0.000000e+00> : vector<8x128xf32>
    %47 = tpu.matmul %45, %46, %cst_30 {dimension_numbers = #tpu.dot_dimension_numbers<[1], [0], [0], [1], [0, 0, 1, 1], [], []>} : vector<8x128xbf16>, vector<128x128xbf16>, vector<8x128xf32> -> vector<8x128xf32>
    %c0_31 = arith.constant 0 : index
    %c0_32 = arith.constant 0 : index
    %48 = vector.load %arg13[%c0_31, %c0_32] : memref<1x128xf32, #tpu.memory_space<vmem>>, vector<1x128xf32>
    %49 = vector.broadcast %48 : vector<1x128xf32> to vector<8x128xf32>
    %50 = arith.addf %47, %49 : vector<8x128xf32>
    %cst_33 = arith.constant 0.000000e+00 : f32
    %51 = vector.broadcast %cst_33 : f32 to vector<8x128xf32>
    %52 = arith.maximumf %50, %51 : vector<8x128xf32>
    %53 = arith.truncf %52 : vector<8x128xf32> to vector<8x128xbf16>
    %c0_34 = arith.constant 0 : index
    %c0_35 = arith.constant 0 : index
    %54 = vector.load %arg14[%c0_34, %c0_35] : memref<128x128xbf16, #tpu.memory_space<vmem>>, vector<128x128xbf16>
    %cst_36 = arith.constant dense<0.000000e+00> : vector<8x128xf32>
    %55 = tpu.matmul %53, %54, %cst_36 {dimension_numbers = #tpu.dot_dimension_numbers<[1], [0], [0], [1], [0, 0, 1, 1], [], []>} : vector<8x128xbf16>, vector<128x128xbf16>, vector<8x128xf32> -> vector<8x128xf32>
    %c0_37 = arith.constant 0 : index
    %c0_38 = arith.constant 0 : index
    %56 = vector.load %arg15[%c0_37, %c0_38] : memref<1x128xf32, #tpu.memory_space<vmem>>, vector<1x128xf32>
    %57 = vector.broadcast %56 : vector<1x128xf32> to vector<8x128xf32>
    %58 = arith.addf %55, %57 : vector<8x128xf32>
    %c0_39 = arith.constant 0 : index
    %c0_40 = arith.constant 0 : index
    %59 = vector.load %arg16[%c0_39, %c0_40] : memref<8x128xf32, #tpu.memory_space<vmem>>, vector<8x128xf32>
    tpu.vector_store %arg16[%c0_39, %c0_40], %58 {strides = array<i32>} : memref<8x128xf32, #tpu.memory_space<vmem>>, vector<8x128xf32>,
    return
  }
  func.func @transform_0(%arg0: i32) -> (i32, i32) {
    %c0_i32 = arith.constant 0 : i32
    %c0_i32_0 = arith.constant 0 : i32
    return %arg0, %c0_i32 : i32, i32
  }
  func.func @transform_1(%arg0: i32) -> (i32, i32) {
    %c0_i32 = arith.constant 0 : i32
    %c0_i32_0 = arith.constant 0 : i32
    %c0_i32_1 = arith.constant 0 : i32
    return %c0_i32, %c0_i32_0 : i32, i32
  }
  func.func @transform_2(%arg0: i32) -> (i32, i32) {
    %c0_i32 = arith.constant 0 : i32
    %c0_i32_0 = arith.constant 0 : i32
    %c0_i32_1 = arith.constant 0 : i32
    return %c0_i32, %c0_i32_0 : i32, i32
  }
  func.func @transform_3(%arg0: i32) -> (i32, i32) {
    %c0_i32 = arith.constant 0 : i32
    %c0_i32_0 = arith.constant 0 : i32
    %c0_i32_1 = arith.constant 0 : i32
    return %c0_i32, %c0_i32_0 : i32, i32
  }
  func.func @transform_4(%arg0: i32) -> (i32, i32) {
    %c0_i32 = arith.constant 0 : i32
    %c0_i32_0 = arith.constant 0 : i32
    %c0_i32_1 = arith.constant 0 : i32
    return %c0_i32, %c0_i32_0 : i32, i32
  }
  func.func @transform_5(%arg0: i32) -> (i32, i32) {
    %c0_i32 = arith.constant 0 : i32
    %c0_i32_0 = arith.constant 0 : i32
    %c0_i32_1 = arith.constant 0 : i32
    return %c0_i32, %c0_i32_0 : i32, i32
  }
  func.func @transform_6(%arg0: i32) -> (i32, i32) {
    %c0_i32 = arith.constant 0 : i32
    %c0_i32_0 = arith.constant 0 : i32
    %c0_i32_1 = arith.constant 0 : i32
    return %c0_i32, %c0_i32_0 : i32, i32
  }
  func.func @transform_7(%arg0: i32) -> (i32, i32) {
    %c0_i32 = arith.constant 0 : i32
    %c0_i32_0 = arith.constant 0 : i32
    %c0_i32_1 = arith.constant 0 : i32
    return %c0_i32, %c0_i32_0 : i32, i32
  }
  func.func @transform_8(%arg0: i32) -> (i32, i32) {
    %c0_i32 = arith.constant 0 : i32
    %c0_i32_0 = arith.constant 0 : i32
    %c0_i32_1 = arith.constant 0 : i32
    return %c0_i32, %c0_i32_0 : i32, i32
  }
  func.func @transform_9(%arg0: i32) -> (i32, i32) {
    %c0_i32 = arith.constant 0 : i32
    %c0_i32_0 = arith.constant 0 : i32
    %c0_i32_1 = arith.constant 0 : i32
    return %c0_i32, %c0_i32_0 : i32, i32
  }
  func.func @transform_10(%arg0: i32) -> (i32, i32) {
    %c0_i32 = arith.constant 0 : i32
    %c0_i32_0 = arith.constant 0 : i32
    %c0_i32_1 = arith.constant 0 : i32
    return %c0_i32, %c0_i32_0 : i32, i32
  }
  func.func @transform_11(%arg0: i32) -> (i32, i32) {
    %c0_i32 = arith.constant 0 : i32
    %c0_i32_0 = arith.constant 0 : i32
    %c0_i32_1 = arith.constant 0 : i32
    return %c0_i32, %c0_i32_0 : i32, i32
  }
  func.func @transform_12(%arg0: i32) -> (i32, i32) {
    %c0_i32 = arith.constant 0 : i32
    %c0_i32_0 = arith.constant 0 : i32
    %c0_i32_1 = arith.constant 0 : i32
    return %c0_i32, %c0_i32_0 : i32, i32
  }
  func.func @transform_13(%arg0: i32) -> (i32, i32) {
    %c0_i32 = arith.constant 0 : i32
    %c0_i32_0 = arith.constant 0 : i32
    %c0_i32_1 = arith.constant 0 : i32
    return %c0_i32, %c0_i32_0 : i32, i32
  }
  func.func @transform_14(%arg0: i32) -> (i32, i32) {
    %c0_i32 = arith.constant 0 : i32
    %c0_i32_0 = arith.constant 0 : i32
    %c0_i32_1 = arith.constant 0 : i32
    return %c0_i32, %c0_i32_0 : i32, i32
  }
  func.func @transform_15(%arg0: i32) -> (i32, i32) {
    %c0_i32 = arith.constant 0 : i32
    %c0_i32_0 = arith.constant 0 : i32
    return %arg0, %c0_i32 : i32, i32
  }
}

</mosaic_0001>

<bundles_post_ra>
// kernel: ircnn_forward.1
= control target key start
LH: loop header
LB: loop body
LE: loop exit
PB: predicated region body
PF: predicated region fallthrough
CT: control target
= control target key end

     0   :  { %20 = vsyncpa [#allocation3], 0  ;;  %s6997_s0 = inlined_call_operand.vmem [shape: f32[8,64], index: 0, kind: input, shape index: {}]   ;;  %s6998_s1 = inlined_call_operand.hbm [shape: bf16[64,1792], index: 1, kind: input, shape index: {}]   ;;  %s6999_s2 = inlined_call_operand.hbm [shape: f32[1,1792], index: 2, kind: input, shape index: {}]   ;;  %s7000_s3 = inlined_call_operand.hbm [shape: f32[1,1792], index: 3, kind: input, shape index: {}]   ;;  %s7001_s4 = inlined_call_operand.hbm [shape: bf16[896,1024], index: 4, kind: input, shape index: {}]   ;;  %s7002_s5 = inlined_call_operand.hbm [shape: f32[1,1024], index: 5, kind: input, shape index: {}]   ;;  %s7003_s6 = inlined_call_operand.hbm [shape: f32[1,1024], index: 6, kind: input, shape index: {}]   ;;  %s7004_s7 = inlined_call_operand.hbm [shape: bf16[512,128], index: 7, kind: input, shape index: {}]   ;;  %s7005_s8 = inlined_call_operand.hbm [shape: f32[1,128], index: 8, kind: input, shape index: {}]   ;;  %s7006_s9 = inlined_call_operand.hbm [shape: bf16[128,128], index: 9, kind: input, shape index: {}]   ;;  %s7007_s10 = inlined_call_operand.hbm [shape: f32[1,128], index: 10, kind: input, shape index: {}]   ;;  %s7008_s11 = inlined_call_operand.hbm [shape: bf16[128,128], index: 11, kind: input, shape index: {}]   ;;  %s7009_s12 = inlined_call_operand.hbm [shape: f32[1,128], index: 12, kind: input, shape index: {}]   ;;  %s7010_s13 = inlined_call_operand.hbm [shape: bf16[128,128], index: 13, kind: input, shape index: {}]   ;;  %s7011_s14 = inlined_call_operand.hbm [shape: f32[1,128], index: 14, kind: input, shape index: {}]   ;;  %s7012_s15 = inlined_call_operand.vmem [shape: f32[8,128], index: 15, kind: output, shape index: {}]  }
   0x1   :  { %21 = vsyncpa [#allocation5], 0 }
   0x2   :  { %22 = vsyncpa [#allocation8], 0 }
   0x3   :  { %23 = vsyncpa [#allocation11], 0 }
   0x4   :  { %24 = vsyncpa [#allocation14], 0 }
   0x5   :  { %25 = vsyncpa [#allocation17], 0 }
   0x6   :  { %26 = vsyncpa [#allocation20], 0 }
   0x7   :  { %27 = vsyncpa [#allocation23], 0  ;;  %s6450_s18 = smov [#allocation4]   ;;  %s6451_s20 = smov [#allocation7]  }
   0x8   :  { %s48_s19 = sshll.u32 %s6450_s18, 4  ;;  %s67_s21 = sshll.u32 %s6451_s20, 4  ;;  %s49_s19 = int_to_ptr.vmem [resolvable:$true] %s48_s19  ;;  %s6553_s21 = int_to_ptr.vmem [resolvable:$true] %s67_s21 }
   0x9   :  { %s6126_s24 = scalar_lea.hbm %s6999_s2, 224 }
   0xa   :  { %p6127_p0 = scmp.ne.s32.totalorder %s6999_s2, %s6126_s24  ;;  %p6130_p1 = scmp.lt.u32.totalorder %s6126_s24, %s6999_s2 }
   0xc   :  { %p6132_p2 = pnand %p6130_p1, %p6127_p0 }
   0xe   :  { %6135 = shalt.err (!%p6132_p2)
}
   0xf   :  { %s6136_s29 = scalar_lea.vmem %s49_s19, 224  ;;  %p6141_p4 = scmp.lt.s32.totalorder %s49_s19, %s49_s19 }
  0x10   :  { %p6137_p3 = scmp.ne.s32.totalorder %s49_s19, %s6136_s29  ;;  %p6142_p5 = scmp.lt.s32.totalorder %s6136_s29, %s6136_s29 }
  0x12   :  { %p6143_p6 = por %p6142_p5, %p6141_p4 }
  0x14   :  { %p6144_p7 = pnand %p6143_p6, %p6137_p3 }
  0x16   :  { %6147 = shalt.err (!%p6144_p7)
}
  0x17   :  { %51 = dma.hbm_to_vmem [thread:$0]  %s6999_s2, 224, %s49_s19, [#allocation5]  }
  0x18   :  { %s6148_s20 = scalar_lea.hbm %s7001_s4, 57344 }
  0x19   :  { %p6149_p8 = scmp.ne.s32.totalorder %s7001_s4, %s6148_s20  ;;  %p6152_p9 = scmp.lt.u32.totalorder %s6148_s20, %s7001_s4 }
  0x1b   :  { %p6154_p10 = pnand %p6152_p9, %p6149_p8 }
  0x1d   :  { %6157 = shalt.err (!%p6154_p10)
}
  0x1e   :  { %s6158_s26 = scalar_lea.vmem %s6553_s21, 57344  ;;  %p6163_p12 = scmp.lt.s32.totalorder %s6553_s21, %s6553_s21 }
  0x1f   :  { %p6159_p11 = scmp.ne.s32.totalorder %s6553_s21, %s6158_s26  ;;  %p6164_p13 = scmp.lt.s32.totalorder %s6158_s26, %s6158_s26 }
  0x21   :  { %p6165_p0 = por %p6164_p13, %p6163_p12 }
  0x23   :  { %p6166_p1 = pnand %p6165_p0, %p6159_p11 }
  0x25   :  { %6169 = shalt.err (!%p6166_p1)
}
  0x26   :  { %s6452_s2 = smov 512   ;;  %s6453_s19 = smov 32  }
  0x27   :  { %73 = dma.hbm_to_vmem [thread:$0]  %s7001_s4, 57344, %s6553_s21, [#allocation8], %s6452_s2, %s6452_s2, %s6453_s19  }
  0x28   :  { %s6454_s29 = smov [#allocation10]   ;;  %s6455_s16 = smov [#allocation13]  }
  0x29   :  { %s90_s30 = sshll.u32 %s6454_s29, 4  ;;  %s112_s17 = sshll.u32 %s6455_s16, 4  ;;  %s91_s30 = int_to_ptr.vmem [resolvable:$true] %s90_s30  ;;  %s113_s17 = int_to_ptr.vmem [resolvable:$true] %s112_s17 }
  0x2a   :  { %s6170_s22 = scalar_lea.hbm %s7003_s6, 128 }
  0x2b   :  { %p6171_p2 = scmp.ne.s32.totalorder %s7003_s6, %s6170_s22  ;;  %p6174_p3 = scmp.lt.u32.totalorder %s6170_s22, %s7003_s6 }
  0x2d   :  { %p6176_p4 = pnand %p6174_p3, %p6171_p2 }
  0x2f   :  { %6179 = shalt.err (!%p6176_p4)
}
  0x30   :  { %s6180_s4 = scalar_lea.vmem %s91_s30, 128  ;;  %p6185_p6 = scmp.lt.s32.totalorder %s91_s30, %s91_s30 }
  0x31   :  { %p6181_p5 = scmp.ne.s32.totalorder %s91_s30, %s6180_s4  ;;  %p6186_p7 = scmp.lt.s32.totalorder %s6180_s4, %s6180_s4 }
  0x33   :  { %p6187_p8 = por %p6186_p7, %p6185_p6 }
  0x35   :  { %p6188_p9 = pnand %p6187_p8, %p6181_p5 }
  0x37   :  { %6191 = shalt.err (!%p6188_p9)
}
  0x38   :  { %93 = dma.hbm_to_vmem [thread:$0]  %s7003_s6, 128, %s91_s30, [#allocation11]  }
  0x39   :  { %s6192_s28 = scalar_lea.hbm %s7005_s8, 16 }
  0x3a   :  { %p6193_p10 = scmp.ne.s32.totalorder %s7005_s8, %s6192_s28  ;;  %p6196_p11 = scmp.lt.u32.totalorder %s6192_s28, %s7005_s8 }
  0x3c   :  { %p6198_p12 = pnand %p6196_p11, %p6193_p10 }
  0x3e   :  { %6201 = shalt.err (!%p6198_p12)
}
  0x3f   :  { %s6202_s22 = scalar_lea.vmem %s113_s17, 16  ;;  %s6206_s23 = scalar_lea.vmem %s113_s17, 32 }
  0x40   :  { %p6203_p13 = scmp.ne.s32.totalorder %s113_s17, %s6202_s22  ;;  %p6207_p0 = scmp.lt.s32.totalorder %s113_s17, %s113_s17 }
  0x41   :  { %p6208_p1 = scmp.lt.s32.totalorder %s6206_s23, %s6202_s22 }
  0x43   :  { %p6209_p2 = por %p6208_p1, %p6207_p0 }
  0x45   :  { %p6210_p3 = pnand %p6209_p2, %p6203_p13 }
  0x47   :  { %6213 = shalt.err (!%p6210_p3)
}
  0x48   :  { %115 = dma.hbm_to_vmem [thread:$0]  %s7005_s8, 16, %s113_s17, [#allocation14]  }
  0x49   :  { %s6456_s24 = smov [#allocation16]   ;;  %s6457_s26 = smov [#allocation19]  }
  0x4a   :  { %s134_s25 = sshll.u32 %s6456_s24, 4  ;;  %s156_s4 = sshll.u32 %s6457_s26, 4  ;;  %s135_s25 = int_to_ptr.vmem [resolvable:$true] %s134_s25  ;;  %s157_s4 = int_to_ptr.vmem [resolvable:$true] %s156_s4 }
  0x4b   :  { %s6214_s19 = scalar_lea.hbm %s7007_s10, 16 }
  0x4c   :  { %p6215_p4 = scmp.ne.s32.totalorder %s7007_s10, %s6214_s19  ;;  %p6218_p5 = scmp.lt.u32.totalorder %s6214_s19, %s7007_s10 }
  0x4e   :  { %p6220_p6 = pnand %p6218_p5, %p6215_p4 }
  0x50   :  { %6223 = shalt.err (!%p6220_p6)
}
  0x51   :  { %s6224_s8 = scalar_lea.vmem %s135_s25, 16  ;;  %s6228_s17 = scalar_lea.vmem %s135_s25, 32 }
  0x52   :  { %p6225_p7 = scmp.ne.s32.totalorder %s135_s25, %s6224_s8  ;;  %p6229_p8 = scmp.lt.s32.totalorder %s135_s25, %s135_s25 }
  0x53   :  { %p6230_p9 = scmp.lt.s32.totalorder %s6228_s17, %s6224_s8 }
  0x55   :  { %p6231_p10 = por %p6230_p9, %p6229_p8 }
  0x57   :  { %p6232_p11 = pnand %p6231_p10, %p6225_p7 }
  0x59   :  { %6235 = shalt.err (!%p6232_p11)
}
  0x5a   :  { %137 = dma.hbm_to_vmem [thread:$0]  %s7007_s10, 16, %s135_s25, [#allocation17]  }
  0x5b   :  { %s6236_s6 = scalar_lea.hbm %s7009_s12, 16 }
  0x5c   :  { %p6237_p12 = scmp.ne.s32.totalorder %s7009_s12, %s6236_s6  ;;  %p6240_p13 = scmp.lt.u32.totalorder %s6236_s6, %s7009_s12 }
  0x5e   :  { %p6242_p0 = pnand %p6240_p13, %p6237_p12 }
  0x60   :  { %6245 = shalt.err (!%p6242_p0)
}
  0x61   :  { %s6246_s2 = scalar_lea.vmem %s157_s4, 16  ;;  %s6250_s19 = scalar_lea.vmem %s157_s4, 32 }
  0x62   :  { %p6247_p1 = scmp.ne.s32.totalorder %s157_s4, %s6246_s2  ;;  %p6251_p2 = scmp.lt.s32.totalorder %s157_s4, %s157_s4 }
  0x63   :  { %p6252_p3 = scmp.lt.s32.totalorder %s6250_s19, %s6246_s2 }
  0x65   :  { %p6253_p4 = por %p6252_p3, %p6251_p2 }
  0x67   :  { %p6254_p5 = pnand %p6253_p4, %p6247_p1 }
  0x69   :  { %6257 = shalt.err (!%p6254_p5)
}
  0x6a   :  { %159 = dma.hbm_to_vmem [thread:$0]  %s7009_s12, 16, %s157_s4, [#allocation20]  }
  0x6b   :  { %s6458_s27 = smov [#allocation2]   ;;  %s6258_s8 = scalar_lea.hbm %s6998_s1, 7168 }
  0x6c   :  { %s35_s28 = sshll.u32 %s6458_s27, 4  ;;  %p6259_p6 = scmp.ne.s32.totalorder %s6998_s1, %s6258_s8  ;;  %s36_s28 = int_to_ptr.vmem [resolvable:$true] %s35_s28 }
  0x6d   :  { %p6262_p7 = scmp.lt.u32.totalorder %s6258_s8, %s6998_s1 }
  0x6f   :  { %p6264_p8 = pnand %p6262_p7, %p6259_p6 }
  0x71   :  { %6267 = shalt.err (!%p6264_p8)
}
  0x72   :  { %s6268_s23 = scalar_lea.vmem %s36_s28, 7168  ;;  %p6273_p10 = scmp.lt.s32.totalorder %s36_s28, %s36_s28 }
  0x73   :  { %p6269_p9 = scmp.ne.s32.totalorder %s36_s28, %s6268_s23  ;;  %p6274_p11 = scmp.lt.s32.totalorder %s6268_s23, %s6268_s23 }
  0x75   :  { %p6275_p12 = por %p6274_p11, %p6273_p10 }
  0x77   :  { %p6276_p13 = pnand %p6275_p12, %p6269_p9 }
  0x79   :  { %6279 = shalt.err (!%p6276_p13)
}
  0x7a   :  { %s6459_s12 = smov 896   ;;  %s6460_s4 = smov 56  }
  0x7b   :  { %41 = dma.hbm_to_vmem [thread:$0]  %s6998_s1, 7168, %s36_s28, [#allocation3], %s6459_s12, %s6459_s12, %s6460_s4  }
  0x7c   :  { %s6461_s24 = smov [#allocation6]   ;;  %s6462_s21 = smov [#allocation9]  }
  0x7d   :  { %s58_s26 = sshll.u32 %s6461_s24, 4  ;;  %s80_s2 = sshll.u32 %s6462_s21, 4  ;;  %s59_s26 = int_to_ptr.vmem [resolvable:$true] %s58_s26  ;;  %s81_s2 = int_to_ptr.vmem [resolvable:$true] %s80_s2 }
  0x7e   :  { %s6280_s25 = scalar_lea.hbm %s7000_s3, 224 }
  0x7f   :  { %p6281_p0 = scmp.ne.s32.totalorder %s7000_s3, %s6280_s25  ;;  %p6284_p1 = scmp.lt.u32.totalorder %s6280_s25, %s7000_s3 }
  0x81   :  { %p6286_p2 = pnand %p6284_p1, %p6281_p0 }
  0x83   :  { %6289 = shalt.err (!%p6286_p2)
}
  0x84   :  { %s6290_s1 = scalar_lea.vmem %s59_s26, 224  ;;  %p6295_p4 = scmp.lt.s32.totalorder %s59_s26, %s59_s26 }
  0x85   :  { %p6291_p3 = scmp.ne.s32.totalorder %s59_s26, %s6290_s1  ;;  %p6296_p5 = scmp.lt.s32.totalorder %s6290_s1, %s6290_s1 }
  0x87   :  { %p6297_p6 = por %p6296_p5, %p6295_p4 }
  0x89   :  { %p6298_p7 = pnand %p6297_p6, %p6291_p3 }
  0x8b   :  { %6301 = shalt.err (!%p6298_p7)
}
  0x8c   :  { %61 = dma.hbm_to_vmem [thread:$0]  %s7000_s3, 224, %s59_s26, [#allocation5]  }
  0x8d   :  { %s6302_s22 = scalar_lea.hbm %s7002_s5, 128 }
  0x8e   :  { %p6303_p8 = scmp.ne.s32.totalorder %s7002_s5, %s6302_s22  ;;  %p6306_p9 = scmp.lt.u32.totalorder %s6302_s22, %s7002_s5 }
  0x90   :  { %p6308_p10 = pnand %p6306_p9, %p6303_p8 }
  0x92   :  { %6311 = shalt.err (!%p6308_p10)
}
  0x93   :  { %s6312_s30 = scalar_lea.vmem %s81_s2, 128  ;;  %p6317_p12 = scmp.lt.s32.totalorder %s81_s2, %s81_s2 }
  0x94   :  { %p6313_p11 = scmp.ne.s32.totalorder %s81_s2, %s6312_s30  ;;  %p6318_p13 = scmp.lt.s32.totalorder %s6312_s30, %s6312_s30 }
  0x96   :  { %p6319_p0 = por %p6318_p13, %p6317_p12 }
  0x98   :  { %p6320_p1 = pnand %p6319_p0, %p6313_p11 }
  0x9a   :  { %6323 = shalt.err (!%p6320_p1)
}
  0x9b   :  { %83 = dma.hbm_to_vmem [thread:$0]  %s7002_s5, 128, %s81_s2, [#allocation8]  }
  0x9c   :  { %s6463_s26 = smov [#allocation12]   ;;  %s6324_s25 = scalar_lea.hbm %s7004_s7, 4096 }
  0x9d   :  { %s99_s21 = sshll.u32 %s6463_s26, 4  ;;  %p6325_p2 = scmp.ne.s32.totalorder %s7004_s7, %s6324_s25  ;;  %s100_s21 = int_to_ptr.vmem [resolvable:$true] %s99_s21 }
  0x9e   :  { %p6328_p3 = scmp.lt.u32.totalorder %s6324_s25, %s7004_s7 }
  0xa0   :  { %p6330_p4 = pnand %p6328_p3, %p6325_p2 }
  0xa2   :  { %6333 = shalt.err (!%p6330_p4)
}
  0xa3   :  { %s6334_s1 = scalar_lea.vmem %s100_s21, 4096  ;;  %p6339_p6 = scmp.lt.s32.totalorder %s100_s21, %s100_s21 }
  0xa4   :  { %p6335_p5 = scmp.ne.s32.totalorder %s100_s21, %s6334_s1  ;;  %p6340_p7 = scmp.lt.s32.totalorder %s6334_s1, %s6334_s1 }
  0xa6   :  { %p6341_p8 = por %p6340_p7, %p6339_p6 }
  0xa8   :  { %p6342_p9 = pnand %p6341_p8, %p6335_p5 }
  0xaa   :  { %6345 = shalt.err (!%p6342_p9)
}
  0xab   :  { %s6464_s5 = smov 64   ;;  %s6465_s2 = smov 4  }
  0xac   :  { %105 = dma.hbm_to_vmem [thread:$0]  %s7004_s7, 4096, %s100_s21, [#allocation11], %s6464_s5, %s6464_s5, %s6465_s2  }
  0xad   :  { %s6466_s18 = smov [#allocation15]   ;;  %s6467_s22 = smov [#allocation18]  }
  0xae   :  { %s121_s20 = sshll.u32 %s6466_s18, 4  ;;  %s143_s23 = sshll.u32 %s6467_s22, 4  ;;  %s122_s20 = int_to_ptr.vmem [resolvable:$true] %s121_s20  ;;  %s6683_s23 = int_to_ptr.vmem [resolvable:$true] %s143_s23 }
  0xaf   :  { %s6346_s6 = scalar_lea.hbm %s7006_s9, 1024 }
  0xb0   :  { %p6347_p10 = scmp.ne.s32.totalorder %s7006_s9, %s6346_s6  ;;  %p6350_p11 = scmp.lt.u32.totalorder %s6346_s6, %s7006_s9 }
  0xb2   :  { %p6352_p12 = pnand %p6350_p11, %p6347_p10 }
  0xb4   :  { %6355 = shalt.err (!%p6352_p12)
}
  0xb5   :  { %s6356_s7 = scalar_lea.vmem %s122_s20, 1024  ;;  %p6361_p0 = scmp.lt.s32.totalorder %s122_s20, %s122_s20 }
  0xb6   :  { %p6357_p13 = scmp.ne.s32.totalorder %s122_s20, %s6356_s7  ;;  %p6362_p1 = scmp.lt.s32.totalorder %s6356_s7, %s6356_s7 }
  0xb8   :  { %p6363_p2 = por %p6362_p1, %p6361_p0 }
  0xba   :  { %p6364_p3 = pnand %p6363_p2, %p6357_p13 }
  0xbc   :  { %6367 = shalt.err (!%p6364_p3)
}
  0xbd   :  { %127 = dma.hbm_to_vmem [thread:$0]  %s7006_s9, 1024, %s122_s20, [#allocation14], %s6464_s5, %s6464_s5, %s6465_s2  }
  0xbe   :  { %s6368_s27 = scalar_lea.hbm %s7008_s11, 1024 }
  0xbf   :  { %p6369_p4 = scmp.ne.s32.totalorder %s7008_s11, %s6368_s27  ;;  %p6372_p5 = scmp.lt.u32.totalorder %s6368_s27, %s7008_s11 }
  0xc1   :  { %p6374_p6 = pnand %p6372_p5, %p6369_p4 }
  0xc3   :  { %6377 = shalt.err (!%p6374_p6)
}
  0xc4   :  { %s6378_s28 = scalar_lea.vmem %s6683_s23, 1024  ;;  %p6383_p8 = scmp.lt.s32.totalorder %s6683_s23, %s6683_s23 }
  0xc5   :  { %p6379_p7 = scmp.ne.s32.totalorder %s6683_s23, %s6378_s28  ;;  %p6384_p9 = scmp.lt.s32.totalorder %s6378_s28, %s6378_s28 }
  0xc7   :  { %p6385_p10 = por %p6384_p9, %p6383_p8 }
  0xc9   :  { %p6386_p11 = pnand %p6385_p10, %p6379_p7 }
  0xcb   :  { %6389 = shalt.err (!%p6386_p11)
}
  0xcc   :  { %149 = dma.hbm_to_vmem [thread:$0]  %s7008_s11, 1024, %s6683_s23, [#allocation17], %s6464_s5, %s6464_s5, %s6465_s2  }
  0xcd   :  { %s6468_s18 = smov [#allocation21]   ;;  %s6469_s22 = smov [#allocation22]  }
  0xce   :  { %s165_s20 = sshll.u32 %s6468_s18, 4  ;;  %s178_s12 = sshll.u32 %s6469_s22, 4  ;;  %s166_s20 = int_to_ptr.vmem [resolvable:$true] %s165_s20  ;;  %s179_s12 = int_to_ptr.vmem [resolvable:$true] %s178_s12 }
  0xcf   :  { %s6390_s30 = scalar_lea.hbm %s7010_s13, 1024 }
  0xd0   :  { %p6391_p12 = scmp.ne.s32.totalorder %s7010_s13, %s6390_s30  ;;  %p6394_p13 = scmp.lt.u32.totalorder %s6390_s30, %s7010_s13 }
  0xd2   :  { %p6396_p0 = pnand %p6394_p13, %p6391_p12 }
  0xd4   :  { %6399 = shalt.err (!%p6396_p0)
}
  0xd5   :  { %s6400_s11 = scalar_lea.vmem %s166_s20, 1024  ;;  %p6405_p2 = scmp.lt.s32.totalorder %s166_s20, %s166_s20 }
  0xd6   :  { %p6401_p1 = scmp.ne.s32.totalorder %s166_s20, %s6400_s11  ;;  %p6406_p3 = scmp.lt.s32.totalorder %s6400_s11, %s6400_s11 }
  0xd8   :  { %p6407_p4 = por %p6406_p3, %p6405_p2 }
  0xda   :  { %p6408_p5 = pnand %p6407_p4, %p6401_p1 }
  0xdc   :  { %6411 = shalt.err (!%p6408_p5)
}
  0xdd   :  { %171 = dma.hbm_to_vmem [thread:$0]  %s7010_s13, 1024, %s166_s20, [#allocation20], %s6464_s5, %s6464_s5, %s6465_s2  }
  0xde   :  { %s6412_s25 = scalar_lea.hbm %s7011_s14, 16 }
  0xdf   :  { %p6413_p6 = scmp.ne.s32.totalorder %s7011_s14, %s6412_s25  ;;  %p6416_p7 = scmp.lt.u32.totalorder %s6412_s25, %s7011_s14 }
  0xe1   :  { %p6418_p8 = pnand %p6416_p7, %p6413_p6 }
  0xe3   :  { %6421 = shalt.err (!%p6418_p8)
}
  0xe4   :  { %s6422_s1 = scalar_lea.vmem %s179_s12, 16  ;;  %s6426_s28 = scalar_lea.vmem %s179_s12, 32 }
  0xe5   :  { %p6423_p9 = scmp.ne.s32.totalorder %s179_s12, %s6422_s1  ;;  %p6427_p10 = scmp.lt.s32.totalorder %s179_s12, %s179_s12 }
  0xe6   :  { %p6428_p11 = scmp.lt.s32.totalorder %s6426_s28, %s6422_s1 }
  0xe8   :  { %p6429_p12 = por %p6428_p11, %p6427_p10 }
  0xea   :  { %p6430_p13 = pnand %p6429_p12, %p6423_p9 }
  0xec   :  { %6433 = shalt.err (!%p6430_p13)
}
  0xed   :  { %181 = dma.hbm_to_vmem [thread:$0]  %s7011_s14, 16, %s179_s12, [#allocation23]  }
  0xee   :  { %6434 = dma.done.wait [#allocation3], 7168  }
  0xef   :  { %6435 = vsyncadd [#allocation3], 4294960128 }
  0xf0   :  { %6436 = dma.done.wait [#allocation5], 448  }
  0xf1   :  { %6437 = vsyncadd [#allocation5], 4294966848 }
  0xf2   :  { %6438 = dma.done.wait [#allocation8], 57472  }
  0xf3   :  { %6439 = vsyncadd [#allocation8], 4294909824 }
  0xf4   :  { %6440 = dma.done.wait [#allocation11], 4224  }
  0xf5   :  { %6441 = vsyncadd [#allocation11], 4294963072 }
  0xf6   :  { %6442 = dma.done.wait [#allocation14], 1040  }
  0xf7   :  { %6443 = vsyncadd [#allocation14], 4294966256 }
  0xf8   :  { %6444 = dma.done.wait [#allocation17], 1040  }
  0xf9   :  { %6445 = vsyncadd [#allocation17], 4294966256 }
  0xfa   :  { %6446 = dma.done.wait [#allocation20], 1040  }
  0xfb   :  { %6447 = vsyncadd [#allocation20], 4294966256 }
  0xfc   :  { %6448 = dma.done.wait [#allocation23], 16  }
  0xfd   :  { %6449 = vsyncadd [#allocation23], 4294967280  ;;  %v6470_v0 = vmov 0   ;;  %v5986_v1 = vld [vmem:[#allocation2 + $0x4] ss:$56 sps:$4 sm:$0xff]   ;;  %vm563_vm0 = vcmask 523264  }
  0xfe   :  { %599 = vmatprep.mubr.bf16.mxu0 %v6470_v0  ;;  %640 = vmatprep.mubr.bf16.mxu1 %v6470_v0  ;;  %v5988_v2 = vld [vmem:[#allocation2 + $0xc] ss:$56 sps:$4 sm:$0xff]   ;;  %v5990_v3 = vld [vmem:[#allocation2] ss:$56 sps:$4 sm:$0xff]   ;;  %v5994_v6 = vld [vmem:[#allocation2 + $0x7c] ss:$56 sps:$4 sm:$0xff]  }
  0xff   :  { %567 = vmatprep.subr.bf16.mxu0 %v5986_v1  ;;  %v5991_v4 = vld [vmem:[#allocation2 + $0x8] ss:$56 sps:$4 sm:$0xff]   ;;  %608 = vmatprep.subr.bf16.mxu1 %v5988_v2  ;;  %v5992_v5 = vld [vmem:[#allocation2 + $0x74] ss:$56 sps:$4 sm:$0xff]   ;;  %v5997_v8 = vld [vmem:[#allocation2 + $0x78] ss:$56 sps:$4 sm:$0xff]  }
 0x100   :  { %568 = vmatpush1.bf16.msra.mxu0 %v5990_v3  ;;  %609 = vmatpush1.bf16.msra.mxu1 %v5991_v4  ;;  %v5996_v7 = vld [vmem:[#allocation2 + $0x70] ss:$56 sps:$4 sm:$0xff]   ;;  %v5998_v9 = vld [vmem:[#allocation2 + $0xe4] ss:$56 sps:$4 sm:$0xff]   ;;  %v6002_v11 = vld [vmem:[#allocation2 + $0xe0] ss:$56 sps:$4 sm:$0xff]  }
 0x101   :  { %569 = vmatprep.subr.bf16.mxu0 %v5992_v5  ;;  %610 = vmatprep.subr.bf16.mxu1 %v5994_v6  ;;  %v6000_v10 = vld [vmem:[#allocation2 + $0xec] ss:$56 sps:$4 sm:$0xff]   ;;  %v6003_v12 = vld [vmem:[#allocation2 + $0xe8] ss:$56 sps:$4 sm:$0xff]   ;;  %v6006_v14 = vld [vmem:[#allocation2 + $0x15c] ss:$56 sps:$4 sm:$0xff]  }
 0x102   :  { %v6004_v13 = vld [vmem:[#allocation2 + $0x154] ss:$56 sps:$4 sm:$0xff]   ;;  %v6008_v15 = vld [vmem:[#allocation2 + $0x150] ss:$56 sps:$4 sm:$0xff]   ;;  %v225_v17 = vld [vmem:[%s6997_s0] sm:$0xff]  ;;  %vm6472_vm1 = vmmov 0  }
 0x103   :  { %v6009_v16 = vld [vmem:[#allocation2 + $0x158] ss:$56 sps:$4 sm:$0xff]   ;;  %v6012_v18 = vld [vmem:[#allocation2 + $0x14] ss:$56 sps:$4 sm:$0xff]   ;;  %v6752_v20 = vpack.c.bf16 %v225_v17, %v225_v17  ;;  %v6018_v23 = vld [vmem:[#allocation2 + $0x84] ss:$56 sps:$4 sm:$0xff]  }
 0x104   :  { %570 = vmatpush1.bf16.msra.mxu0 %v5996_v7  ;;  %611 = vmatpush1.bf16.msra.mxu1 %v5997_v8  ;;  %v6015_v19 = vld [vmem:[#allocation2 + $0x1c] ss:$56 sps:$4 sm:$0xff]   ;;  %v6010_v21 = vld [vmem:[#allocation2 + $0x10] ss:$56 sps:$4 sm:$0xff]   ;;  %v6021_v24 = vld [vmem:[#allocation2 + $0x8c] ss:$56 sps:$4 sm:$0xff]  }
 0x105   :  { %571 = vmatprep.subr.bf16.mxu0 %v5998_v9  ;;  %612 = vmatprep.subr.bf16.mxu1 %v6000_v10  ;;  %v6013_v22 = vld [vmem:[#allocation2 + $0x18] ss:$56 sps:$4 sm:$0xff]   ;;  %v6019_v26 = vld [vmem:[#allocation2 + $0x88] ss:$56 sps:$4 sm:$0xff]   ;;  %v6024_v27 = vld [vmem:[#allocation2 + $0xf4] ss:$56 sps:$4 sm:$0xff]  }
 0x106   :  { %v6016_v25 = vld [vmem:[#allocation2 + $0x80] ss:$56 sps:$4 sm:$0xff]   ;;  %v6027_v28 = vld [vmem:[#allocation2 + $0xfc] ss:$56 sps:$4 sm:$0xff]   ;;  %v6022_v29 = vld [vmem:[#allocation2 + $0xf0] ss:$56 sps:$4 sm:$0xff]  }
 0x107   :  { %v6025_v30 = vld [vmem:[#allocation2 + $0xf8] ss:$56 sps:$4 sm:$0xff]   ;;  %v6030_v31 = vld [vmem:[#allocation2 + $0x164] ss:$56 sps:$4 sm:$0xff]   ;;  %v6031_v34 = vld [vmem:[#allocation2 + $0x168] ss:$56 sps:$4 sm:$0xff]  }
 0x108   :  { %572 = vmatpush1.bf16.msra.mxu0 %v6002_v11  ;;  %613 = vmatpush1.bf16.msra.mxu1 %v6003_v12  ;;  %v6033_v32 = vld [vmem:[#allocation2 + $0x16c] ss:$56 sps:$4 sm:$0xff]   ;;  %v6028_v33 = vld [vmem:[#allocation2 + $0x160] ss:$56 sps:$4 sm:$0xff]   ;;  %v6045_v40 = vld [vmem:[#allocation2 + $0x9c] ss:$56 sps:$4 sm:$0xff]  }
 0x109   :  { %573 = vmatprep.subr.bf16.mxu0 %v6004_v13  ;;  %614 = vmatprep.subr.bf16.mxu1 %v6006_v14  ;;  %v6036_v35 = vld [vmem:[#allocation2 + $0x24] ss:$56 sps:$4 sm:$0xff]   ;;  %v6034_v37 = vld [vmem:[#allocation2 + $0x20] ss:$56 sps:$4 sm:$0xff]   ;;  %v6042_v39 = vld [vmem:[#allocation2 + $0x94] ss:$56 sps:$4 sm:$0xff]  }
 0x10a   :  { %v6039_v36 = vld [vmem:[#allocation2 + $0x2c] ss:$56 sps:$4 sm:$0xff]   ;;  %v6037_v38 = vld [vmem:[#allocation2 + $0x28] ss:$56 sps:$4 sm:$0xff]   ;;  %v6043_v42 = vld [vmem:[#allocation2 + $0x98] ss:$56 sps:$4 sm:$0xff]  }
 0x10b   :  { %v6040_v41 = vld [vmem:[#allocation2 + $0x90] ss:$56 sps:$4 sm:$0xff]   ;;  %v6048_v43 = vld [vmem:[#allocation2 + $0x104] ss:$56 sps:$4 sm:$0xff]   ;;  %v6046_v45 = vld [vmem:[#allocation2 + $0x100] ss:$56 sps:$4 sm:$0xff]  }
 0x10c   :  { %574 = vmatpush1.bf16.msra.mxu0 %v6008_v15  ;;  %615 = vmatpush1.bf16.msra.mxu1 %v6009_v16  ;;  %v6051_v44 = vld [vmem:[#allocation2 + $0x10c] ss:$56 sps:$4 sm:$0xff]   ;;  %v6049_v46 = vld [vmem:[#allocation2 + $0x108] ss:$56 sps:$4 sm:$0xff]   ;;  %v6057_v48 = vld [vmem:[#allocation2 + $0x17c] ss:$56 sps:$4 sm:$0xff]  }
 0x10d   :  { %649 = vmatprep.subr.bf16.mxu0 %v6012_v18  ;;  %690 = vmatprep.subr.bf16.mxu1 %v6015_v19  ;;  %v6054_v47 = vld [vmem:[#allocation2 + $0x174] ss:$56 sps:$4 sm:$0xff]   ;;  %v1058_v49 = vld [vmem:[#allocation7] sm:$0xff]  ;;  %v6052_v51 = vld [vmem:[#allocation2 + $0x170] ss:$56 sps:$4 sm:$0xff]  }
 0x10e   :  { %v1062_v50 = vld [vmem:[#allocation7 + $0x20] sm:$0xff]  ;;  %v6055_v52 = vld [vmem:[#allocation2 + $0x178] ss:$56 sps:$4 sm:$0xff]   ;;  %v6060_v53 = vld [vmem:[#allocation2 + $0x34] ss:$56 sps:$4 sm:$0xff]  }
 0x10f   :  { %5269 = vmatmul.mubr.msk.bf16.vlgmr.msra.gmra.mrb[0].mxu0 %vm563_vm0, %v6752_v20  ;;  %5270 = vmatmul.mubr.msk.bf16.vlgmr.msra.gmra.mrb[0].mxu1 %vm563_vm0, %v6752_v20  ;;  %v5277_v54 = vcombine.high %v1058_v49, %v1062_v50  ;;  %v1066_v55 = vld [vmem:[#allocation7 + $0x40] sm:$0xff]  ;;  %v6058_v57 = vld [vmem:[#allocation2 + $0x30] ss:$56 sps:$4 sm:$0xff]   ;;  %v5276_v59 = vcombine.low %v1058_v49, %v1062_v50  ;;  %v6066_v1 = vld [vmem:[#allocation2 + $0x114] ss:$56 sps:$4 sm:$0xff]  }
 0x110   :  { %650 = vmatpush1.bf16.msra.mxu0 %v6010_v21  ;;  %691 = vmatpush1.bf16.msra.mxu1 %v6013_v22  ;;  %v1070_v56 = vld [vmem:[#allocation7 + $0x60] sm:$0xff]  ;;  %v6064_v5 = vld [vmem:[#allocation2 + $0x110] ss:$56 sps:$4 sm:$0xff]  }
 0x111   :  { %651 = vmatprep.subr.bf16.mxu0 %v6018_v23  ;;  %692 = vmatprep.subr.bf16.mxu1 %v6021_v24  ;;  %v6063_v58 = vld [vmem:[#allocation2 + $0xa4] ss:$56 sps:$4 sm:$0xff]   ;;  %v6061_v62 = vld [vmem:[#allocation2 + $0xa0] ss:$56 sps:$4 sm:$0xff]   ;;  %v5285_v63 = vcombine.high %v1066_v55, %v1070_v56  ;;  %v5284_v2 = vcombine.low %v1066_v55, %v1070_v56 }
 0x112   :  { %681 = vmatprep.mubr.bf16.mxu0 %v6470_v0  ;;  %722 = vmatprep.mubr.bf16.mxu1 %v6470_v0  ;;  %v1074_v60 = vld [vmem:[#allocation7 + $0x80] sm:$0xff]  ;;  %v1059_v8 = vld [vmem:[#allocation7 + $0x8] sm:$0xff] }
 0x113   :  { %v1078_v61 = vld [vmem:[#allocation7 + $0xa0] sm:$0xff]  ;;  %v1063_v9 = vld [vmem:[#allocation7 + $0x28] sm:$0xff] }
 0x114   :  { %652 = vmatpush1.bf16.msra.mxu0 %v6016_v25  ;;  %693 = vmatpush1.bf16.msra.mxu1 %v6019_v26  ;;  %v1082_v3 = vld [vmem:[#allocation7 + $0xc0] sm:$0xff]  ;;  %v5293_v6 = vcombine.high %v1074_v60, %v1078_v61  ;;  %v5292_v10 = vcombine.low %v1074_v60, %v1078_v61  ;;  %v1067_v15 = vld [vmem:[#allocation7 + $0x48] sm:$0xff]  ;;  %v5279_v17 = vcombine.high %v1059_v8, %v1063_v9 }
 0x115   :  { %653 = vmatprep.subr.bf16.mxu0 %v6024_v27  ;;  %694 = vmatprep.subr.bf16.mxu1 %v6027_v28  ;;  %v1086_v4 = vld [vmem:[#allocation7 + $0xe0] sm:$0xff]  ;;  %v1071_v16 = vld [vmem:[#allocation7 + $0x68] sm:$0xff]  ;;  %v5278_v23 = vcombine.low %v1059_v8, %v1063_v9 }
 0x116   :  { %v6069_v7 = vld [vmem:[#allocation2 + $0x184] ss:$56 sps:$4 sm:$0xff]   ;;  %v6067_v13 = vld [vmem:[#allocation2 + $0x180] ss:$56 sps:$4 sm:$0xff]   ;;  %v5301_v14 = vcombine.high %v1082_v3, %v1086_v4  ;;  %v5300_v18 = vcombine.low %v1082_v3, %v1086_v4  ;;  %v5287_v26 = vcombine.high %v1067_v15, %v1071_v16 }
 0x117   :  { %v1090_v11 = vld [vmem:[#allocation7 + $0x100] sm:$0xff]  ;;  %v1075_v24 = vld [vmem:[#allocation7 + $0x88] sm:$0xff] }
 0x118   :  { %654 = vmatpush1.bf16.msra.mxu0 %v6022_v29  ;;  %695 = vmatpush1.bf16.msra.mxu1 %v6025_v30  ;;  %v1094_v12 = vld [vmem:[#allocation7 + $0x120] sm:$0xff]  ;;  %v1079_v25 = vld [vmem:[#allocation7 + $0xa8] sm:$0xff]  ;;  %v5286_v29 = vcombine.low %v1067_v15, %v1071_v16 }
 0x119   :  { %655 = vmatprep.subr.bf16.mxu0 %v6030_v31  ;;  %696 = vmatprep.subr.bf16.mxu1 %v6033_v32  ;;  %v1098_v19 = vld [vmem:[#allocation7 + $0x140] sm:$0xff]  ;;  %v5309_v22 = vcombine.high %v1090_v11, %v1094_v12  ;;  %v5308_v27 = vcombine.low %v1090_v11, %v1094_v12  ;;  %v1083_v30 = vld [vmem:[#allocation7 + $0xc8] sm:$0xff]  ;;  %v5295_v32 = vcombine.high %v1075_v24, %v1079_v25 }
 0x11a   :  { %v1102_v21 = vld [vmem:[#allocation7 + $0x160] sm:$0xff]  ;;  %v1087_v31 = vld [vmem:[#allocation7 + $0xe8] sm:$0xff] }
 0x11b   :  { %v5317_v28 = vcombine.high %v1098_v19, %v1102_v21  ;;  %v1119_v56 = vld [vmem:[#allocation7 + $0x1e8] sm:$0xff]  ;;  %v1122_v60 = vld [vmem:[#allocation7 + $0x200] sm:$0xff] }
 0x11c   :  { %656 = vmatpush1.bf16.msra.mxu0 %v6028_v33  ;;  %697 = vmatpush1.bf16.msra.mxu1 %v6031_v34  ;;  %v5316_v33 = vcombine.low %v1098_v19, %v1102_v21  ;;  %v5294_v34 = vcombine.low %v1075_v24, %v1079_v25  ;;  %v1126_v61 = vld [vmem:[#allocation7 + $0x220] sm:$0xff]  ;;  %v1139_v15 = vld [vmem:[#allocation7 + $0x288] sm:$0xff] }
 0x11d   :  { %731 = vmatprep.subr.bf16.mxu0 %v6036_v35  ;;  %772 = vmatprep.subr.bf16.mxu1 %v6039_v36  ;;  %v1091_v35 = vld [vmem:[#allocation7 + $0x108] sm:$0xff]  ;;  %v1134_v3 = vld [vmem:[#allocation7 + $0x260] sm:$0xff]  ;;  %v5340_v4 = vcombine.low %v1122_v60, %v1126_v61 }
 0x11e   :  { %v1095_v36 = vld [vmem:[#allocation7 + $0x128] sm:$0xff] }
 0x11f   :  { %5271 = vmatmul.mubr.msk.bf16.vlgmr.msra.gmra.mrb[4].mxu0 %vm563_vm0, %v6752_v20  ;;  %5272 = vmatmul.mubr.msk.bf16.vlgmr.msra.gmra.mrb[4].mxu1 %vm563_vm0, %v6752_v20  ;;  %v1147_v24 = vld [vmem:[#allocation7 + $0x2c8] sm:$0xff] }
 0x120   :  { %732 = vmatpush1.bf16.msra.mxu0 %v6034_v37  ;;  %773 = vmatpush1.bf16.msra.mxu1 %v6037_v38  ;;  %v5303_v37 = vcombine.high %v1083_v30, %v1087_v31  ;;  %v5302_v38 = vcombine.low %v1083_v30, %v1087_v31  ;;  %v1154_v30 = vld [vmem:[#allocation7 + $0x300] sm:$0xff] }
 0x121   :  { %733 = vmatprep.subr.bf16.mxu0 %v6042_v39  ;;  %774 = vmatprep.subr.bf16.mxu1 %v6045_v40  ;;  %v1099_v39 = vld [vmem:[#allocation7 + $0x148] sm:$0xff]  ;;  %v5311_v40 = vcombine.high %v1091_v35, %v1095_v36  ;;  %v1158_v31 = vld [vmem:[#allocation7 + $0x320] sm:$0xff] }
 0x122   :  { %763 = vmatprep.mubr.bf16.mxu0 %v6470_v0  ;;  %804 = vmatprep.mubr.bf16.mxu1 %v6470_v0 }
 0x124   :  { %734 = vmatpush1.bf16.msra.mxu0 %v6040_v41  ;;  %775 = vmatpush1.bf16.msra.mxu1 %v6043_v42  ;;  %v5310_v41 = vcombine.low %v1091_v35, %v1095_v36  ;;  %v5372_v35 = vcombine.low %v1154_v30, %v1158_v31 }
 0x125   :  { %735 = vmatprep.subr.bf16.mxu0 %v6048_v43  ;;  %776 = vmatprep.subr.bf16.mxu1 %v6051_v44  ;;  %v1106_v44 = vld [vmem:[#allocation7 + $0x180] sm:$0xff] }
 0x128   :  { %736 = vmatpush1.bf16.msra.mxu0 %v6046_v45  ;;  %777 = vmatpush1.bf16.msra.mxu1 %v6049_v46  ;;  %v1110_v45 = vld [vmem:[#allocation7 + $0x1a0] sm:$0xff]  ;;  %v1107_v46 = vld [vmem:[#allocation7 + $0x188] sm:$0xff] }
 0x129   :  { %737 = vmatprep.subr.bf16.mxu0 %v6054_v47  ;;  %778 = vmatprep.subr.bf16.mxu1 %v6057_v48  ;;  %v5325_v47 = vcombine.high %v1106_v44, %v1110_v45  ;;  %v1111_v48 = vld [vmem:[#allocation7 + $0x1a8] sm:$0xff]  ;;  %v5324_v49 = vcombine.low %v1106_v44, %v1110_v45  ;;  %v1170_v45 = vld [vmem:[#allocation7 + $0x380] sm:$0xff] }
 0x12a   :  { %v5326_v50 = vcombine.low %v1107_v46, %v1111_v48 }
 0x12c   :  { %738 = vmatpush1.bf16.msra.mxu0 %v6052_v51  ;;  %779 = vmatpush1.bf16.msra.mxu1 %v6055_v52  ;;  %v5327_v51 = vcombine.high %v1107_v46, %v1111_v48  ;;  %v1114_v52 = vld [vmem:[#allocation7 + $0x1c0] sm:$0xff]  ;;  %v1171_v48 = vld [vmem:[#allocation7 + $0x388] sm:$0xff] }
 0x12d   :  { %813 = vmatprep.subr.bf16.mxu0 %v6060_v53  ;;  %3746 = vmatprep.subr.bf16.mxu1 %v5277_v54  ;;  %v1118_v53 = vld [vmem:[#allocation7 + $0x1e0] sm:$0xff]  ;;  %v1115_v54 = vld [vmem:[#allocation7 + $0x1c8] sm:$0xff] }
 0x12e   :  { %v5333_v55 = vcombine.high %v1114_v52, %v1118_v53  ;;  %v1174_v46 = vld [vmem:[#allocation7 + $0x3a0] sm:$0xff] }
 0x12f   :  { %5273 = vmatmul.mubr.msk.bf16.vlgmr.msra.gmra.mrb[8].mxu0 %vm563_vm0, %v6752_v20  ;;  %5274 = vmatmul.mubr.msk.bf16.vlgmr.msra.gmra.mrb[8].mxu1 %vm563_vm0, %v6752_v20 }
 0x130   :  { %814 = vmatpush1.bf16.msra.mxu0 %v6058_v57  ;;  %845 = vmatprep.mubr.bf16.mxu0 %v6470_v0  ;;  %v5332_v57 = vcombine.low %v1114_v52, %v1118_v53  ;;  %v1178_v53 = vld [vmem:[#allocation7 + $0x3c0] sm:$0xff] }
 0x131   :  { %815 = vmatprep.subr.bf16.mxu0 %v6063_v58  ;;  %3747 = vmatpush1.bf16.msra.mxu1 %v5276_v59  ;;  %v5334_v58 = vcombine.low %v1115_v54, %v1119_v56  ;;  %v5335_v59 = vcombine.high %v1115_v54, %v1119_v56  ;;  %v1182_v54 = vld [vmem:[#allocation7 + $0x3e0] sm:$0xff] }
 0x132   :  { %3748 = vmatprep.subr.bf16.mxu1 %v5285_v63  ;;  %v5341_v63 = vcombine.high %v1122_v60, %v1126_v61  ;;  %v5397_v56 = vcombine.high %v1178_v53, %v1182_v54  ;;  %v6773_v61 = vld [vmem:[#allocation7 + $0x400] sm:$0xff] }
 0x134   :  { %816 = vmatpush1.bf16.msra.mxu0 %v6061_v62  ;;  %v1123_v62 = vld [vmem:[#allocation7 + $0x208] sm:$0xff] }
 0x135   :  { %817 = vmatprep.subr.bf16.mxu0 %v6066_v1  ;;  %3749 = vmatpush1.bf16.msra.mxu1 %v5284_v2  ;;  %v1127_v1 = vld [vmem:[#allocation7 + $0x228] sm:$0xff]  ;;  %v1130_v2 = vld [vmem:[#allocation7 + $0x240] sm:$0xff] }
 0x136   :  { %3750 = vmatprep.subr.bf16.mxu1 %v5293_v6  ;;  %v1131_v6 = vld [vmem:[#allocation7 + $0x248] sm:$0xff]  ;;  %v5342_v8 = vcombine.low %v1123_v62, %v1127_v1  ;;  %v5349_v9 = vcombine.high %v1130_v2, %v1134_v3  ;;  %v5348_v11 = vcombine.low %v1130_v2, %v1134_v3 }
 0x137   :  { %v6781_v2 = vld [vmem:[#allocation7 + $0x428] sm:$0xff] }
 0x138   :  { %818 = vmatpush1.bf16.msra.mxu0 %v6064_v5  ;;  %v5343_v5 = vcombine.high %v1123_v62, %v1127_v1  ;;  %v6775_v62 = vld [vmem:[#allocation7 + $0x420] sm:$0xff] }
 0x139   :  { %819 = vmatprep.subr.bf16.mxu0 %v6069_v7  ;;  %3751 = vmatpush1.bf16.msra.mxu1 %v5292_v10  ;;  %v1135_v7 = vld [vmem:[#allocation7 + $0x268] sm:$0xff]  ;;  %v5405_v1 = vcombine.high %v6773_v61, %v6775_v62  ;;  %v5404_v3 = vcombine.low %v6773_v61, %v6775_v62  ;;  %v1210_v61 = vld [vmem:[#allocation7 + $0x4c0] sm:$0xff] }
 0x13a   :  { %3752 = vmatprep.subr.bf16.mxu1 %v5301_v14  ;;  %v5351_v10 = vcombine.high %v1131_v6, %v1135_v7  ;;  %v5350_v12 = vcombine.low %v1131_v6, %v1135_v7  ;;  %v1142_v14 = vld [vmem:[#allocation7 + $0x2a0] sm:$0xff]  ;;  %v858_v6 = vlaneseq }
 0x13c   :  { %820 = vmatpush1.bf16.msra.mxu0 %v6067_v13  ;;  %v1138_v13 = vld [vmem:[#allocation7 + $0x280] sm:$0xff]  ;;  %v859_v7 = vshrl.u32 %v858_v6, 7  ;;  %v6833_v6 = vld [vmem:[#allocation4 + $0x8] sm:$0x3f] }
 0x13d   :  { %3910 = vmatprep.subr.bf16.mxu0 %v5279_v17  ;;  %3753 = vmatpush1.bf16.msra.mxu1 %v5300_v18  ;;  %v5357_v16 = vcombine.high %v1138_v13, %v1142_v14  ;;  %v1143_v17 = vld [vmem:[#allocation7 + $0x2a8] sm:$0xff]  ;;  %v5356_v18 = vcombine.low %v1138_v13, %v1142_v14 }
 0x13e   :  { %3754 = vmatprep.subr.bf16.mxu1 %v5309_v22  ;;  %v5358_v19 = vcombine.low %v1139_v15, %v1143_v17  ;;  %v5359_v21 = vcombine.high %v1139_v15, %v1143_v17  ;;  %v1146_v22 = vld [vmem:[#allocation7 + $0x2c0] sm:$0xff] }
 0x13f   :  { %5275 = vmatmul.mubr.msk.bf16.vlgmr.msra.gmra.mrb[12].mxu0 %vm563_vm0, %v6752_v20  ;;  %v1103_v20 = vld [vmem:[#allocation7 + $0x168] sm:$0xff] }
 0x140   :  { %3911 = vmatpush1.bf16.msra.mxu0 %v5278_v23  ;;  %v5319_v42 = vcombine.high %v1099_v39, %v1103_v20  ;;  %v5318_v43 = vcombine.low %v1099_v39, %v1103_v20  ;;  %v1150_v23 = vld [vmem:[#allocation7 + $0x2e0] sm:$0xff]  ;;  %v1163_v20 = vld [vmem:[#allocation7 + $0x348] sm:$0xff] }
 0x141   :  { %3912 = vmatprep.subr.bf16.mxu0 %v5287_v26  ;;  %3755 = vmatpush1.bf16.msra.mxu1 %v5308_v27  ;;  %v5365_v25 = vcombine.high %v1146_v22, %v1150_v23  ;;  %v1151_v26 = vld [vmem:[#allocation7 + $0x2e8] sm:$0xff]  ;;  %v5364_v27 = vcombine.low %v1146_v22, %v1150_v23  ;;  %v1166_v39 = vld [vmem:[#allocation7 + $0x360] sm:$0xff] }
 0x142   :  { %3756 = vmatprep.subr.bf16.mxu1 %v5317_v28  ;;  %v5366_v28 = vcombine.low %v1147_v24, %v1151_v26 }
 0x144   :  { %3913 = vmatpush1.bf16.msra.mxu0 %v5286_v29  ;;  %v5367_v29 = vcombine.high %v1147_v24, %v1151_v26  ;;  %v6798_v24 = vsub.s32 0, %v859_v7  ;;  %v6802_v26 = vsub.s32 6, %v859_v7 }
 0x145   :  { %3914 = vmatprep.subr.bf16.mxu0 %v5295_v32  ;;  %3757 = vmatpush1.bf16.msra.mxu1 %v5316_v33  ;;  %v1155_v32 = vld [vmem:[#allocation7 + $0x308] sm:$0xff]  ;;  %v5373_v33 = vcombine.high %v1154_v30, %v1158_v31 }
 0x146   :  { %3758 = vmatprep.subr.bf16.mxu1 %v5325_v47  ;;  %v5389_v47 = vcombine.high %v1170_v45, %v1174_v46 }
 0x148   :  { %3915 = vmatpush1.bf16.msra.mxu0 %v5294_v34  ;;  %v1159_v34 = vld [vmem:[#allocation7 + $0x328] sm:$0xff] }
 0x149   :  { %3916 = vmatprep.subr.bf16.mxu0 %v5303_v37  ;;  %3759 = vmatpush1.bf16.msra.mxu1 %v5324_v49  ;;  %v5374_v36 = vcombine.low %v1155_v32, %v1159_v34  ;;  %v5375_v37 = vcombine.high %v1155_v32, %v1159_v34  ;;  %v1175_v49 = vld [vmem:[#allocation7 + $0x3a8] sm:$0xff] }
 0x14a   :  { %3760 = vmatprep.subr.bf16.mxu1 %v5333_v55  ;;  %v5391_v52 = vcombine.high %v1171_v48, %v1175_v49  ;;  %v1179_v55 = vld [vmem:[#allocation7 + $0x3c8] sm:$0xff] }
 0x14c   :  { %3917 = vmatpush1.bf16.msra.mxu0 %v5302_v38  ;;  %v1162_v38 = vld [vmem:[#allocation7 + $0x340] sm:$0xff] }
 0x14d   :  { %3918 = vmatprep.subr.bf16.mxu0 %v5311_v40  ;;  %3761 = vmatpush1.bf16.msra.mxu1 %v5332_v57  ;;  %v5381_v40 = vcombine.high %v1162_v38, %v1166_v39  ;;  %v1183_v57 = vld [vmem:[#allocation7 + $0x3e8] sm:$0xff] }
 0x14e   :  { %3762 = vmatprep.subr.bf16.mxu1 %v5341_v63  ;;  %v5399_v60 = vcombine.high %v1179_v55, %v1183_v57  ;;  %v6777_v63 = vld [vmem:[#allocation7 + $0x408] sm:$0xff] }
 0x150   :  { %3919 = vmatpush1.bf16.msra.mxu0 %v5310_v41  ;;  %v1167_v41 = vld [vmem:[#allocation7 + $0x368] sm:$0xff] }
 0x151   :  { %3920 = vmatprep.subr.bf16.mxu0 %v5319_v42  ;;  %3763 = vmatpush1.bf16.msra.mxu1 %v5340_v4  ;;  %v5380_v42 = vcombine.low %v1162_v38, %v1166_v39  ;;  %v5382_v44 = vcombine.low %v1163_v20, %v1167_v41  ;;  %v5406_v4 = vcombine.low %v6777_v63, %v6781_v2 }
 0x152   :  { %3764 = vmatprep.subr.bf16.mxu1 %v5349_v9  ;;  %v854_v9 = vld [vmem:[#allocation4] sm:$0xff] }
 0x153   :  { %v885_v31 = vrot.slane %v854_v9, %v6802_v26 }
 0x154   :  { %3921 = vmatpush1.bf16.msra.mxu0 %v5318_v43  ;;  %v5383_v43 = vcombine.high %v1163_v20, %v1167_v41 }
 0x155   :  { %3922 = vmatprep.subr.bf16.mxu0 %v5327_v51  ;;  %3765 = vmatpush1.bf16.msra.mxu1 %v5348_v11  ;;  %v5390_v51 = vcombine.low %v1171_v48, %v1175_v49  ;;  %v6792_v11 = vld [vmem:[#allocation6] sm:$0xff] }
 0x156   :  { %3766 = vmatprep.subr.bf16.mxu1 %v5357_v16 }
 0x158   :  { %3923 = vmatpush1.bf16.msra.mxu0 %v5326_v50  ;;  %v5388_v50 = vcombine.low %v1170_v45, %v1174_v46 }
 0x159   :  { %3924 = vmatprep.subr.bf16.mxu0 %v5335_v59  ;;  %3767 = vmatpush1.bf16.msra.mxu1 %v5356_v18  ;;  %v5398_v59 = vcombine.low %v1179_v55, %v1183_v57  ;;  %v6829_v57 = vsub.s32 3, %v859_v7 }
 0x15a   :  { %3768 = vmatprep.subr.bf16.mxu1 %v5365_v25  ;;  %v6800_v25 = vsub.s32 4, %v859_v7 }
 0x15c   :  { %3925 = vmatpush1.bf16.msra.mxu0 %v5334_v58  ;;  %v5396_v58 = vcombine.low %v1178_v53, %v1182_v54  ;;  %v877_v30 = vrot.slane %v854_v9, %v6800_v25 }
 0x15d   :  { %3926 = vmatprep.subr.bf16.mxu0 %v5343_v5  ;;  %3769 = vmatpush1.bf16.msra.mxu1 %v5364_v27  ;;  %v5407_v5 = vcombine.high %v6777_v63, %v6781_v2  ;;  %v861_v27 = vrot.slane %v854_v9, %v6798_v24  ;;  %v1214_v63 = vld [vmem:[#allocation7 + $0x4e0] sm:$0xff]  ;;  %v1211_v2 = vld [vmem:[#allocation7 + $0x4c8] sm:$0xff] }
 0x15e   :  { %3770 = vmatprep.subr.bf16.mxu1 %v5373_v33  ;;  %v949_v33 = vrot.slane %v6792_v11, %v6798_v24 }
 0x160   :  { %3927 = vmatpush1.bf16.msra.mxu0 %v5342_v8  ;;  %v6789_v8 = vsub.s32 2, %v859_v7 }
 0x161   :  { %3928 = vmatprep.subr.bf16.mxu0 %v5351_v10  ;;  %3771 = vmatpush1.bf16.msra.mxu1 %v5372_v35 }
 0x162   :  { %3772 = vmatprep.subr.bf16.mxu1 %v5381_v40  ;;  %v869_v10 = vrot.slane %v854_v9, %v6789_v8 }
 0x164   :  { %3929 = vmatpush1.bf16.msra.mxu0 %v5350_v12  ;;  %v957_v12 = vrot.slane %v6792_v11, %v6789_v8 }
 0x165   :  { %3930 = vmatprep.subr.bf16.mxu0 %v5359_v21  ;;  %3773 = vmatpush1.bf16.msra.mxu1 %v5380_v42 }
 0x166   :  { %3774 = vmatprep.subr.bf16.mxu1 %v5389_v47 }
 0x168   :  { %3931 = vmatpush1.bf16.msra.mxu0 %v5358_v19 }
 0x169   :  { %3932 = vmatprep.subr.bf16.mxu0 %v5367_v29  ;;  %3775 = vmatpush1.bf16.msra.mxu1 %v5388_v50  ;;  %v6807_v29 = vsub.s32 7, %v859_v7 }
 0x16a   :  { %3776 = vmatprep.subr.bf16.mxu1 %v5397_v56  ;;  %v6827_v56 = vsub.s32 1, %v859_v7 }
 0x16b   :  { %v889_v35 = vrot.slane %v854_v9, %v6807_v29  ;;  %v977_v40 = vrot.slane %v6792_v11, %v6807_v29 }
 0x16c   :  { %3933 = vmatpush1.bf16.msra.mxu0 %v5366_v28  ;;  %v6805_v28 = vsub.s32 5, %v859_v7 }
 0x16d   :  { %3934 = vmatprep.subr.bf16.mxu0 %v5375_v37  ;;  %3777 = vmatpush1.bf16.msra.mxu1 %v5396_v58  ;;  %v973_v37 = vrot.slane %v6792_v11, %v6802_v26 }
 0x16e   :  { %3787 = vmatprep.subr.bf16.mxu1 %v5405_v1  ;;  %v881_v34 = vrot.slane %v854_v9, %v6805_v28  ;;  %v969_v20 = vrot.slane %v6792_v11, %v6805_v28  ;;  %v865_v1 = vrot.slane %v854_v9, %v6827_v56 }
 0x170   :  { %3935 = vmatpush1.bf16.msra.mxu0 %v5374_v36  ;;  %v965_v36 = vrot.slane %v6792_v11, %v6800_v25 }
 0x171   :  { %3936 = vmatprep.subr.bf16.mxu0 %v5383_v43 }
 0x174   :  { %3937 = vmatpush1.bf16.msra.mxu0 %v5382_v44 }
 0x175   :  { %3938 = vmatprep.subr.bf16.mxu0 %v5391_v52 }
 0x178   :  { %3939 = vmatpush1.bf16.msra.mxu0 %v5390_v51 }
 0x179   :  { %3940 = vmatprep.subr.bf16.mxu0 %v5399_v60 }
 0x17c   :  { %3941 = vmatpush1.bf16.msra.mxu0 %v5398_v59 }
 0x17d   :  { %3951 = vmatprep.subr.bf16.mxu0 %v5407_v5  ;;  %v873_v5 = vrot.slane %v854_v9, %v6829_v57  ;;  %v897_v9 = vrot.slane %v6833_v6, %v6827_v56 }
 0x1e2   :  { %v601_v13 = vpop.f32.mrb[0].mxu0  ;;  %v642_v14 = vpop.f32.mrb[0].mxu1 }
 0x1e3   :  { %v603_v15 = vpop.f32.mrb[1].mxu0  ;;  %v930_v16 = vmul.f32 %v869_v10, %v642_v14  ;;  %v644_v17 = vpop.f32.mrb[1].mxu1  ;;  %v928_v32 = vmul.f32 %v861_v27, %v601_v13  ;;  %v953_v10 = vrot.slane %v6792_v11, %v6827_v56  ;;  %v6839_v13 = vld [vmem:[#allocation6 + $0x8] sm:$0x3f] }
 0x1e4   :  { %v605_v18 = vpop.f32.mrb[2].mxu0  ;;  %v646_v19 = vpop.f32.mrb[2].mxu1  ;;  %v929_v14 = vmul.f32 %v865_v1, %v603_v15  ;;  %v931_v7 = vmul.f32 %v873_v5, %v644_v17  ;;  %v993_v27 = vrot.slane %v6839_v13, %v6829_v57  ;;  %v1194_v1 = vld [vmem:[#allocation7 + $0x440] sm:$0xff]  ;;  %v997_v62 = vrot.slane %v6839_v13, %v6800_v25 }
 0x1e5   :  { %v606_v21 = vpop.f32.mrb[3].mxu0  ;;  %v6796_v22 = vadd.f32 %v957_v12, %v930_v16  ;;  %v647_v23 = vpop.f32.mrb[3].mxu1  ;;  %v1016_v45 = vadd.f32 %v949_v33, %v928_v32  ;;  %v961_v12 = vrot.slane %v6792_v11, %v6829_v57  ;;  %v893_v16 = vrot.slane %v6833_v6, %v6798_v24 }
 0x1e6   :  { %v901_v18 = vrot.slane %v6833_v6, %v6789_v8  ;;  %v905_v19 = vrot.slane %v6833_v6, %v6829_v57  ;;  %v981_v21 = vrot.slane %v6839_v13, %v6798_v24  ;;  %v989_v11 = vrot.slane %v6839_v13, %v6789_v8 }
 0x1e7   :  { %v1030_v58 = vmax.f32 %v1016_v45, 0.0  ;;  %v985_v23 = vrot.slane %v6839_v13, %v6827_v56 }
 0x1f2   :  { %v683_v38 = vpop.f32.mrb[4].mxu0  ;;  %v724_v39 = vpop.f32.mrb[4].mxu1 }
 0x1f3   :  { %v932_v41 = vmul.f32 %v877_v30, %v683_v38  ;;  %v934_v42 = vmul.f32 %v885_v31, %v724_v39  ;;  %v685_v43 = vpop.f32.mrb[5].mxu0  ;;  %v726_v44 = vpop.f32.mrb[5].mxu1  ;;  %v1017_v30 = vadd.f32 %v953_v10, %v929_v14  ;;  %v1019_v31 = vadd.f32 %v961_v12, %v931_v7  ;;  %v1198_v12 = vld [vmem:[#allocation7 + $0x460] sm:$0xff]  ;;  %v1195_v14 = vld [vmem:[#allocation7 + $0x448] sm:$0xff] }
 0x1f4   :  { %v933_v46 = vmul.f32 %v881_v34, %v685_v43  ;;  %v935_v47 = vmul.f32 %v889_v35, %v726_v44  ;;  %v687_v48 = vpop.f32.mrb[6].mxu0  ;;  %v728_v49 = vpop.f32.mrb[6].mxu1  ;;  %v1199_v7 = vld [vmem:[#allocation7 + $0x468] sm:$0xff] }
 0x1f5   :  { %v1020_v50 = vadd.f32 %v965_v36, %v932_v41  ;;  %v6823_v51 = vadd.f32 %v973_v37, %v934_v42  ;;  %v688_v52 = vpop.f32.mrb[7].mxu0  ;;  %v729_v53 = vpop.f32.mrb[7].mxu1  ;;  %v1031_v45 = vmax.f32 %v1017_v30, 0.0  ;;  %v1032_v49 = vmax.f32 %v6796_v22, 0.0 }
 0x1f6   :  { %v6825_v54 = vadd.f32 %v969_v20, %v933_v46  ;;  %v1023_v55 = vadd.f32 %v977_v40, %v935_v47  ;;  %v1033_v46 = vmax.f32 %v1019_v31, 0.0  ;;  %v5413_v22 = vcombine.high %v1194_v1, %v1198_v12 }
 0x1f7   :  { %v1034_v52 = vmax.f32 %v1020_v50, 0.0  ;;  %v5415_v50 = vcombine.high %v1195_v14, %v1199_v7 }
 0x1f8   :  { %v1037_v59 = vmax.f32 %v1023_v55, 0.0 }
 0x1fa   :  { %v1044_v60 = vmax.f32 %v1030_v58, %v1037_v59 }
 0x202   :  { %v765_v15 = vpop.f32.mrb[8].mxu0  ;;  %v806_v17 = vpop.f32.mrb[8].mxu1 }
 0x203   :  { %v936_v32 = vmul.f32 %v893_v16, %v765_v15  ;;  %v938_v33 = vmul.f32 %v901_v18, %v806_v17  ;;  %v767_v34 = vpop.f32.mrb[9].mxu0  ;;  %v808_v35 = vpop.f32.mrb[9].mxu1  ;;  %v6864_v18 = vpack.c.bf16 %v1044_v60, %v1044_v60  ;;  %v5412_v60 = vcombine.low %v1194_v1, %v1198_v12  ;;  %v1230_v1 = vld [vmem:[#allocation7 + $0x560] sm:$0xff]  ;;  %v1227_v12 = vld [vmem:[#allocation7 + $0x548] sm:$0xff] }
 0x204   :  { %v937_v36 = vmul.f32 %v897_v9, %v767_v34  ;;  %v939_v37 = vmul.f32 %v905_v19, %v808_v35  ;;  %v769_v38 = vpop.f32.mrb[10].mxu0  ;;  %v810_v39 = vpop.f32.mrb[10].mxu1  ;;  %v1202_v9 = vld [vmem:[#allocation7 + $0x480] sm:$0xff]  ;;  %v5414_v17 = vcombine.low %v1195_v14, %v1199_v7  ;;  %v1231_v14 = vld [vmem:[#allocation7 + $0x568] sm:$0xff] }
 0x205   :  { %v1024_v20 = vadd.f32 %v981_v21, %v936_v32  ;;  %v1026_v40 = vadd.f32 %v989_v11, %v938_v33  ;;  %v770_v41 = vpop.f32.mrb[11].mxu0  ;;  %v811_v42 = vpop.f32.mrb[11].mxu1  ;;  %v1206_v19 = vld [vmem:[#allocation7 + $0x4a0] sm:$0xff]  ;;  %v1203_v21 = vld [vmem:[#allocation7 + $0x488] sm:$0xff]  ;;  %v1001_v32 = vrot.slane %v6839_v13, %v6805_v28  ;;  %v1035_v13 = vmax.f32 %v6825_v54, 0.0 }
 0x206   :  { %v1025_v43 = vadd.f32 %v985_v23, %v937_v36  ;;  %v1027_v44 = vadd.f32 %v993_v27, %v939_v37  ;;  %v1207_v11 = vld [vmem:[#allocation7 + $0x4a8] sm:$0xff]  ;;  %v909_v23 = vrot.slane %v6833_v6, %v6800_v25  ;;  %v913_v27 = vrot.slane %v6833_v6, %v6805_v28  ;;  %v1218_v39 = vld [vmem:[#allocation7 + $0x500] sm:$0xff] }
 0x207   :  { %v1038_v47 = vmax.f32 %v1024_v20, 0.0  ;;  %v1040_v48 = vmax.f32 %v1026_v40, 0.0  ;;  %v5421_v30 = vcombine.high %v1202_v9, %v1206_v19  ;;  %v5423_v31 = vcombine.high %v1203_v21, %v1207_v11  ;;  %v1222_v41 = vld [vmem:[#allocation7 + $0x520] sm:$0xff]  ;;  %v1219_v42 = vld [vmem:[#allocation7 + $0x508] sm:$0xff] }
 0x208   :  { %v1039_v53 = vmax.f32 %v1025_v43, 0.0  ;;  %v1041_v55 = vmax.f32 %v1027_v44, 0.0  ;;  %v5420_v6 = vcombine.low %v1202_v9, %v1206_v19  ;;  %v5422_v35 = vcombine.low %v1203_v21, %v1207_v11  ;;  %v1223_v43 = vld [vmem:[#allocation7 + $0x528] sm:$0xff]  ;;  %v1238_v19 = vld [vmem:[#allocation7 + $0x5a0] sm:$0xff] }
 0x209   :  { %v1045_v58 = vmax.f32 %v1031_v45, %v1038_v47  ;;  %v1047_v59 = vmax.f32 %v1033_v46, %v1040_v48  ;;  %v5429_v37 = vcombine.high %v1210_v61, %v1214_v63  ;;  %v5428_v47 = vcombine.low %v1210_v61, %v1214_v63  ;;  %v1235_v21 = vld [vmem:[#allocation7 + $0x588] sm:$0xff] }
 0x20a   :  { %v6858_v5 = vmax.f32 %v1032_v49, %v1039_v53  ;;  %v6860_v10 = vmax.f32 %v1034_v52, %v1041_v55  ;;  %v1036_v49 = vmax.f32 %v6823_v51, 0.0  ;;  %v5437_v53 = vcombine.high %v1218_v39, %v1222_v41  ;;  %v1239_v11 = vld [vmem:[#allocation7 + $0x5a8] sm:$0xff] }
 0x20b   :  { %v6862_v16 = vpack.c.bf16 %v1045_v58, %v1045_v58  ;;  %v6868_v15 = vpack.c.bf16 %v1047_v59, %v1047_v59  ;;  %v5439_v55 = vcombine.high %v1219_v42, %v1223_v43  ;;  %v1226_v58 = vld [vmem:[#allocation7 + $0x540] sm:$0xff]  ;;  %v5436_v54 = vcombine.low %v1218_v39, %v1222_v41  ;;  %v1243_v61 = vld [vmem:[#allocation7 + $0x5c8] sm:$0xff] }
 0x20c   :  { %v5438_v9 = vcombine.low %v1219_v42, %v1223_v43  ;;  %v5445_v51 = vcombine.high %v1226_v58, %v1230_v1  ;;  %v1258_v39 = vld [vmem:[#allocation7 + $0x640] sm:$0xff]  ;;  %v1263_v41 = vld [vmem:[#allocation7 + $0x668] sm:$0xff] }
 0x20d   :  { %3778 = vmatprep.mubr.bf16.mxu1 %v6862_v16  ;;  %3942 = vmatprep.mubr.bf16.mxu0 %v6862_v16 }
 0x20e   :  { %3779 = vmatmul.mubr.bf16.vlgmr.msra.gmra.mrb[12].mxu1 %v6864_v18  ;;  %3943 = vmatmul.mubr.bf16.vlgmr.msra.gmra.mrb[16].mxu0 %v6864_v18 }
 0x20f   :  { %3788 = vmatpush1.bf16.msra.mxu1 %v5404_v3  ;;  %3952 = vmatpush1.bf16.msra.mxu0 %v5406_v4  ;;  %v1215_v3 = vld [vmem:[#allocation7 + $0x4e8] sm:$0xff] }
 0x210   :  { %3819 = vmatprep.mubr.bf16.mxu1 %v6868_v15  ;;  %3983 = vmatprep.mubr.bf16.mxu0 %v6868_v15  ;;  %v5431_v38 = vcombine.high %v1211_v2, %v1215_v3  ;;  %v5430_v48 = vcombine.low %v1211_v2, %v1215_v3  ;;  %v5454_v2 = vcombine.low %v1235_v21, %v1239_v11 }
 0x211   :  { %3789 = vmatprep.subr.bf16.mxu1 %v5413_v22  ;;  %3953 = vmatprep.subr.bf16.mxu0 %v5415_v50  ;;  %v5447_v22 = vcombine.high %v1227_v12, %v1231_v14  ;;  %v1234_v50 = vld [vmem:[#allocation7 + $0x580] sm:$0xff] }
 0x212   :  { %v847_v4 = vpop.f32.mrb[12].mxu0  ;;  %v5452_v63 = vcombine.low %v1234_v50, %v1238_v19 }
 0x213   :  { %v940_v33 = vmul.f32 %v909_v23, %v847_v4  ;;  %3790 = vmatpush1.bf16.msra.mxu1 %v5412_v60  ;;  %3954 = vmatpush1.bf16.msra.mxu0 %v5414_v17  ;;  %v849_v34 = vpop.f32.mrb[13].mxu0  ;;  %v5444_v60 = vcombine.low %v1226_v58, %v1230_v1  ;;  %v5446_v17 = vcombine.low %v1227_v12, %v1231_v14  ;;  %v1274_v58 = vld [vmem:[#allocation7 + $0x6c0] sm:$0xff]  ;;  %v1275_v12 = vld [vmem:[#allocation7 + $0x6c8] sm:$0xff] }
 0x214   :  { %v941_v36 = vmul.f32 %v913_v27, %v849_v34  ;;  %3791 = vmatprep.subr.bf16.mxu1 %v5421_v30  ;;  %3955 = vmatprep.subr.bf16.mxu0 %v5423_v31  ;;  %v851_v20 = vpop.f32.mrb[14].mxu0  ;;  %v5453_v23 = vcombine.high %v1234_v50, %v1238_v19  ;;  %v5455_v27 = vcombine.high %v1235_v21, %v1239_v11  ;;  %v1242_v30 = vld [vmem:[#allocation7 + $0x5c0] sm:$0xff]  ;;  %v1251_v34 = vld [vmem:[#allocation7 + $0x608] sm:$0xff] }
 0x215   :  { %v1028_v40 = vadd.f32 %v997_v62, %v940_v33  ;;  %v852_v44 = vpop.f32.mrb[15].mxu0  ;;  %v1246_v31 = vld [vmem:[#allocation7 + $0x5e0] sm:$0xff]  ;;  %v1247_v62 = vld [vmem:[#allocation7 + $0x5e8] sm:$0xff] }
 0x216   :  { %v1029_v45 = vadd.f32 %v1001_v32, %v941_v36  ;;  %v5461_v3 = vcombine.high %v1242_v30, %v1246_v31  ;;  %v5463_v4 = vcombine.high %v1243_v61, %v1247_v62  ;;  %v1250_v32 = vld [vmem:[#allocation7 + $0x600] sm:$0xff]  ;;  %v5462_v36 = vcombine.low %v1243_v61, %v1247_v62  ;;  %v1279_v14 = vld [vmem:[#allocation7 + $0x6e8] sm:$0xff] }
 0x217   :  { %v1042_v46 = vmax.f32 %v1028_v40, 0.0  ;;  %3792 = vmatpush1.bf16.msra.mxu1 %v5420_v6  ;;  %3956 = vmatpush1.bf16.msra.mxu0 %v5422_v35  ;;  %v1254_v33 = vld [vmem:[#allocation7 + $0x620] sm:$0xff]  ;;  %v1255_v6 = vld [vmem:[#allocation7 + $0x628] sm:$0xff]  ;;  %v5460_v35 = vcombine.low %v1242_v30, %v1246_v31 }
 0x218   :  { %v1043_v52 = vmax.f32 %v1029_v45, 0.0  ;;  %3793 = vmatprep.subr.bf16.mxu1 %v5429_v37  ;;  %3957 = vmatprep.subr.bf16.mxu0 %v5431_v38  ;;  %v5469_v37 = vcombine.high %v1250_v32, %v1254_v33  ;;  %v5471_v38 = vcombine.high %v1251_v34, %v1255_v6  ;;  %v1262_v20 = vld [vmem:[#allocation7 + $0x660] sm:$0xff]  ;;  %v1259_v40 = vld [vmem:[#allocation7 + $0x648] sm:$0xff]  ;;  %v5468_v42 = vcombine.low %v1250_v32, %v1254_v33 }
 0x219   :  { %v6890_v59 = vmax.f32 %v1035_v13, %v1042_v46  ;;  %v5470_v43 = vcombine.low %v1251_v34, %v1255_v6  ;;  %v5477_v44 = vcombine.high %v1258_v39, %v1262_v20  ;;  %v5479_v45 = vcombine.high %v1259_v40, %v1263_v41  ;;  %v1266_v13 = vld [vmem:[#allocation7 + $0x680] sm:$0xff]  ;;  %v1283_v21 = vld [vmem:[#allocation7 + $0x708] sm:$0xff] }
 0x21a   :  { %v6892_v7 = vmax.f32 %v1036_v49, %v1043_v52  ;;  %v1270_v46 = vld [vmem:[#allocation7 + $0x6a0] sm:$0xff]  ;;  %v5476_v49 = vcombine.low %v1258_v39, %v1262_v20  ;;  %v5478_v52 = vcombine.low %v1259_v40, %v1263_v41  ;;  %v1287_v11 = vld [vmem:[#allocation7 + $0x728] sm:$0xff] }
 0x21b   :  { %3794 = vmatpush1.bf16.msra.mxu1 %v5428_v47  ;;  %3958 = vmatpush1.bf16.msra.mxu0 %v5430_v48  ;;  %v1267_v47 = vld [vmem:[#allocation7 + $0x688] sm:$0xff]  ;;  %v1278_v1 = vld [vmem:[#allocation7 + $0x6e0] sm:$0xff] }
 0x21c   :  { %3795 = vmatprep.subr.bf16.mxu1 %v5437_v53  ;;  %3959 = vmatprep.subr.bf16.mxu0 %v5439_v55  ;;  %v1271_v48 = vld [vmem:[#allocation7 + $0x6a8] sm:$0xff]  ;;  %v5485_v53 = vcombine.high %v1266_v13, %v1270_v46  ;;  %v1282_v50 = vld [vmem:[#allocation7 + $0x700] sm:$0xff] }
 0x21d   :  { %v5487_v55 = vcombine.high %v1267_v47, %v1271_v48  ;;  %v1286_v19 = vld [vmem:[#allocation7 + $0x720] sm:$0xff]  ;;  %v1291_v61 = vld [vmem:[#allocation7 + $0x748] sm:$0xff] }
 0x21e   :  { %v1290_v30 = vld [vmem:[#allocation7 + $0x740] sm:$0xff]  ;;  %v1295_v62 = vld [vmem:[#allocation7 + $0x768] sm:$0xff] }
 0x21f   :  { %3796 = vmatpush1.bf16.msra.mxu1 %v5436_v54  ;;  %3960 = vmatpush1.bf16.msra.mxu0 %v5438_v9  ;;  %v5484_v54 = vcombine.low %v1266_v13, %v1270_v46  ;;  %v5486_v9 = vcombine.low %v1267_v47, %v1271_v48  ;;  %v1294_v31 = vld [vmem:[#allocation7 + $0x760] sm:$0xff]  ;;  %v1299_v34 = vld [vmem:[#allocation7 + $0x788] sm:$0xff] }
 0x220   :  { %3797 = vmatprep.subr.bf16.mxu1 %v5445_v51  ;;  %3961 = vmatprep.subr.bf16.mxu0 %v5447_v22  ;;  %v5493_v51 = vcombine.high %v1274_v58, %v1278_v1  ;;  %v5495_v22 = vcombine.high %v1275_v12, %v1279_v14  ;;  %v1298_v32 = vld [vmem:[#allocation7 + $0x780] sm:$0xff]  ;;  %v1303_v6 = vld [vmem:[#allocation7 + $0x7a8] sm:$0xff] }
 0x221   :  { %v1302_v33 = vld [vmem:[#allocation7 + $0x7a0] sm:$0xff]  ;;  %v1307_v40 = vld [vmem:[#allocation7 + $0x7c8] sm:$0xff] }
 0x222   :  { %v1306_v39 = vld [vmem:[#allocation7 + $0x7c0] sm:$0xff]  ;;  %v1311_v41 = vld [vmem:[#allocation7 + $0x7e8] sm:$0xff] }
 0x223   :  { %3798 = vmatpush1.bf16.msra.mxu1 %v5444_v60  ;;  %3962 = vmatpush1.bf16.msra.mxu0 %v5446_v17  ;;  %v5492_v60 = vcombine.low %v1274_v58, %v1278_v1  ;;  %v5494_v17 = vcombine.low %v1275_v12, %v1279_v14  ;;  %v1310_v20 = vld [vmem:[#allocation7 + $0x7e0] sm:$0xff]  ;;  %v1315_v47 = vld [vmem:[#allocation7 + $0x808] sm:$0xff] }
 0x224   :  { %3799 = vmatprep.subr.bf16.mxu1 %v5453_v23  ;;  %3963 = vmatprep.subr.bf16.mxu0 %v5455_v27  ;;  %v5501_v23 = vcombine.high %v1282_v50, %v1286_v19  ;;  %v5503_v27 = vcombine.high %v1283_v21, %v1287_v11  ;;  %v1314_v13 = vld [vmem:[#allocation7 + $0x800] sm:$0xff]  ;;  %v1319_v48 = vld [vmem:[#allocation7 + $0x828] sm:$0xff] }
 0x225   :  { %v1318_v46 = vld [vmem:[#allocation7 + $0x820] sm:$0xff]  ;;  %v1323_v12 = vld [vmem:[#allocation7 + $0x848] sm:$0xff] }
 0x226   :  { %v1322_v58 = vld [vmem:[#allocation7 + $0x840] sm:$0xff]  ;;  %v1327_v14 = vld [vmem:[#allocation7 + $0x868] sm:$0xff] }
 0x227   :  { %3800 = vmatpush1.bf16.msra.mxu1 %v5452_v63  ;;  %3964 = vmatpush1.bf16.msra.mxu0 %v5454_v2  ;;  %v5500_v63 = vcombine.low %v1282_v50, %v1286_v19  ;;  %v5502_v2 = vcombine.low %v1283_v21, %v1287_v11  ;;  %v1326_v1 = vld [vmem:[#allocation7 + $0x860] sm:$0xff]  ;;  %v5543_v19 = vcombine.high %v1323_v12, %v1327_v14 }
 0x228   :  { %3801 = vmatprep.subr.bf16.mxu1 %v5461_v3  ;;  %3965 = vmatprep.subr.bf16.mxu0 %v5463_v4  ;;  %v5509_v3 = vcombine.high %v1290_v30, %v1294_v31  ;;  %v5511_v4 = vcombine.high %v1291_v61, %v1295_v62  ;;  %v5541_v50 = vcombine.high %v1322_v58, %v1326_v1  ;;  %v1330_v21 = vld [vmem:[#allocation7 + $0x880] sm:$0xff] }
 0x229   :  { %v1334_v11 = vld [vmem:[#allocation7 + $0x8a0] sm:$0xff] }
 0x22b   :  { %3802 = vmatpush1.bf16.msra.mxu1 %v5460_v35  ;;  %3966 = vmatpush1.bf16.msra.mxu0 %v5462_v36  ;;  %v5508_v35 = vcombine.low %v1290_v30, %v1294_v31  ;;  %v5510_v36 = vcombine.low %v1291_v61, %v1295_v62  ;;  %v1338_v30 = vld [vmem:[#allocation7 + $0x8c0] sm:$0xff]  ;;  %v1339_v61 = vld [vmem:[#allocation7 + $0x8c8] sm:$0xff] }
 0x22c   :  { %3803 = vmatprep.subr.bf16.mxu1 %v5469_v37  ;;  %3967 = vmatprep.subr.bf16.mxu0 %v5471_v38  ;;  %v5517_v37 = vcombine.high %v1298_v32, %v1302_v33  ;;  %v5519_v38 = vcombine.high %v1299_v34, %v1303_v6  ;;  %v1342_v31 = vld [vmem:[#allocation7 + $0x8e0] sm:$0xff]  ;;  %v1343_v62 = vld [vmem:[#allocation7 + $0x8e8] sm:$0xff] }
 0x22f   :  { %3804 = vmatpush1.bf16.msra.mxu1 %v5468_v42  ;;  %3968 = vmatpush1.bf16.msra.mxu0 %v5470_v43  ;;  %v5516_v42 = vcombine.low %v1298_v32, %v1302_v33  ;;  %v5518_v43 = vcombine.low %v1299_v34, %v1303_v6  ;;  %v1346_v32 = vld [vmem:[#allocation7 + $0x900] sm:$0xff]  ;;  %v1347_v34 = vld [vmem:[#allocation7 + $0x908] sm:$0xff] }
 0x230   :  { %3805 = vmatprep.subr.bf16.mxu1 %v5477_v44  ;;  %3969 = vmatprep.subr.bf16.mxu0 %v5479_v45  ;;  %v5525_v44 = vcombine.high %v1306_v39, %v1310_v20  ;;  %v5527_v45 = vcombine.high %v1307_v40, %v1311_v41  ;;  %v1350_v33 = vld [vmem:[#allocation7 + $0x920] sm:$0xff]  ;;  %v1351_v6 = vld [vmem:[#allocation7 + $0x928] sm:$0xff] }
 0x233   :  { %3806 = vmatpush1.bf16.msra.mxu1 %v5476_v49  ;;  %3970 = vmatpush1.bf16.msra.mxu0 %v5478_v52  ;;  %v5524_v49 = vcombine.low %v1306_v39, %v1310_v20  ;;  %v5526_v52 = vcombine.low %v1307_v40, %v1311_v41  ;;  %v1354_v39 = vld [vmem:[#allocation7 + $0x940] sm:$0xff]  ;;  %v1355_v40 = vld [vmem:[#allocation7 + $0x948] sm:$0xff] }
 0x234   :  { %3807 = vmatprep.subr.bf16.mxu1 %v5485_v53  ;;  %3971 = vmatprep.subr.bf16.mxu0 %v5487_v55  ;;  %v5533_v53 = vcombine.high %v1314_v13, %v1318_v46  ;;  %v5535_v55 = vcombine.high %v1315_v47, %v1319_v48  ;;  %v1358_v20 = vld [vmem:[#allocation7 + $0x960] sm:$0xff]  ;;  %v1359_v41 = vld [vmem:[#allocation7 + $0x968] sm:$0xff] }
 0x237   :  { %3808 = vmatpush1.bf16.msra.mxu1 %v5484_v54  ;;  %3972 = vmatpush1.bf16.msra.mxu0 %v5486_v9  ;;  %v5532_v54 = vcombine.low %v1314_v13, %v1318_v46  ;;  %v6896_v9 = vpack.c.bf16 %v6858_v5, %v6858_v5  ;;  %v5540_v5 = vcombine.low %v1322_v58, %v1326_v1  ;;  %v1362_v13 = vld [vmem:[#allocation7 + $0x980] sm:$0xff] }
 0x238   :  { %3809 = vmatprep.subr.bf16.mxu1 %v5493_v51  ;;  %3973 = vmatprep.subr.bf16.mxu0 %v5495_v22  ;;  %v5534_v51 = vcombine.low %v1315_v47, %v1319_v48  ;;  %v6900_v22 = vpack.c.bf16 %v6890_v59, %v6890_v59  ;;  %v5549_v59 = vcombine.high %v1330_v21, %v1334_v11  ;;  %v1366_v46 = vld [vmem:[#allocation7 + $0x9a0] sm:$0xff]  ;;  %v1363_v47 = vld [vmem:[#allocation7 + $0x988] sm:$0xff] }
 0x239   :  { %v1367_v48 = vld [vmem:[#allocation7 + $0x9a8] sm:$0xff]  ;;  %v1370_v58 = vld [vmem:[#allocation7 + $0x9c0] sm:$0xff] }
 0x23a   :  { %v1374_v1 = vld [vmem:[#allocation7 + $0x9e0] sm:$0xff] }
 0x23b   :  { %3810 = vmatpush1.bf16.msra.mxu1 %v5492_v60  ;;  %3974 = vmatpush1.bf16.msra.mxu0 %v5494_v17  ;;  %v1331_v60 = vld [vmem:[#allocation7 + $0x888] sm:$0xff] }
 0x23c   :  { %3811 = vmatprep.subr.bf16.mxu1 %v5501_v23  ;;  %3975 = vmatprep.subr.bf16.mxu0 %v5503_v27  ;;  %v1335_v17 = vld [vmem:[#allocation7 + $0x8a8] sm:$0xff]  ;;  %v5542_v23 = vcombine.low %v1323_v12, %v1327_v14 }
 0x23d   :  { %v5551_v27 = vcombine.high %v1331_v60, %v1335_v17  ;;  %v1371_v12 = vld [vmem:[#allocation7 + $0x9c8] sm:$0xff] }
 0x23e   :  { %v1375_v14 = vld [vmem:[#allocation7 + $0x9e8] sm:$0xff] }
 0x23f   :  { %3812 = vmatpush1.bf16.msra.mxu1 %v5500_v63  ;;  %3976 = vmatpush1.bf16.msra.mxu0 %v5502_v2  ;;  %v5548_v63 = vcombine.low %v1330_v21, %v1334_v11  ;;  %v5550_v2 = vcombine.low %v1331_v60, %v1335_v17  ;;  %v1378_v21 = vld [vmem:[#allocation7 + $0xa00] sm:$0xff]  ;;  %v1379_v60 = vld [vmem:[#allocation7 + $0xa08] sm:$0xff] }
 0x240   :  { %3813 = vmatprep.subr.bf16.mxu1 %v5509_v3  ;;  %3977 = vmatprep.subr.bf16.mxu0 %v5511_v4  ;;  %v5557_v3 = vcombine.high %v1338_v30, %v1342_v31  ;;  %v5559_v4 = vcombine.high %v1339_v61, %v1343_v62  ;;  %v1382_v11 = vld [vmem:[#allocation7 + $0xa20] sm:$0xff]  ;;  %v1383_v17 = vld [vmem:[#allocation7 + $0xa28] sm:$0xff] }
 0x243   :  { %3814 = vmatpush1.bf16.msra.mxu1 %v5508_v35  ;;  %3978 = vmatpush1.bf16.msra.mxu0 %v5510_v36  ;;  %v5556_v35 = vcombine.low %v1338_v30, %v1342_v31  ;;  %v5558_v36 = vcombine.low %v1339_v61, %v1343_v62  ;;  %v1386_v30 = vld [vmem:[#allocation7 + $0xa40] sm:$0xff]  ;;  %v1387_v61 = vld [vmem:[#allocation7 + $0xa48] sm:$0xff] }
 0x244   :  { %3815 = vmatprep.subr.bf16.mxu1 %v5517_v37  ;;  %3979 = vmatprep.subr.bf16.mxu0 %v5519_v38  ;;  %v5565_v37 = vcombine.high %v1346_v32, %v1350_v33  ;;  %v5567_v38 = vcombine.high %v1347_v34, %v1351_v6  ;;  %v1390_v31 = vld [vmem:[#allocation7 + $0xa60] sm:$0xff]  ;;  %v1391_v62 = vld [vmem:[#allocation7 + $0xa68] sm:$0xff] }
 0x247   :  { %3816 = vmatpush1.bf16.msra.mxu1 %v5516_v42  ;;  %3980 = vmatpush1.bf16.msra.mxu0 %v5518_v43  ;;  %v5564_v42 = vcombine.low %v1346_v32, %v1350_v33  ;;  %v5566_v43 = vcombine.low %v1347_v34, %v1351_v6  ;;  %v1394_v32 = vld [vmem:[#allocation7 + $0xa80] sm:$0xff]  ;;  %v1395_v34 = vld [vmem:[#allocation7 + $0xa88] sm:$0xff] }
 0x248   :  { %3817 = vmatprep.subr.bf16.mxu1 %v5525_v44  ;;  %3981 = vmatprep.subr.bf16.mxu0 %v5527_v45  ;;  %v5573_v44 = vcombine.high %v1354_v39, %v1358_v20  ;;  %v5575_v45 = vcombine.high %v1355_v40, %v1359_v41  ;;  %v1398_v33 = vld [vmem:[#allocation7 + $0xaa0] sm:$0xff]  ;;  %v1399_v6 = vld [vmem:[#allocation7 + $0xaa8] sm:$0xff] }
 0x24b   :  { %3818 = vmatpush1.bf16.msra.mxu1 %v5524_v49  ;;  %3982 = vmatpush1.bf16.msra.mxu0 %v5526_v52  ;;  %v5572_v49 = vcombine.low %v1354_v39, %v1358_v20  ;;  %v5574_v52 = vcombine.low %v1355_v40, %v1359_v41  ;;  %v1402_v39 = vld [vmem:[#allocation7 + $0xac0] sm:$0xff]  ;;  %v1403_v40 = vld [vmem:[#allocation7 + $0xac8] sm:$0xff] }
 0x24c   :  { %3828 = vmatprep.subr.bf16.mxu1 %v5533_v53  ;;  %3992 = vmatprep.subr.bf16.mxu0 %v5535_v55  ;;  %v5581_v53 = vcombine.high %v1362_v13, %v1366_v46  ;;  %v5583_v55 = vcombine.high %v1363_v47, %v1367_v48  ;;  %v1406_v20 = vld [vmem:[#allocation7 + $0xae0] sm:$0xff]  ;;  %v1407_v41 = vld [vmem:[#allocation7 + $0xae8] sm:$0xff] }
 0x24e   :  { %3820 = vmatmul.mubr.bf16.vlgmr.msra.gmra.mrb[12].mxu1 %v6896_v9  ;;  %3984 = vmatmul.mubr.bf16.vlgmr.msra.gmra.mrb[16].mxu0 %v6896_v9 }
 0x24f   :  { %3829 = vmatpush1.bf16.msra.mxu1 %v5532_v54  ;;  %3860 = vmatprep.mubr.bf16.mxu1 %v6900_v22  ;;  %v5580_v54 = vcombine.low %v1362_v13, %v1366_v46  ;;  %v1410_v13 = vld [vmem:[#allocation7 + $0xb00] sm:$0xff] }
 0x250   :  { %3993 = vmatpush1.bf16.msra.mxu0 %v5534_v51  ;;  %4024 = vmatprep.mubr.bf16.mxu0 %v6900_v22  ;;  %v5582_v51 = vcombine.low %v1363_v47, %v1367_v48  ;;  %v1414_v46 = vld [vmem:[#allocation7 + $0xb20] sm:$0xff]  ;;  %v1411_v47 = vld [vmem:[#allocation7 + $0xb08] sm:$0xff] }
 0x251   :  { %3830 = vmatprep.subr.bf16.mxu1 %v5541_v50  ;;  %3994 = vmatprep.subr.bf16.mxu0 %v5543_v19  ;;  %v5589_v50 = vcombine.high %v1370_v58, %v1374_v1  ;;  %v5591_v19 = vcombine.high %v1371_v12, %v1375_v14  ;;  %v1415_v48 = vld [vmem:[#allocation7 + $0xb28] sm:$0xff] }
 0x253   :  { %3831 = vmatpush1.bf16.msra.mxu1 %v5540_v5  ;;  %v5588_v5 = vcombine.low %v1370_v58, %v1374_v1  ;;  %v1418_v58 = vld [vmem:[#allocation7 + $0xb40] sm:$0xff] }
 0x254   :  { %3995 = vmatpush1.bf16.msra.mxu0 %v5542_v23  ;;  %3832 = vmatprep.subr.bf16.mxu1 %v5549_v59  ;;  %v5590_v23 = vcombine.low %v1371_v12, %v1375_v14  ;;  %v5597_v59 = vcombine.high %v1378_v21, %v1382_v11  ;;  %v1422_v1 = vld [vmem:[#allocation7 + $0xb60] sm:$0xff]  ;;  %v1419_v12 = vld [vmem:[#allocation7 + $0xb48] sm:$0xff] }
 0x255   :  { %3996 = vmatprep.subr.bf16.mxu0 %v5551_v27  ;;  %v5599_v27 = vcombine.high %v1379_v60, %v1383_v17  ;;  %v1423_v14 = vld [vmem:[#allocation7 + $0xb68] sm:$0xff] }
 0x257   :  { %3833 = vmatpush1.bf16.msra.mxu1 %v5548_v63  ;;  %v5596_v63 = vcombine.low %v1378_v21, %v1382_v11  ;;  %v1426_v21 = vld [vmem:[#allocation7 + $0xb80] sm:$0xff] }
 0x258   :  { %3997 = vmatpush1.bf16.msra.mxu0 %v5550_v2  ;;  %3834 = vmatprep.subr.bf16.mxu1 %v5557_v3  ;;  %v5598_v2 = vcombine.low %v1379_v60, %v1383_v17  ;;  %v5605_v3 = vcombine.high %v1386_v30, %v1390_v31  ;;  %v1430_v11 = vld [vmem:[#allocation7 + $0xba0] sm:$0xff]  ;;  %v1427_v60 = vld [vmem:[#allocation7 + $0xb88] sm:$0xff] }
 0x259   :  { %3998 = vmatprep.subr.bf16.mxu0 %v5559_v4  ;;  %v5607_v4 = vcombine.high %v1387_v61, %v1391_v62  ;;  %v1431_v17 = vld [vmem:[#allocation7 + $0xba8] sm:$0xff] }
 0x25b   :  { %3835 = vmatpush1.bf16.msra.mxu1 %v5556_v35  ;;  %v5604_v35 = vcombine.low %v1386_v30, %v1390_v31  ;;  %v1434_v30 = vld [vmem:[#allocation7 + $0xbc0] sm:$0xff] }
 0x25c   :  { %3999 = vmatpush1.bf16.msra.mxu0 %v5558_v36  ;;  %3836 = vmatprep.subr.bf16.mxu1 %v5565_v37  ;;  %v5606_v36 = vcombine.low %v1387_v61, %v1391_v62  ;;  %v5613_v37 = vcombine.high %v1394_v32, %v1398_v33  ;;  %v1438_v31 = vld [vmem:[#allocation7 + $0xbe0] sm:$0xff]  ;;  %v1435_v61 = vld [vmem:[#allocation7 + $0xbc8] sm:$0xff] }
 0x25d   :  { %4000 = vmatprep.subr.bf16.mxu0 %v5567_v38  ;;  %v5615_v38 = vcombine.high %v1395_v34, %v1399_v6  ;;  %v1439_v62 = vld [vmem:[#allocation7 + $0xbe8] sm:$0xff] }
 0x25f   :  { %3837 = vmatpush1.bf16.msra.mxu1 %v5564_v42  ;;  %v5612_v42 = vcombine.low %v1394_v32, %v1398_v33  ;;  %v1442_v32 = vld [vmem:[#allocation7 + $0xc00] sm:$0xff] }
 0x260   :  { %4001 = vmatpush1.bf16.msra.mxu0 %v5566_v43  ;;  %3838 = vmatprep.subr.bf16.mxu1 %v5573_v44  ;;  %v5614_v43 = vcombine.low %v1395_v34, %v1399_v6  ;;  %v5621_v44 = vcombine.high %v1402_v39, %v1406_v20  ;;  %v1446_v33 = vld [vmem:[#allocation7 + $0xc20] sm:$0xff]  ;;  %v1443_v34 = vld [vmem:[#allocation7 + $0xc08] sm:$0xff] }
 0x261   :  { %4002 = vmatprep.subr.bf16.mxu0 %v5575_v45  ;;  %v5623_v45 = vcombine.high %v1403_v40, %v1407_v41  ;;  %v1447_v6 = vld [vmem:[#allocation7 + $0xc28] sm:$0xff] }
 0x263   :  { %3839 = vmatpush1.bf16.msra.mxu1 %v5572_v49  ;;  %v5620_v49 = vcombine.low %v1402_v39, %v1406_v20  ;;  %v1450_v39 = vld [vmem:[#allocation7 + $0xc40] sm:$0xff] }
 0x264   :  { %4003 = vmatpush1.bf16.msra.mxu0 %v5574_v52  ;;  %3840 = vmatprep.subr.bf16.mxu1 %v5581_v53  ;;  %v5622_v52 = vcombine.low %v1403_v40, %v1407_v41  ;;  %v5629_v53 = vcombine.high %v1410_v13, %v1414_v46  ;;  %v1454_v20 = vld [vmem:[#allocation7 + $0xc60] sm:$0xff]  ;;  %v1451_v40 = vld [vmem:[#allocation7 + $0xc48] sm:$0xff] }
 0x265   :  { %4004 = vmatprep.subr.bf16.mxu0 %v5583_v55  ;;  %v5631_v55 = vcombine.high %v1411_v47, %v1415_v48  ;;  %v1455_v41 = vld [vmem:[#allocation7 + $0xc68] sm:$0xff] }
 0x267   :  { %3841 = vmatpush1.bf16.msra.mxu1 %v5580_v54  ;;  %v5628_v54 = vcombine.low %v1410_v13, %v1414_v46  ;;  %v5671_v13 = vcombine.high %v1451_v40, %v1455_v41  ;;  %v1458_v46 = vld [vmem:[#allocation7 + $0xc80] sm:$0xff] }
 0x268   :  { %4005 = vmatpush1.bf16.msra.mxu0 %v5582_v51  ;;  %3842 = vmatprep.subr.bf16.mxu1 %v5589_v50  ;;  %v5630_v51 = vcombine.low %v1411_v47, %v1415_v48  ;;  %v5637_v50 = vcombine.high %v1418_v58, %v1422_v1  ;;  %v1462_v47 = vld [vmem:[#allocation7 + $0xca0] sm:$0xff]  ;;  %v1459_v48 = vld [vmem:[#allocation7 + $0xc88] sm:$0xff] }
 0x269   :  { %4006 = vmatprep.subr.bf16.mxu0 %v5591_v19  ;;  %v5639_v19 = vcombine.high %v1419_v12, %v1423_v14 }
 0x26b   :  { %3843 = vmatpush1.bf16.msra.mxu1 %v5588_v5  ;;  %v5636_v5 = vcombine.low %v1418_v58, %v1422_v1  ;;  %v1466_v58 = vld [vmem:[#allocation7 + $0xcc0] sm:$0xff] }
 0x26c   :  { %4007 = vmatpush1.bf16.msra.mxu0 %v5590_v23  ;;  %3844 = vmatprep.subr.bf16.mxu1 %v5597_v59  ;;  %v5638_v23 = vcombine.low %v1419_v12, %v1423_v14  ;;  %v5645_v59 = vcombine.high %v1426_v21, %v1430_v11  ;;  %v1470_v1 = vld [vmem:[#allocation7 + $0xce0] sm:$0xff]  ;;  %v1467_v12 = vld [vmem:[#allocation7 + $0xcc8] sm:$0xff] }
 0x26d   :  { %4008 = vmatprep.subr.bf16.mxu0 %v5599_v27  ;;  %v5647_v27 = vcombine.high %v1427_v60, %v1431_v17  ;;  %v1471_v14 = vld [vmem:[#allocation7 + $0xce8] sm:$0xff] }
 0x26f   :  { %3845 = vmatpush1.bf16.msra.mxu1 %v5596_v63  ;;  %v5644_v63 = vcombine.low %v1426_v21, %v1430_v11  ;;  %v1474_v21 = vld [vmem:[#allocation7 + $0xd00] sm:$0xff] }
 0x270   :  { %4009 = vmatpush1.bf16.msra.mxu0 %v5598_v2  ;;  %3846 = vmatprep.subr.bf16.mxu1 %v5605_v3  ;;  %v5646_v2 = vcombine.low %v1427_v60, %v1431_v17  ;;  %v5653_v3 = vcombine.high %v1434_v30, %v1438_v31  ;;  %v1478_v11 = vld [vmem:[#allocation7 + $0xd20] sm:$0xff]  ;;  %v1475_v60 = vld [vmem:[#allocation7 + $0xd08] sm:$0xff] }
 0x271   :  { %4010 = vmatprep.subr.bf16.mxu0 %v5607_v4  ;;  %v5655_v4 = vcombine.high %v1435_v61, %v1439_v62  ;;  %v1479_v17 = vld [vmem:[#allocation7 + $0xd28] sm:$0xff] }
 0x273   :  { %3847 = vmatpush1.bf16.msra.mxu1 %v5604_v35  ;;  %v5652_v35 = vcombine.low %v1434_v30, %v1438_v31  ;;  %v1482_v30 = vld [vmem:[#allocation7 + $0xd40] sm:$0xff] }
 0x274   :  { %4011 = vmatpush1.bf16.msra.mxu0 %v5606_v36  ;;  %3848 = vmatprep.subr.bf16.mxu1 %v5613_v37  ;;  %v5654_v36 = vcombine.low %v1435_v61, %v1439_v62  ;;  %v5661_v37 = vcombine.high %v1442_v32, %v1446_v33  ;;  %v1486_v31 = vld [vmem:[#allocation7 + $0xd60] sm:$0xff]  ;;  %v1483_v61 = vld [vmem:[#allocation7 + $0xd48] sm:$0xff] }
 0x275   :  { %4012 = vmatprep.subr.bf16.mxu0 %v5615_v38  ;;  %v5663_v38 = vcombine.high %v1443_v34, %v1447_v6  ;;  %v1487_v62 = vld [vmem:[#allocation7 + $0xd68] sm:$0xff] }
 0x277   :  { %3849 = vmatpush1.bf16.msra.mxu1 %v5612_v42  ;;  %v5660_v42 = vcombine.low %v1442_v32, %v1446_v33  ;;  %v1490_v32 = vld [vmem:[#allocation7 + $0xd80] sm:$0xff] }
 0x278   :  { %4013 = vmatpush1.bf16.msra.mxu0 %v5614_v43  ;;  %3850 = vmatprep.subr.bf16.mxu1 %v5621_v44  ;;  %v6908_v43 = vpack.c.bf16 %v6860_v10, %v6860_v10  ;;  %v5662_v44 = vcombine.low %v1443_v34, %v1447_v6  ;;  %v5670_v10 = vcombine.low %v1451_v40, %v1455_v41  ;;  %v1494_v33 = vld [vmem:[#allocation7 + $0xda0] sm:$0xff]  ;;  %v1491_v34 = vld [vmem:[#allocation7 + $0xd88] sm:$0xff] }
 0x279   :  { %4014 = vmatprep.subr.bf16.mxu0 %v5623_v45  ;;  %v5669_v45 = vcombine.high %v1450_v39, %v1454_v20  ;;  %v1495_v6 = vld [vmem:[#allocation7 + $0xda8] sm:$0xff] }
 0x27a   :  { %v1499_v40 = vld [vmem:[#allocation7 + $0xdc8] sm:$0xff] }
 0x27b   :  { %3851 = vmatpush1.bf16.msra.mxu1 %v5620_v49  ;;  %v1463_v49 = vld [vmem:[#allocation7 + $0xca8] sm:$0xff] }
 0x27c   :  { %4015 = vmatpush1.bf16.msra.mxu0 %v5622_v52  ;;  %3852 = vmatprep.subr.bf16.mxu1 %v5629_v53  ;;  %v5668_v52 = vcombine.low %v1450_v39, %v1454_v20  ;;  %v5677_v53 = vcombine.high %v1458_v46, %v1462_v47  ;;  %v1498_v39 = vld [vmem:[#allocation7 + $0xdc0] sm:$0xff]  ;;  %v1503_v41 = vld [vmem:[#allocation7 + $0xde8] sm:$0xff] }
 0x27d   :  { %4016 = vmatprep.subr.bf16.mxu0 %v5631_v55  ;;  %v5679_v55 = vcombine.high %v1459_v48, %v1463_v49  ;;  %v1502_v20 = vld [vmem:[#allocation7 + $0xde0] sm:$0xff] }
 0x27f   :  { %3853 = vmatpush1.bf16.msra.mxu1 %v5628_v54  ;;  %v5676_v54 = vcombine.low %v1458_v46, %v1462_v47  ;;  %v1060_v46 = vld [vmem:[#allocation7 + $0x10] sm:$0xff] }
 0x280   :  { %4017 = vmatpush1.bf16.msra.mxu0 %v5630_v51  ;;  %3854 = vmatprep.subr.bf16.mxu1 %v5637_v50  ;;  %v5678_v51 = vcombine.low %v1459_v48, %v1463_v49  ;;  %v5685_v50 = vcombine.high %v1466_v58, %v1470_v1  ;;  %v1064_v47 = vld [vmem:[#allocation7 + $0x30] sm:$0xff]  ;;  %v1061_v48 = vld [vmem:[#allocation7 + $0x18] sm:$0xff] }
 0x281   :  { %4018 = vmatprep.subr.bf16.mxu0 %v5639_v19  ;;  %v5687_v19 = vcombine.high %v1467_v12, %v1471_v14  ;;  %v1065_v49 = vld [vmem:[#allocation7 + $0x38] sm:$0xff] }
 0x283   :  { %3855 = vmatpush1.bf16.msra.mxu1 %v5636_v5  ;;  %v5684_v5 = vcombine.low %v1466_v58, %v1470_v1  ;;  %v1068_v58 = vld [vmem:[#allocation7 + $0x50] sm:$0xff] }
 0x284   :  { %4019 = vmatpush1.bf16.msra.mxu0 %v5638_v23  ;;  %3856 = vmatprep.subr.bf16.mxu1 %v5645_v59  ;;  %v5686_v23 = vcombine.low %v1467_v12, %v1471_v14  ;;  %v5693_v59 = vcombine.high %v1474_v21, %v1478_v11  ;;  %v1072_v1 = vld [vmem:[#allocation7 + $0x70] sm:$0xff]  ;;  %v5280_v12 = vcombine.low %v1060_v46, %v1064_v47  ;;  %v1069_v14 = vld [vmem:[#allocation7 + $0x58] sm:$0xff] }
 0x285   :  { %4020 = vmatprep.subr.bf16.mxu0 %v5647_v27  ;;  %v5695_v27 = vcombine.high %v1475_v60, %v1479_v17 }
 0x287   :  { %3857 = vmatpush1.bf16.msra.mxu1 %v5644_v63  ;;  %v5692_v63 = vcombine.low %v1474_v21, %v1478_v11  ;;  %v1076_v21 = vld [vmem:[#allocation7 + $0x90] sm:$0xff] }
 0x288   :  { %4021 = vmatpush1.bf16.msra.mxu0 %v5646_v2  ;;  %3858 = vmatprep.subr.bf16.mxu1 %v5653_v3  ;;  %v5694_v2 = vcombine.low %v1475_v60, %v1479_v17  ;;  %v5701_v3 = vcombine.high %v1482_v30, %v1486_v31  ;;  %v1080_v11 = vld [vmem:[#allocation7 + $0xb0] sm:$0xff]  ;;  %v1077_v17 = vld [vmem:[#allocation7 + $0x98] sm:$0xff] }
 0x289   :  { %4022 = vmatprep.subr.bf16.mxu0 %v5655_v4  ;;  %v5703_v4 = vcombine.high %v1483_v61, %v1487_v62 }
 0x28b   :  { %3859 = vmatpush1.bf16.msra.mxu1 %v5652_v35  ;;  %v5700_v35 = vcombine.low %v1482_v30, %v1486_v31  ;;  %v1084_v30 = vld [vmem:[#allocation7 + $0xd0] sm:$0xff] }
 0x28c   :  { %4023 = vmatpush1.bf16.msra.mxu0 %v5654_v36  ;;  %3869 = vmatprep.subr.bf16.mxu1 %v5661_v37  ;;  %v5702_v36 = vcombine.low %v1483_v61, %v1487_v62  ;;  %v5709_v37 = vcombine.high %v1490_v32, %v1494_v33  ;;  %v1088_v31 = vld [vmem:[#allocation7 + $0xf0] sm:$0xff]  ;;  %v1085_v61 = vld [vmem:[#allocation7 + $0xd8] sm:$0xff] }
 0x28d   :  { %4033 = vmatprep.subr.bf16.mxu0 %v5663_v38  ;;  %v5711_v38 = vcombine.high %v1491_v34, %v1495_v6  ;;  %v1089_v62 = vld [vmem:[#allocation7 + $0xf8] sm:$0xff] }
 0x28e   :  { %3861 = vmatmul.mubr.bf16.vlgmr.msra.gmra.mrb[12].mxu1 %v6908_v43 }
 0x28f   :  { %4025 = vmatmul.mubr.bf16.vlgmr.msra.gmra.mrb[16].mxu0 %v6908_v43  ;;  %3870 = vmatpush1.bf16.msra.mxu1 %v5660_v42  ;;  %v5708_v42 = vcombine.low %v1490_v32, %v1494_v33  ;;  %v1092_v32 = vld [vmem:[#allocation7 + $0x110] sm:$0xff] }
 0x290   :  { %4034 = vmatpush1.bf16.msra.mxu0 %v5662_v44  ;;  %3871 = vmatprep.subr.bf16.mxu1 %v5669_v45  ;;  %v5710_v44 = vcombine.low %v1491_v34, %v1495_v6  ;;  %v5717_v45 = vcombine.high %v1498_v39, %v1502_v20  ;;  %v1096_v33 = vld [vmem:[#allocation7 + $0x130] sm:$0xff]  ;;  %v1093_v34 = vld [vmem:[#allocation7 + $0x118] sm:$0xff] }
 0x291   :  { %4035 = vmatprep.subr.bf16.mxu0 %v5671_v13  ;;  %3901 = vmatprep.mubr.bf16.mxu1 %v6470_v0  ;;  %v5719_v13 = vcombine.high %v1499_v40, %v1503_v41  ;;  %v1097_v6 = vld [vmem:[#allocation7 + $0x138] sm:$0xff] }
 0x292   :  { %4065 = vmatprep.mubr.bf16.mxu0 %v6470_v0 }
 0x293   :  { %3872 = vmatpush1.bf16.msra.mxu1 %v5668_v52  ;;  %v5716_v52 = vcombine.low %v1498_v39, %v1502_v20  ;;  %v1104_v39 = vld [vmem:[#allocation7 + $0x170] sm:$0xff]  ;;  %v1101_v20 = vld [vmem:[#allocation7 + $0x158] sm:$0xff] }
 0x294   :  { %4036 = vmatpush1.bf16.msra.mxu0 %v5670_v10  ;;  %3873 = vmatprep.subr.bf16.mxu1 %v5677_v53  ;;  %v5718_v10 = vcombine.low %v1499_v40, %v1503_v41  ;;  %v5281_v53 = vcombine.high %v1060_v46, %v1064_v47  ;;  %v1105_v40 = vld [vmem:[#allocation7 + $0x178] sm:$0xff]  ;;  %v5312_v41 = vcombine.low %v1092_v32, %v1096_v33  ;;  %v1112_v46 = vld [vmem:[#allocation7 + $0x1b0] sm:$0xff] }
 0x295   :  { %4037 = vmatprep.subr.bf16.mxu0 %v5679_v55  ;;  %v5283_v55 = vcombine.high %v1061_v48, %v1065_v49  ;;  %v1109_v47 = vld [vmem:[#allocation7 + $0x198] sm:$0xff] }
 0x297   :  { %3874 = vmatpush1.bf16.msra.mxu1 %v5676_v54  ;;  %v1073_v54 = vld [vmem:[#allocation7 + $0x78] sm:$0xff] }
 0x298   :  { %4038 = vmatpush1.bf16.msra.mxu0 %v5678_v51  ;;  %3875 = vmatprep.subr.bf16.mxu1 %v5685_v50  ;;  %v6916_v51 = vpack.c.bf16 %v6892_v7, %v6892_v7  ;;  %v5282_v50 = vcombine.low %v1061_v48, %v1065_v49  ;;  %v5291_v60 = vcombine.high %v1069_v14, %v1073_v54  ;;  %v1113_v48 = vld [vmem:[#allocation7 + $0x1b8] sm:$0xff] }
 0x299   :  { %4039 = vmatprep.subr.bf16.mxu0 %v5687_v19  ;;  %v5289_v19 = vcombine.high %v1068_v58, %v1072_v1  ;;  %v5290_v7 = vcombine.low %v1069_v14, %v1073_v54  ;;  %v5330_v54 = vcombine.low %v1109_v47, %v1113_v48 }
 0x29b   :  { %3876 = vmatpush1.bf16.msra.mxu1 %v5684_v5  ;;  %v1081_v5 = vld [vmem:[#allocation7 + $0xb8] sm:$0xff] }
 0x29c   :  { %4040 = vmatpush1.bf16.msra.mxu0 %v5686_v23  ;;  %3877 = vmatprep.subr.bf16.mxu1 %v5693_v59  ;;  %v5288_v23 = vcombine.low %v1068_v58, %v1072_v1  ;;  %v5297_v59 = vcombine.high %v1076_v21, %v1080_v11  ;;  %v1120_v58 = vld [vmem:[#allocation7 + $0x1f0] sm:$0xff]  ;;  %v1117_v1 = vld [vmem:[#allocation7 + $0x1d8] sm:$0xff] }
 0x29d   :  { %4041 = vmatprep.subr.bf16.mxu0 %v5695_v27  ;;  %v5299_v27 = vcombine.high %v1077_v17, %v1081_v5 }
 0x29f   :  { %3878 = vmatpush1.bf16.msra.mxu1 %v5692_v63  ;;  %v5296_v63 = vcombine.low %v1076_v21, %v1080_v11  ;;  %v1124_v21 = vld [vmem:[#allocation7 + $0x210] sm:$0xff] }
 0x2a0   :  { %4042 = vmatpush1.bf16.msra.mxu0 %v5694_v2  ;;  %3879 = vmatprep.subr.bf16.mxu1 %v5701_v3  ;;  %v5298_v2 = vcombine.low %v1077_v17, %v1081_v5  ;;  %v5305_v3 = vcombine.high %v1084_v30, %v1088_v31  ;;  %v1128_v11 = vld [vmem:[#allocation7 + $0x230] sm:$0xff]  ;;  %v1129_v17 = vld [vmem:[#allocation7 + $0x238] sm:$0xff] }
 0x2a1   :  { %4043 = vmatprep.subr.bf16.mxu0 %v5703_v4  ;;  %v5307_v4 = vcombine.high %v1085_v61, %v1089_v62 }
 0x2a3   :  { %3880 = vmatpush1.bf16.msra.mxu1 %v5700_v35  ;;  %v5306_v35 = vcombine.low %v1085_v61, %v1089_v62  ;;  %v1137_v61 = vld [vmem:[#allocation7 + $0x278] sm:$0xff]  ;;  %v5344_v62 = vcombine.low %v1124_v21, %v1128_v11 }
 0x2a4   :  { %4044 = vmatpush1.bf16.msra.mxu0 %v5702_v36  ;;  %3881 = vmatprep.subr.bf16.mxu1 %v5709_v37  ;;  %v5313_v36 = vcombine.high %v1092_v32, %v1096_v33  ;;  %v5315_v37 = vcombine.high %v1093_v34, %v1097_v6  ;;  %v1144_v32 = vld [vmem:[#allocation7 + $0x2b0] sm:$0xff]  ;;  %v1141_v33 = vld [vmem:[#allocation7 + $0x298] sm:$0xff] }
 0x2a5   :  { %4045 = vmatprep.subr.bf16.mxu0 %v5711_v38  ;;  %v1100_v38 = vld [vmem:[#allocation7 + $0x150] sm:$0xff] }
 0x2a6   :  { %v5320_v49 = vcombine.low %v1100_v38, %v1104_v39 }
 0x2a7   :  { %3882 = vmatpush1.bf16.msra.mxu1 %v5708_v42  ;;  %v5314_v42 = vcombine.low %v1093_v34, %v1097_v6  ;;  %v1145_v34 = vld [vmem:[#allocation7 + $0x2b8] sm:$0xff] }
 0x2a8   :  { %4046 = vmatpush1.bf16.msra.mxu0 %v5710_v44  ;;  %3883 = vmatprep.subr.bf16.mxu1 %v5717_v45  ;;  %v5321_v44 = vcombine.high %v1100_v38, %v1104_v39  ;;  %v5323_v45 = vcombine.high %v1101_v20, %v1105_v40  ;;  %v1152_v38 = vld [vmem:[#allocation7 + $0x2f0] sm:$0xff]  ;;  %v1149_v39 = vld [vmem:[#allocation7 + $0x2d8] sm:$0xff] }
 0x2a9   :  { %4047 = vmatprep.subr.bf16.mxu0 %v5719_v13  ;;  %v1108_v13 = vld [vmem:[#allocation7 + $0x190] sm:$0xff] }
 0x2aa   :  { %v5328_v14 = vcombine.low %v1108_v13, %v1112_v46 }
 0x2ab   :  { %3884 = vmatpush1.bf16.msra.mxu1 %v5716_v52  ;;  %v5322_v52 = vcombine.low %v1101_v20, %v1105_v40  ;;  %v1153_v20 = vld [vmem:[#allocation7 + $0x2f8] sm:$0xff] }
 0x2ac   :  { %4048 = vmatpush1.bf16.msra.mxu0 %v5718_v10  ;;  %4074 = vmatprep.subr.bf16.mxu1 %v5281_v53  ;;  %v5329_v10 = vcombine.high %v1108_v13, %v1112_v46  ;;  %v5331_v53 = vcombine.high %v1109_v47, %v1113_v48  ;;  %v1160_v13 = vld [vmem:[#allocation7 + $0x330] sm:$0xff]  ;;  %v1157_v46 = vld [vmem:[#allocation7 + $0x318] sm:$0xff] }
 0x2ad   :  { %4238 = vmatprep.subr.bf16.mxu0 %v5283_v55  ;;  %v1116_v55 = vld [vmem:[#allocation7 + $0x1d0] sm:$0xff]  ;;  %v1161_v47 = vld [vmem:[#allocation7 + $0x338] sm:$0xff] }
 0x2ae   :  { %3902 = vmatmul.mubr.bf16.vlgmr.msra.gmra.mrb[12].mxu1 %v6916_v51  ;;  %v5336_v5 = vcombine.low %v1116_v55, %v1120_v58 }
 0x2af   :  { %4066 = vmatmul.mubr.bf16.vlgmr.msra.gmra.mrb[16].mxu0 %v6916_v51  ;;  %4075 = vmatpush1.bf16.msra.mxu1 %v5280_v12  ;;  %v1121_v12 = vld [vmem:[#allocation7 + $0x1f8] sm:$0xff] }
 0x2b0   :  { %4106 = vmatprep.mubr.bf16.mxu1 %v6862_v16  ;;  %4239 = vmatpush1.bf16.msra.mxu0 %v5282_v50  ;;  %v5337_v50 = vcombine.high %v1116_v55, %v1120_v58  ;;  %v1168_v55 = vld [vmem:[#allocation7 + $0x370] sm:$0xff]  ;;  %v1165_v58 = vld [vmem:[#allocation7 + $0x358] sm:$0xff] }
 0x2b1   :  { %4270 = vmatprep.mubr.bf16.mxu0 %v6862_v16  ;;  %4076 = vmatprep.subr.bf16.mxu1 %v5289_v19  ;;  %v5304_v16 = vcombine.low %v1084_v30, %v1088_v31  ;;  %v5339_v19 = vcombine.high %v1117_v1, %v1121_v12  ;;  %v1136_v30 = vld [vmem:[#allocation7 + $0x270] sm:$0xff]  ;;  %v1133_v31 = vld [vmem:[#allocation7 + $0x258] sm:$0xff] }
 0x2b2   :  { %4240 = vmatprep.subr.bf16.mxu0 %v5291_v60  ;;  %v1125_v60 = vld [vmem:[#allocation7 + $0x218] sm:$0xff] }
 0x2b3   :  { %4077 = vmatpush1.bf16.msra.mxu1 %v5288_v23  ;;  %v5338_v23 = vcombine.low %v1117_v1, %v1121_v12  ;;  %v1169_v1 = vld [vmem:[#allocation7 + $0x378] sm:$0xff] }
 0x2b4   :  { %4241 = vmatpush1.bf16.msra.mxu0 %v5290_v7  ;;  %4078 = vmatprep.subr.bf16.mxu1 %v5297_v59  ;;  %v5345_v7 = vcombine.high %v1124_v21, %v1128_v11  ;;  %v5347_v59 = vcombine.high %v1125_v60, %v1129_v17  ;;  %v1176_v21 = vld [vmem:[#allocation7 + $0x3b0] sm:$0xff]  ;;  %v1173_v11 = vld [vmem:[#allocation7 + $0x398] sm:$0xff] }
 0x2b5   :  { %4242 = vmatprep.subr.bf16.mxu0 %v5299_v27  ;;  %v1132_v27 = vld [vmem:[#allocation7 + $0x250] sm:$0xff] }
 0x2b6   :  { %v5352_v6 = vcombine.low %v1132_v27, %v1136_v30 }
 0x2b7   :  { %4079 = vmatpush1.bf16.msra.mxu1 %v5296_v63  ;;  %v5346_v63 = vcombine.low %v1125_v60, %v1129_v17  ;;  %v1177_v60 = vld [vmem:[#allocation7 + $0x3b8] sm:$0xff] }
 0x2b8   :  { %4243 = vmatpush1.bf16.msra.mxu0 %v5298_v2  ;;  %4080 = vmatprep.subr.bf16.mxu1 %v5305_v3  ;;  %v5353_v2 = vcombine.high %v1132_v27, %v1136_v30  ;;  %v5355_v3 = vcombine.high %v1133_v31, %v1137_v61  ;;  %v1184_v27 = vld [vmem:[#allocation7 + $0x3f0] sm:$0xff]  ;;  %v1181_v30 = vld [vmem:[#allocation7 + $0x3d8] sm:$0xff] }
 0x2b9   :  { %4244 = vmatprep.subr.bf16.mxu0 %v5307_v4  ;;  %v1140_v4 = vld [vmem:[#allocation7 + $0x290] sm:$0xff] }
 0x2ba   :  { %v5360_v40 = vcombine.low %v1140_v4, %v1144_v32 }
 0x2bb   :  { %4081 = vmatpush1.bf16.msra.mxu1 %v5304_v16  ;;  %v5354_v16 = vcombine.low %v1133_v31, %v1137_v61  ;;  %v1185_v31 = vld [vmem:[#allocation7 + $0x3f8] sm:$0xff] }
 0x2bc   :  { %4245 = vmatpush1.bf16.msra.mxu0 %v5306_v35  ;;  %4082 = vmatprep.subr.bf16.mxu1 %v5313_v36  ;;  %v5361_v35 = vcombine.high %v1140_v4, %v1144_v32  ;;  %v5363_v36 = vcombine.high %v1141_v33, %v1145_v34  ;;  %v1192_v4 = vld [vmem:[#allocation7 + $0x430] sm:$0xff]  ;;  %v1189_v32 = vld [vmem:[#allocation7 + $0x418] sm:$0xff] }
 0x2bd   :  { %4246 = vmatprep.subr.bf16.mxu0 %v5315_v37  ;;  %v1148_v37 = vld [vmem:[#allocation7 + $0x2d0] sm:$0xff] }
 0x2be   :  { %v5368_v48 = vcombine.low %v1148_v37, %v1152_v38 }
 0x2bf   :  { %4083 = vmatpush1.bf16.msra.mxu1 %v5312_v41  ;;  %v5362_v41 = vcombine.low %v1141_v33, %v1145_v34  ;;  %v1193_v33 = vld [vmem:[#allocation7 + $0x438] sm:$0xff] }
 0x2c0   :  { %4247 = vmatpush1.bf16.msra.mxu0 %v5314_v42  ;;  %4084 = vmatprep.subr.bf16.mxu1 %v5321_v44  ;;  %v5369_v42 = vcombine.high %v1148_v37, %v1152_v38  ;;  %v5371_v44 = vcombine.high %v1149_v39, %v1153_v20  ;;  %v1200_v37 = vld [vmem:[#allocation7 + $0x470] sm:$0xff] }
 0x2c1   :  { %4248 = vmatprep.subr.bf16.mxu0 %v5323_v45  ;;  %v1156_v45 = vld [vmem:[#allocation7 + $0x310] sm:$0xff] }
 0x2c2   :  { %v5376_v12 = vcombine.low %v1156_v45, %v1160_v13 }
 0x2c3   :  { %4085 = vmatpush1.bf16.msra.mxu1 %v5320_v49  ;;  %v5370_v49 = vcombine.low %v1149_v39, %v1153_v20  ;;  %v1197_v39 = vld [vmem:[#allocation7 + $0x458] sm:$0xff] }
 0x2c4   :  { %4249 = vmatpush1.bf16.msra.mxu0 %v5322_v52  ;;  %4086 = vmatprep.subr.bf16.mxu1 %v5329_v10  ;;  %v5377_v52 = vcombine.high %v1156_v45, %v1160_v13  ;;  %v5379_v10 = vcombine.high %v1157_v46, %v1161_v47  ;;  %v1201_v20 = vld [vmem:[#allocation7 + $0x478] sm:$0xff] }
 0x2c5   :  { %4250 = vmatprep.subr.bf16.mxu0 %v5331_v53  ;;  %v1164_v53 = vld [vmem:[#allocation7 + $0x350] sm:$0xff]  ;;  %v5419_v45 = vcombine.high %v1197_v39, %v1201_v20  ;;  %v1205_v13 = vld [vmem:[#allocation7 + $0x498] sm:$0xff] }
 0x2c6   :  { %v5384_v17 = vcombine.low %v1164_v53, %v1168_v55 }
 0x2c7   :  { %4087 = vmatpush1.bf16.msra.mxu1 %v5328_v14  ;;  %v5378_v14 = vcombine.low %v1157_v46, %v1161_v47  ;;  %v1209_v46 = vld [vmem:[#allocation7 + $0x4b8] sm:$0xff] }
 0x2c8   :  { %4251 = vmatpush1.bf16.msra.mxu0 %v5330_v54  ;;  %4088 = vmatprep.subr.bf16.mxu1 %v5337_v50  ;;  %v5385_v54 = vcombine.high %v1164_v53, %v1168_v55  ;;  %v5387_v50 = vcombine.high %v1165_v58, %v1169_v1  ;;  %v1216_v53 = vld [vmem:[#allocation7 + $0x4f0] sm:$0xff]  ;;  %v1213_v55 = vld [vmem:[#allocation7 + $0x4d8] sm:$0xff] }
 0x2c9   :  { %4252 = vmatprep.subr.bf16.mxu0 %v5339_v19  ;;  %v1172_v19 = vld [vmem:[#allocation7 + $0x390] sm:$0xff] }
 0x2ca   :  { %v5392_v61 = vcombine.low %v1172_v19, %v1176_v21 }
 0x2cb   :  { %4089 = vmatpush1.bf16.msra.mxu1 %v5336_v5  ;;  %v5386_v5 = vcombine.low %v1165_v58, %v1169_v1  ;;  %v1217_v58 = vld [vmem:[#allocation7 + $0x4f8] sm:$0xff] }
 0x2cc   :  { %4253 = vmatpush1.bf16.msra.mxu0 %v5338_v23  ;;  %4090 = vmatprep.subr.bf16.mxu1 %v5345_v7  ;;  %v5393_v23 = vcombine.high %v1172_v19, %v1176_v21  ;;  %v5395_v7 = vcombine.high %v1173_v11, %v1177_v60  ;;  %v1221_v19 = vld [vmem:[#allocation7 + $0x518] sm:$0xff] }
 0x2cd   :  { %4254 = vmatprep.subr.bf16.mxu0 %v5347_v59  ;;  %v1180_v59 = vld [vmem:[#allocation7 + $0x3d0] sm:$0xff]  ;;  %v1225_v21 = vld [vmem:[#allocation7 + $0x538] sm:$0xff] }
 0x2ce   :  { %v5400_v34 = vcombine.low %v1180_v59, %v1184_v27 }
 0x2cf   :  { %4091 = vmatpush1.bf16.msra.mxu1 %v5344_v62  ;;  %v5394_v62 = vcombine.low %v1173_v11, %v1177_v60  ;;  %v5434_v11 = vcombine.low %v1213_v55, %v1217_v58 }
 0x2d0   :  { %4255 = vmatpush1.bf16.msra.mxu0 %v5346_v63  ;;  %4092 = vmatprep.subr.bf16.mxu1 %v5353_v2  ;;  %v5401_v63 = vcombine.high %v1180_v59, %v1184_v27  ;;  %v5403_v2 = vcombine.high %v1181_v30, %v1185_v31  ;;  %v1233_v59 = vld [vmem:[#allocation7 + $0x578] sm:$0xff] }
 0x2d1   :  { %4256 = vmatprep.subr.bf16.mxu0 %v5355_v3  ;;  %v1188_v3 = vld [vmem:[#allocation7 + $0x410] sm:$0xff] }
 0x2d2   :  { %v5408_v38 = vcombine.low %v1188_v3, %v1192_v4 }
 0x2d3   :  { %4093 = vmatpush1.bf16.msra.mxu1 %v5352_v6  ;;  %v5402_v6 = vcombine.low %v1181_v30, %v1185_v31  ;;  %v5442_v30 = vcombine.low %v1221_v19, %v1225_v21 }
 0x2d4   :  { %4257 = vmatpush1.bf16.msra.mxu0 %v5354_v16  ;;  %4094 = vmatprep.subr.bf16.mxu1 %v5361_v35  ;;  %v5409_v16 = vcombine.high %v1188_v3, %v1192_v4  ;;  %v5411_v35 = vcombine.high %v1189_v32, %v1193_v33  ;;  %v1241_v3 = vld [vmem:[#allocation7 + $0x5b8] sm:$0xff] }
 0x2d5   :  { %4258 = vmatprep.subr.bf16.mxu0 %v5363_v36  ;;  %v1196_v36 = vld [vmem:[#allocation7 + $0x450] sm:$0xff] }
 0x2d6   :  { %v5416_v47 = vcombine.low %v1196_v36, %v1200_v37 }
 0x2d7   :  { %4095 = vmatpush1.bf16.msra.mxu1 %v5360_v40  ;;  %v5410_v40 = vcombine.low %v1189_v32, %v1193_v33 }
 0x2d8   :  { %4259 = vmatpush1.bf16.msra.mxu0 %v5362_v41  ;;  %4096 = vmatprep.subr.bf16.mxu1 %v5369_v42  ;;  %v5417_v41 = vcombine.high %v1196_v36, %v1200_v37  ;;  %v1204_v42 = vld [vmem:[#allocation7 + $0x490] sm:$0xff]  ;;  %v1249_v36 = vld [vmem:[#allocation7 + $0x5f8] sm:$0xff] }
 0x2d9   :  { %4260 = vmatprep.subr.bf16.mxu0 %v5371_v44  ;;  %v1208_v44 = vld [vmem:[#allocation7 + $0x4b0] sm:$0xff] }
 0x2da   :  { %v5424_v1 = vcombine.low %v1204_v42, %v1208_v44 }
 0x2db   :  { %4097 = vmatpush1.bf16.msra.mxu1 %v5368_v48  ;;  %v5418_v48 = vcombine.low %v1197_v39, %v1201_v20 }
 0x2dc   :  { %4261 = vmatpush1.bf16.msra.mxu0 %v5370_v49  ;;  %4098 = vmatprep.subr.bf16.mxu1 %v5377_v52  ;;  %v5425_v49 = vcombine.high %v1204_v42, %v1208_v44  ;;  %v5427_v52 = vcombine.high %v1205_v13, %v1209_v46  ;;  %v1253_v42 = vld [vmem:[#allocation7 + $0x618] sm:$0xff] }
 0x2dd   :  { %4262 = vmatprep.subr.bf16.mxu0 %v5379_v10  ;;  %v1212_v10 = vld [vmem:[#allocation7 + $0x4d0] sm:$0xff]  ;;  %v1257_v44 = vld [vmem:[#allocation7 + $0x638] sm:$0xff] }
 0x2df   :  { %4099 = vmatpush1.bf16.msra.mxu1 %v5376_v12  ;;  %v5433_v12 = vcombine.high %v1212_v10, %v1216_v53 }
 0x2e0   :  { %4263 = vmatpush1.bf16.msra.mxu0 %v5378_v14  ;;  %4100 = vmatprep.subr.bf16.mxu1 %v5385_v54  ;;  %v5435_v14 = vcombine.high %v1213_v55, %v1217_v58  ;;  %v1220_v54 = vld [vmem:[#allocation7 + $0x510] sm:$0xff]  ;;  %v5474_v55 = vcombine.low %v1253_v42, %v1257_v44 }
 0x2e1   :  { %4264 = vmatprep.subr.bf16.mxu0 %v5387_v50  ;;  %v1224_v50 = vld [vmem:[#allocation7 + $0x530] sm:$0xff] }
 0x2e2   :  { %v5441_v60 = vcombine.high %v1220_v54, %v1224_v50  ;;  %v5440_v27 = vcombine.low %v1220_v54, %v1224_v50  ;;  %v1273_v54 = vld [vmem:[#allocation7 + $0x6b8] sm:$0xff] }
 0x2e3   :  { %4101 = vmatpush1.bf16.msra.mxu1 %v5384_v17  ;;  %v5443_v17 = vcombine.high %v1221_v19, %v1225_v21 }
 0x2e4   :  { %4265 = vmatpush1.bf16.msra.mxu0 %v5386_v5  ;;  %4102 = vmatprep.subr.bf16.mxu1 %v5393_v23  ;;  %v1228_v5 = vld [vmem:[#allocation7 + $0x550] sm:$0xff] }
 0x2e5   :  { %4266 = vmatprep.subr.bf16.mxu0 %v5395_v7  ;;  %v1232_v23 = vld [vmem:[#allocation7 + $0x570] sm:$0xff]  ;;  %v1229_v7 = vld [vmem:[#allocation7 + $0x558] sm:$0xff] }
 0x2e6   :  { %v5449_v31 = vcombine.high %v1228_v5, %v1232_v23  ;;  %v5448_v4 = vcombine.low %v1228_v5, %v1232_v23  ;;  %v5450_v32 = vcombine.low %v1229_v7, %v1233_v59  ;;  %v1281_v5 = vld [vmem:[#allocation7 + $0x6f8] sm:$0xff] }
 0x2e7   :  { %4103 = vmatpush1.bf16.msra.mxu1 %v5392_v61  ;;  %v5451_v61 = vcombine.high %v1229_v7, %v1233_v59 }
 0x2e8   :  { %4267 = vmatpush1.bf16.msra.mxu0 %v5394_v62  ;;  %4104 = vmatprep.subr.bf16.mxu1 %v5401_v63  ;;  %v1236_v62 = vld [vmem:[#allocation7 + $0x590] sm:$0xff] }
 0x2e9   :  { %4268 = vmatprep.subr.bf16.mxu0 %v5403_v2  ;;  %v1240_v63 = vld [vmem:[#allocation7 + $0x5b0] sm:$0xff]  ;;  %v1237_v2 = vld [vmem:[#allocation7 + $0x598] sm:$0xff] }
 0x2ea   :  { %v5457_v33 = vcombine.high %v1236_v62, %v1240_v63  ;;  %v5456_v37 = vcombine.low %v1236_v62, %v1240_v63  ;;  %v1289_v62 = vld [vmem:[#allocation7 + $0x738] sm:$0xff] }
 0x2eb   :  { %4105 = vmatpush1.bf16.msra.mxu1 %v5400_v34  ;;  %v5459_v34 = vcombine.high %v1237_v2, %v1241_v3 }
 0x2ec   :  { %4269 = vmatpush1.bf16.msra.mxu0 %v5402_v6  ;;  %4115 = vmatprep.subr.bf16.mxu1 %v5409_v16  ;;  %v1244_v6 = vld [vmem:[#allocation7 + $0x5d0] sm:$0xff] }
 0x2ed   :  { %4279 = vmatprep.subr.bf16.mxu0 %v5411_v35  ;;  %v1248_v16 = vld [vmem:[#allocation7 + $0x5f0] sm:$0xff]  ;;  %v1245_v35 = vld [vmem:[#allocation7 + $0x5d8] sm:$0xff] }
 0x2ee   :  { %4107 = vmatmul.mubr.bf16.vlgmr.msra.gmra.mrb[16].mxu1 %v6864_v18  ;;  %v5465_v39 = vcombine.high %v1244_v6, %v1248_v16  ;;  %v5467_v20 = vcombine.high %v1245_v35, %v1249_v36 }
 0x2ef   :  { %4271 = vmatmul.mubr.bf16.vlgmr.msra.gmra.mrb[20].mxu0 %v6864_v18  ;;  %4116 = vmatpush1.bf16.msra.mxu1 %v5408_v38  ;;  %v5426_v18 = vcombine.low %v1205_v13, %v1209_v46  ;;  %v5458_v38 = vcombine.low %v1237_v2, %v1241_v3  ;;  %v5466_v13 = vcombine.low %v1245_v35, %v1249_v36 }
 0x2f0   :  { %4147 = vmatprep.mubr.bf16.mxu1 %v6868_v15  ;;  %4280 = vmatpush1.bf16.msra.mxu0 %v5410_v40  ;;  %v1252_v40 = vld [vmem:[#allocation7 + $0x610] sm:$0xff] }
 0x2f1   :  { %4311 = vmatprep.mubr.bf16.mxu0 %v6868_v15  ;;  %4117 = vmatprep.subr.bf16.mxu1 %v5417_v41  ;;  %v5432_v15 = vcombine.low %v1212_v10, %v1216_v53  ;;  %v1256_v41 = vld [vmem:[#allocation7 + $0x630] sm:$0xff]  ;;  %v1265_v10 = vld [vmem:[#allocation7 + $0x678] sm:$0xff] }
 0x2f2   :  { %4281 = vmatprep.subr.bf16.mxu0 %v5419_v45  ;;  %v5464_v45 = vcombine.low %v1244_v6, %v1248_v16  ;;  %v5473_v46 = vcombine.high %v1252_v40, %v1256_v41  ;;  %v5472_v53 = vcombine.low %v1252_v40, %v1256_v41  ;;  %v1297_v6 = vld [vmem:[#allocation7 + $0x778] sm:$0xff] }
 0x2f3   :  { %4118 = vmatpush1.bf16.msra.mxu1 %v5416_v47  ;;  %v5475_v47 = vcombine.high %v1253_v42, %v1257_v44  ;;  %v1305_v40 = vld [vmem:[#allocation7 + $0x7b8] sm:$0xff] }
 0x2f4   :  { %4282 = vmatpush1.bf16.msra.mxu0 %v5418_v48  ;;  %4119 = vmatprep.subr.bf16.mxu1 %v5425_v49  ;;  %v1260_v48 = vld [vmem:[#allocation7 + $0x650] sm:$0xff] }
 0x2f5   :  { %4283 = vmatprep.subr.bf16.mxu0 %v5427_v52  ;;  %v1264_v49 = vld [vmem:[#allocation7 + $0x670] sm:$0xff]  ;;  %v1261_v52 = vld [vmem:[#allocation7 + $0x658] sm:$0xff] }
 0x2f6   :  { %v5481_v58 = vcombine.high %v1260_v48, %v1264_v49  ;;  %v5480_v50 = vcombine.low %v1260_v48, %v1264_v49  ;;  %v5482_v19 = vcombine.low %v1261_v52, %v1265_v10  ;;  %v1313_v48 = vld [vmem:[#allocation7 + $0x7f8] sm:$0xff] }
 0x2f7   :  { %4120 = vmatpush1.bf16.msra.mxu1 %v5424_v1  ;;  %v5483_v1 = vcombine.high %v1261_v52, %v1265_v10 }
 0x2f8   :  { %4284 = vmatpush1.bf16.msra.mxu0 %v5426_v18  ;;  %4121 = vmatprep.subr.bf16.mxu1 %v5433_v12  ;;  %v1268_v18 = vld [vmem:[#allocation7 + $0x690] sm:$0xff] }
 0x2f9   :  { %4285 = vmatprep.subr.bf16.mxu0 %v5435_v14  ;;  %v1272_v12 = vld [vmem:[#allocation7 + $0x6b0] sm:$0xff]  ;;  %v1269_v14 = vld [vmem:[#allocation7 + $0x698] sm:$0xff] }
 0x2fa   :  { %v5489_v21 = vcombine.high %v1268_v18, %v1272_v12  ;;  %v5488_v23 = vcombine.low %v1268_v18, %v1272_v12  ;;  %v5490_v7 = vcombine.low %v1269_v14, %v1273_v54  ;;  %v1321_v18 = vld [vmem:[#allocation7 + $0x838] sm:$0xff] }
 0x2fb   :  { %4122 = vmatpush1.bf16.msra.mxu1 %v5432_v15  ;;  %v5491_v15 = vcombine.high %v1269_v14, %v1273_v54 }
 0x2fc   :  { %4286 = vmatpush1.bf16.msra.mxu0 %v5434_v11  ;;  %4123 = vmatprep.subr.bf16.mxu1 %v5441_v60  ;;  %v1276_v11 = vld [vmem:[#allocation7 + $0x6d0] sm:$0xff] }
 0x2fd   :  { %4287 = vmatprep.subr.bf16.mxu0 %v5443_v17  ;;  %v1280_v60 = vld [vmem:[#allocation7 + $0x6f0] sm:$0xff]  ;;  %v1277_v17 = vld [vmem:[#allocation7 + $0x6d8] sm:$0xff] }
 0x2fe   :  { %v5497_v59 = vcombine.high %v1276_v11, %v1280_v60  ;;  %v5496_v63 = vcombine.low %v1276_v11, %v1280_v60  ;;  %v5498_v2 = vcombine.low %v1277_v17, %v1281_v5  ;;  %v1325_v11 = vld [vmem:[#allocation7 + $0x858] sm:$0xff] }
 0x2ff   :  { %4124 = vmatpush1.bf16.msra.mxu1 %v5440_v27  ;;  %v5499_v27 = vcombine.high %v1277_v17, %v1281_v5  ;;  %v1329_v60 = vld [vmem:[#allocation7 + $0x878] sm:$0xff] }
 0x300   :  { %4288 = vmatpush1.bf16.msra.mxu0 %v5442_v30  ;;  %4125 = vmatprep.subr.bf16.mxu1 %v5449_v31  ;;  %v1284_v30 = vld [vmem:[#allocation7 + $0x710] sm:$0xff] }
 0x301   :  { %4289 = vmatprep.subr.bf16.mxu0 %v5451_v61  ;;  %v1288_v31 = vld [vmem:[#allocation7 + $0x730] sm:$0xff]  ;;  %v1285_v61 = vld [vmem:[#allocation7 + $0x718] sm:$0xff] }
 0x302   :  { %v5505_v3 = vcombine.high %v1284_v30, %v1288_v31  ;;  %v5504_v16 = vcombine.low %v1284_v30, %v1288_v31  ;;  %v5506_v35 = vcombine.low %v1285_v61, %v1289_v62  ;;  %v1337_v30 = vld [vmem:[#allocation7 + $0x8b8] sm:$0xff] }
 0x303   :  { %4126 = vmatpush1.bf16.msra.mxu1 %v5448_v4  ;;  %v5507_v4 = vcombine.high %v1285_v61, %v1289_v62  ;;  %v5546_v61 = vcombine.low %v1325_v11, %v1329_v60 }
 0x304   :  { %4290 = vmatpush1.bf16.msra.mxu0 %v5450_v32  ;;  %4127 = vmatprep.subr.bf16.mxu1 %v5457_v33  ;;  %v1292_v32 = vld [vmem:[#allocation7 + $0x750] sm:$0xff] }
 0x305   :  { %4291 = vmatprep.subr.bf16.mxu0 %v5459_v34  ;;  %v1296_v33 = vld [vmem:[#allocation7 + $0x770] sm:$0xff]  ;;  %v1293_v34 = vld [vmem:[#allocation7 + $0x758] sm:$0xff] }
 0x306   :  { %v5513_v36 = vcombine.high %v1292_v32, %v1296_v33  ;;  %v5512_v41 = vcombine.low %v1292_v32, %v1296_v33  ;;  %v5514_v42 = vcombine.low %v1293_v34, %v1297_v6  ;;  %v1345_v32 = vld [vmem:[#allocation7 + $0x8f8] sm:$0xff] }
 0x307   :  { %4128 = vmatpush1.bf16.msra.mxu1 %v5456_v37  ;;  %v5515_v37 = vcombine.high %v1293_v34, %v1297_v6 }
 0x308   :  { %4292 = vmatpush1.bf16.msra.mxu0 %v5458_v38  ;;  %4129 = vmatprep.subr.bf16.mxu1 %v5465_v39  ;;  %v1300_v38 = vld [vmem:[#allocation7 + $0x790] sm:$0xff] }
 0x309   :  { %4293 = vmatprep.subr.bf16.mxu0 %v5467_v20  ;;  %v1304_v39 = vld [vmem:[#allocation7 + $0x7b0] sm:$0xff]  ;;  %v1301_v20 = vld [vmem:[#allocation7 + $0x798] sm:$0xff] }
 0x30a   :  { %v5521_v44 = vcombine.high %v1300_v38, %v1304_v39  ;;  %v5520_v49 = vcombine.low %v1300_v38, %v1304_v39  ;;  %v5522_v52 = vcombine.low %v1301_v20, %v1305_v40 }
 0x30b   :  { %4130 = vmatpush1.bf16.msra.mxu1 %v5464_v45  ;;  %v5523_v45 = vcombine.high %v1301_v20, %v1305_v40  ;;  %v1356_v40 = vld [vmem:[#allocation7 + $0x950] sm:$0xff] }
 0x30c   :  { %4294 = vmatpush1.bf16.msra.mxu0 %v5466_v13  ;;  %4131 = vmatprep.subr.bf16.mxu1 %v5473_v46  ;;  %v1308_v13 = vld [vmem:[#allocation7 + $0x7d0] sm:$0xff] }
 0x30d   :  { %4295 = vmatprep.subr.bf16.mxu0 %v5475_v47  ;;  %v1312_v46 = vld [vmem:[#allocation7 + $0x7f0] sm:$0xff]  ;;  %v1309_v47 = vld [vmem:[#allocation7 + $0x7d8] sm:$0xff] }
 0x30e   :  { %v5529_v10 = vcombine.high %v1308_v13, %v1312_v46  ;;  %v5528_v12 = vcombine.low %v1308_v13, %v1312_v46  ;;  %v5530_v14 = vcombine.low %v1309_v47, %v1313_v48 }
 0x30f   :  { %4132 = vmatpush1.bf16.msra.mxu1 %v5472_v53  ;;  %v5531_v53 = vcombine.high %v1309_v47, %v1313_v48  ;;  %v1364_v48 = vld [vmem:[#allocation7 + $0x990] sm:$0xff] }
 0x310   :  { %4296 = vmatpush1.bf16.msra.mxu0 %v5474_v55  ;;  %4133 = vmatprep.subr.bf16.mxu1 %v5481_v58  ;;  %v1316_v55 = vld [vmem:[#allocation7 + $0x810] sm:$0xff] }
 0x311   :  { %4297 = vmatprep.subr.bf16.mxu0 %v5483_v1  ;;  %v1320_v58 = vld [vmem:[#allocation7 + $0x830] sm:$0xff]  ;;  %v1317_v1 = vld [vmem:[#allocation7 + $0x818] sm:$0xff] }
 0x312   :  { %v5537_v54 = vcombine.high %v1316_v55, %v1320_v58  ;;  %v5538_v17 = vcombine.low %v1317_v1, %v1321_v18 }
 0x313   :  { %4134 = vmatpush1.bf16.msra.mxu1 %v5480_v50  ;;  %v5539_v50 = vcombine.high %v1317_v1, %v1321_v18  ;;  %v1372_v18 = vld [vmem:[#allocation7 + $0x9d0] sm:$0xff] }
 0x314   :  { %4298 = vmatpush1.bf16.msra.mxu0 %v5482_v19  ;;  %4135 = vmatprep.subr.bf16.mxu1 %v5489_v21  ;;  %v1324_v19 = vld [vmem:[#allocation7 + $0x850] sm:$0xff] }
 0x315   :  { %4299 = vmatprep.subr.bf16.mxu0 %v5491_v15  ;;  %v1328_v21 = vld [vmem:[#allocation7 + $0x870] sm:$0xff]  ;;  %v5536_v15 = vcombine.low %v1316_v55, %v1320_v58 }
 0x316   :  { %v5545_v5 = vcombine.high %v1324_v19, %v1328_v21  ;;  %v5544_v31 = vcombine.low %v1324_v19, %v1328_v21 }
 0x317   :  { %4136 = vmatpush1.bf16.msra.mxu1 %v5488_v23  ;;  %v1332_v23 = vld [vmem:[#allocation7 + $0x890] sm:$0xff] }
 0x318   :  { %4300 = vmatpush1.bf16.msra.mxu0 %v5490_v7  ;;  %4137 = vmatprep.subr.bf16.mxu1 %v5497_v59  ;;  %v1336_v7 = vld [vmem:[#allocation7 + $0x8b0] sm:$0xff]  ;;  %v5547_v59 = vcombine.high %v1325_v11, %v1329_v60 }
 0x319   :  { %4301 = vmatprep.subr.bf16.mxu0 %v5499_v27  ;;  %v1333_v27 = vld [vmem:[#allocation7 + $0x898] sm:$0xff]  ;;  %v5553_v62 = vcombine.high %v1332_v23, %v1336_v7  ;;  %v5552_v33 = vcombine.low %v1332_v23, %v1336_v7  ;;  %v1380_v11 = vld [vmem:[#allocation7 + $0xa10] sm:$0xff] }
 0x31a   :  { %v1384_v60 = vld [vmem:[#allocation7 + $0xa30] sm:$0xff] }
 0x31b   :  { %4138 = vmatpush1.bf16.msra.mxu1 %v5496_v63  ;;  %v5555_v63 = vcombine.high %v1333_v27, %v1337_v30 }
 0x31c   :  { %4302 = vmatpush1.bf16.msra.mxu0 %v5498_v2  ;;  %4139 = vmatprep.subr.bf16.mxu1 %v5505_v3  ;;  %v1340_v2 = vld [vmem:[#allocation7 + $0x8d0] sm:$0xff] }
 0x31d   :  { %4303 = vmatprep.subr.bf16.mxu0 %v5507_v4  ;;  %v1344_v3 = vld [vmem:[#allocation7 + $0x8f0] sm:$0xff]  ;;  %v1341_v4 = vld [vmem:[#allocation7 + $0x8d8] sm:$0xff] }
 0x31e   :  { %v5561_v34 = vcombine.high %v1340_v2, %v1344_v3  ;;  %v5563_v6 = vcombine.high %v1341_v4, %v1345_v32  ;;  %v5562_v38 = vcombine.low %v1341_v4, %v1345_v32  ;;  %v1396_v32 = vld [vmem:[#allocation7 + $0xa90] sm:$0xff] }
 0x31f   :  { %4140 = vmatpush1.bf16.msra.mxu1 %v5504_v16  ;;  %v1348_v16 = vld [vmem:[#allocation7 + $0x910] sm:$0xff] }
 0x320   :  { %4304 = vmatpush1.bf16.msra.mxu0 %v5506_v35  ;;  %4141 = vmatprep.subr.bf16.mxu1 %v5513_v36  ;;  %v1352_v35 = vld [vmem:[#allocation7 + $0x930] sm:$0xff]  ;;  %v1349_v36 = vld [vmem:[#allocation7 + $0x918] sm:$0xff] }
 0x321   :  { %4305 = vmatprep.subr.bf16.mxu0 %v5515_v37  ;;  %v1353_v37 = vld [vmem:[#allocation7 + $0x938] sm:$0xff]  ;;  %v5569_v39 = vcombine.high %v1348_v16, %v1352_v35 }
 0x322   :  { %v5571_v20 = vcombine.high %v1349_v36, %v1353_v37  ;;  %v5570_v13 = vcombine.low %v1349_v36, %v1353_v37  ;;  %v1404_v37 = vld [vmem:[#allocation7 + $0xad0] sm:$0xff] }
 0x323   :  { %4142 = vmatpush1.bf16.msra.mxu1 %v5512_v41  ;;  %v1360_v41 = vld [vmem:[#allocation7 + $0x970] sm:$0xff] }
 0x324   :  { %4306 = vmatpush1.bf16.msra.mxu0 %v5514_v42  ;;  %4143 = vmatprep.subr.bf16.mxu1 %v5521_v44  ;;  %v1357_v42 = vld [vmem:[#allocation7 + $0x958] sm:$0xff]  ;;  %v5577_v46 = vcombine.high %v1356_v40, %v1360_v41 }
 0x325   :  { %4307 = vmatprep.subr.bf16.mxu0 %v5523_v45  ;;  %v1361_v44 = vld [vmem:[#allocation7 + $0x978] sm:$0xff]  ;;  %v5568_v45 = vcombine.low %v1348_v16, %v1352_v35 }
 0x326   :  { %v5579_v47 = vcombine.high %v1357_v42, %v1361_v44  ;;  %v5578_v55 = vcombine.low %v1357_v42, %v1361_v44  ;;  %v1412_v44 = vld [vmem:[#allocation7 + $0xb10] sm:$0xff] }
 0x327   :  { %4144 = vmatpush1.bf16.msra.mxu1 %v5520_v49  ;;  %v1368_v49 = vld [vmem:[#allocation7 + $0x9b0] sm:$0xff] }
 0x328   :  { %4308 = vmatpush1.bf16.msra.mxu0 %v5522_v52  ;;  %4145 = vmatprep.subr.bf16.mxu1 %v5529_v10  ;;  %v1365_v52 = vld [vmem:[#allocation7 + $0x998] sm:$0xff]  ;;  %v5585_v58 = vcombine.high %v1364_v48, %v1368_v49 }
 0x329   :  { %4309 = vmatprep.subr.bf16.mxu0 %v5531_v53  ;;  %v1369_v10 = vld [vmem:[#allocation7 + $0x9b8] sm:$0xff]  ;;  %v5576_v53 = vcombine.low %v1356_v40, %v1360_v41 }
 0x32a   :  { %v5587_v1 = vcombine.high %v1365_v52, %v1369_v10  ;;  %v5586_v19 = vcombine.low %v1365_v52, %v1369_v10  ;;  %v1420_v10 = vld [vmem:[#allocation7 + $0xb50] sm:$0xff] }
 0x32b   :  { %4146 = vmatpush1.bf16.msra.mxu1 %v5528_v12  ;;  %v1376_v12 = vld [vmem:[#allocation7 + $0x9f0] sm:$0xff] }
 0x32c   :  { %4310 = vmatpush1.bf16.msra.mxu0 %v5530_v14  ;;  %4156 = vmatprep.subr.bf16.mxu1 %v5537_v54  ;;  %v1373_v14 = vld [vmem:[#allocation7 + $0x9d8] sm:$0xff]  ;;  %v5593_v21 = vcombine.high %v1372_v18, %v1376_v12  ;;  %v5592_v23 = vcombine.low %v1372_v18, %v1376_v12 }
 0x32d   :  { %4320 = vmatprep.subr.bf16.mxu0 %v5539_v50  ;;  %v1377_v54 = vld [vmem:[#allocation7 + $0x9f8] sm:$0xff]  ;;  %v5584_v50 = vcombine.low %v1364_v48, %v1368_v49 }
 0x32e   :  { %4148 = vmatmul.mubr.bf16.vlgmr.msra.gmra.mrb[16].mxu1 %v6896_v9  ;;  %v5594_v7 = vcombine.low %v1373_v14, %v1377_v54 }
 0x32f   :  { %4312 = vmatmul.mubr.bf16.vlgmr.msra.gmra.mrb[20].mxu0 %v6896_v9  ;;  %4157 = vmatpush1.bf16.msra.mxu1 %v5536_v15  ;;  %v5554_v9 = vcombine.low %v1333_v27, %v1337_v30  ;;  %v5595_v15 = vcombine.high %v1373_v14, %v1377_v54  ;;  %v1388_v30 = vld [vmem:[#allocation7 + $0xa50] sm:$0xff] }
 0x330   :  { %4188 = vmatprep.mubr.bf16.mxu1 %v6900_v22  ;;  %4321 = vmatpush1.bf16.msra.mxu0 %v5538_v17  ;;  %v1381_v17 = vld [vmem:[#allocation7 + $0xa18] sm:$0xff]  ;;  %v1428_v54 = vld [vmem:[#allocation7 + $0xb90] sm:$0xff] }
 0x331   :  { %4352 = vmatprep.mubr.bf16.mxu0 %v6900_v22  ;;  %4158 = vmatprep.subr.bf16.mxu1 %v5545_v5  ;;  %v5560_v22 = vcombine.low %v1340_v2, %v1344_v3  ;;  %v1385_v5 = vld [vmem:[#allocation7 + $0xa38] sm:$0xff] }
 0x332   :  { %4322 = vmatprep.subr.bf16.mxu0 %v5547_v59  ;;  %v5601_v59 = vcombine.high %v1380_v11, %v1384_v60  ;;  %v5603_v27 = vcombine.high %v1381_v17, %v1385_v5  ;;  %v5602_v2 = vcombine.low %v1381_v17, %v1385_v5  ;;  %v1436_v5 = vld [vmem:[#allocation7 + $0xbd0] sm:$0xff] }
 0x333   :  { %4159 = vmatpush1.bf16.msra.mxu1 %v5544_v31  ;;  %v1392_v31 = vld [vmem:[#allocation7 + $0xa70] sm:$0xff] }
 0x334   :  { %4323 = vmatpush1.bf16.msra.mxu0 %v5546_v61  ;;  %4160 = vmatprep.subr.bf16.mxu1 %v5553_v62  ;;  %v1389_v61 = vld [vmem:[#allocation7 + $0xa58] sm:$0xff]  ;;  %v5609_v3 = vcombine.high %v1388_v30, %v1392_v31 }
 0x335   :  { %4324 = vmatprep.subr.bf16.mxu0 %v5555_v63  ;;  %v1393_v62 = vld [vmem:[#allocation7 + $0xa78] sm:$0xff]  ;;  %v5600_v63 = vcombine.low %v1380_v11, %v1384_v60 }
 0x336   :  { %v5611_v4 = vcombine.high %v1389_v61, %v1393_v62  ;;  %v5610_v16 = vcombine.low %v1389_v61, %v1393_v62  ;;  %v1444_v62 = vld [vmem:[#allocation7 + $0xc10] sm:$0xff] }
 0x337   :  { %4161 = vmatpush1.bf16.msra.mxu1 %v5552_v33  ;;  %v1400_v33 = vld [vmem:[#allocation7 + $0xab0] sm:$0xff] }
 0x338   :  { %4325 = vmatpush1.bf16.msra.mxu0 %v5554_v9  ;;  %4162 = vmatprep.subr.bf16.mxu1 %v5561_v34  ;;  %v1397_v9 = vld [vmem:[#allocation7 + $0xa98] sm:$0xff]  ;;  %v5617_v35 = vcombine.high %v1396_v32, %v1400_v33 }
 0x339   :  { %4326 = vmatprep.subr.bf16.mxu0 %v5563_v6  ;;  %v1401_v34 = vld [vmem:[#allocation7 + $0xab8] sm:$0xff]  ;;  %v5608_v6 = vcombine.low %v1388_v30, %v1392_v31 }
 0x33a   :  { %v5619_v36 = vcombine.high %v1397_v9, %v1401_v34  ;;  %v5618_v40 = vcombine.low %v1397_v9, %v1401_v34  ;;  %v1452_v34 = vld [vmem:[#allocation7 + $0xc50] sm:$0xff] }
 0x33b   :  { %4163 = vmatpush1.bf16.msra.mxu1 %v5560_v22  ;;  %v1408_v22 = vld [vmem:[#allocation7 + $0xaf0] sm:$0xff] }
 0x33c   :  { %4327 = vmatpush1.bf16.msra.mxu0 %v5562_v38  ;;  %4164 = vmatprep.subr.bf16.mxu1 %v5569_v39  ;;  %v1405_v38 = vld [vmem:[#allocation7 + $0xad8] sm:$0xff]  ;;  %v5625_v41 = vcombine.high %v1404_v37, %v1408_v22 }
 0x33d   :  { %4328 = vmatprep.subr.bf16.mxu0 %v5571_v20  ;;  %v1409_v39 = vld [vmem:[#allocation7 + $0xaf8] sm:$0xff]  ;;  %v5616_v20 = vcombine.low %v1396_v32, %v1400_v33 }
 0x33e   :  { %v5627_v42 = vcombine.high %v1405_v38, %v1409_v39  ;;  %v5626_v48 = vcombine.low %v1405_v38, %v1409_v39  ;;  %v1460_v39 = vld [vmem:[#allocation7 + $0xc90] sm:$0xff] }
 0x33f   :  { %4165 = vmatpush1.bf16.msra.mxu1 %v5568_v45  ;;  %v1416_v45 = vld [vmem:[#allocation7 + $0xb30] sm:$0xff] }
 0x340   :  { %4329 = vmatpush1.bf16.msra.mxu0 %v5570_v13  ;;  %4166 = vmatprep.subr.bf16.mxu1 %v5577_v46  ;;  %v1413_v13 = vld [vmem:[#allocation7 + $0xb18] sm:$0xff]  ;;  %v5633_v49 = vcombine.high %v1412_v44, %v1416_v45 }
 0x341   :  { %4330 = vmatprep.subr.bf16.mxu0 %v5579_v47  ;;  %v1417_v46 = vld [vmem:[#allocation7 + $0xb38] sm:$0xff]  ;;  %v5624_v47 = vcombine.low %v1404_v37, %v1408_v22 }
 0x342   :  { %v5635_v52 = vcombine.high %v1413_v13, %v1417_v46  ;;  %v5634_v18 = vcombine.low %v1413_v13, %v1417_v46  ;;  %v1468_v46 = vld [vmem:[#allocation7 + $0xcd0] sm:$0xff] }
 0x343   :  { %4167 = vmatpush1.bf16.msra.mxu1 %v5576_v53  ;;  %v1424_v53 = vld [vmem:[#allocation7 + $0xb70] sm:$0xff] }
 0x344   :  { %4331 = vmatpush1.bf16.msra.mxu0 %v5578_v55  ;;  %4168 = vmatprep.subr.bf16.mxu1 %v5585_v58  ;;  %v1421_v55 = vld [vmem:[#allocation7 + $0xb58] sm:$0xff]  ;;  %v5641_v12 = vcombine.high %v1420_v10, %v1424_v53 }
 0x345   :  { %4332 = vmatprep.subr.bf16.mxu0 %v5587_v1  ;;  %v1425_v58 = vld [vmem:[#allocation7 + $0xb78] sm:$0xff]  ;;  %v5632_v1 = vcombine.low %v1412_v44, %v1416_v45 }
 0x346   :  { %v5643_v14 = vcombine.high %v1421_v55, %v1425_v58  ;;  %v5642_v11 = vcombine.low %v1421_v55, %v1425_v58  ;;  %v1476_v55 = vld [vmem:[#allocation7 + $0xd10] sm:$0xff] }
 0x347   :  { %4169 = vmatpush1.bf16.msra.mxu1 %v5584_v50  ;;  %v1432_v50 = vld [vmem:[#allocation7 + $0xbb0] sm:$0xff] }
 0x348   :  { %4333 = vmatpush1.bf16.msra.mxu0 %v5586_v19  ;;  %4170 = vmatprep.subr.bf16.mxu1 %v5593_v21  ;;  %v1429_v19 = vld [vmem:[#allocation7 + $0xb98] sm:$0xff]  ;;  %v5649_v60 = vcombine.high %v1428_v54, %v1432_v50  ;;  %v1480_v58 = vld [vmem:[#allocation7 + $0xd30] sm:$0xff] }
 0x349   :  { %4334 = vmatprep.subr.bf16.mxu0 %v5595_v15  ;;  %v1433_v21 = vld [vmem:[#allocation7 + $0xbb8] sm:$0xff]  ;;  %v5640_v15 = vcombine.low %v1420_v10, %v1424_v53 }
 0x34a   :  { %v5651_v17 = vcombine.high %v1429_v19, %v1433_v21  ;;  %v5650_v30 = vcombine.low %v1429_v19, %v1433_v21  ;;  %v1488_v19 = vld [vmem:[#allocation7 + $0xd70] sm:$0xff]  ;;  %v1485_v21 = vld [vmem:[#allocation7 + $0xd58] sm:$0xff] }
 0x34b   :  { %4171 = vmatpush1.bf16.msra.mxu1 %v5592_v23  ;;  %v1440_v23 = vld [vmem:[#allocation7 + $0xbf0] sm:$0xff] }
 0x34c   :  { %4335 = vmatpush1.bf16.msra.mxu0 %v5594_v7  ;;  %4172 = vmatprep.subr.bf16.mxu1 %v5601_v59  ;;  %v1437_v7 = vld [vmem:[#allocation7 + $0xbd8] sm:$0xff]  ;;  %v5657_v31 = vcombine.high %v1436_v5, %v1440_v23 }
 0x34d   :  { %4336 = vmatprep.subr.bf16.mxu0 %v5603_v27  ;;  %v1441_v59 = vld [vmem:[#allocation7 + $0xbf8] sm:$0xff]  ;;  %v5648_v27 = vcombine.low %v1428_v54, %v1432_v50  ;;  %v5697_v54 = vcombine.high %v1476_v55, %v1480_v58  ;;  %v1484_v50 = vld [vmem:[#allocation7 + $0xd50] sm:$0xff] }
 0x34e   :  { %v5659_v61 = vcombine.high %v1437_v7, %v1441_v59  ;;  %v5658_v32 = vcombine.low %v1437_v7, %v1441_v59  ;;  %v1496_v7 = vld [vmem:[#allocation7 + $0xdb0] sm:$0xff]  ;;  %v1493_v59 = vld [vmem:[#allocation7 + $0xd98] sm:$0xff] }
 0x34f   :  { %4173 = vmatpush1.bf16.msra.mxu1 %v5600_v63  ;;  %v1448_v63 = vld [vmem:[#allocation7 + $0xc30] sm:$0xff] }
 0x350   :  { %4337 = vmatpush1.bf16.msra.mxu0 %v5602_v2  ;;  %4174 = vmatprep.subr.bf16.mxu1 %v5609_v3  ;;  %v1445_v2 = vld [vmem:[#allocation7 + $0xc18] sm:$0xff]  ;;  %v5665_v33 = vcombine.high %v1444_v62, %v1448_v63 }
 0x351   :  { %4338 = vmatprep.subr.bf16.mxu0 %v5611_v4  ;;  %v1449_v3 = vld [vmem:[#allocation7 + $0xc38] sm:$0xff]  ;;  %v5656_v4 = vcombine.low %v1436_v5, %v1440_v23  ;;  %v1492_v23 = vld [vmem:[#allocation7 + $0xd90] sm:$0xff] }
 0x352   :  { %v5667_v9 = vcombine.high %v1445_v2, %v1449_v3  ;;  %v5666_v37 = vcombine.low %v1445_v2, %v1449_v3  ;;  %v1500_v2 = vld [vmem:[#allocation7 + $0xdd0] sm:$0xff] }
 0x353   :  { %4175 = vmatpush1.bf16.msra.mxu1 %v5608_v6  ;;  %v1456_v6 = vld [vmem:[#allocation7 + $0xc70] sm:$0xff] }
 0x354   :  { %4339 = vmatpush1.bf16.msra.mxu0 %v5610_v16  ;;  %4176 = vmatprep.subr.bf16.mxu1 %v5617_v35  ;;  %v1453_v16 = vld [vmem:[#allocation7 + $0xc58] sm:$0xff]  ;;  %v5673_v22 = vcombine.high %v1452_v34, %v1456_v6  ;;  %v1504_v3 = vld [vmem:[#allocation7 + $0xdf0] sm:$0xff] }
 0x355   :  { %4340 = vmatprep.subr.bf16.mxu0 %v5619_v36  ;;  %v1457_v35 = vld [vmem:[#allocation7 + $0xc78] sm:$0xff]  ;;  %v5664_v36 = vcombine.low %v1444_v62, %v1448_v63 }
 0x356   :  { %v5675_v38 = vcombine.high %v1453_v16, %v1457_v35  ;;  %v5674_v44 = vcombine.low %v1453_v16, %v1457_v35  ;;  %v5712_v16 = vcombine.low %v1492_v23, %v1496_v7 }
 0x357   :  { %4177 = vmatpush1.bf16.msra.mxu1 %v5616_v20  ;;  %v1464_v20 = vld [vmem:[#allocation7 + $0xcb0] sm:$0xff] }
 0x358   :  { %4341 = vmatpush1.bf16.msra.mxu0 %v5618_v40  ;;  %4178 = vmatprep.subr.bf16.mxu1 %v5625_v41  ;;  %v1461_v40 = vld [vmem:[#allocation7 + $0xc98] sm:$0xff]  ;;  %v5681_v45 = vcombine.high %v1460_v39, %v1464_v20 }
 0x359   :  { %4342 = vmatprep.subr.bf16.mxu0 %v5627_v42  ;;  %v1465_v41 = vld [vmem:[#allocation7 + $0xcb8] sm:$0xff]  ;;  %v5672_v42 = vcombine.low %v1452_v34, %v1456_v6 }
 0x35a   :  { %v5683_v13 = vcombine.high %v1461_v40, %v1465_v41 }
 0x35b   :  { %4179 = vmatpush1.bf16.msra.mxu1 %v5624_v47  ;;  %v1472_v47 = vld [vmem:[#allocation7 + $0xcf0] sm:$0xff] }
 0x35c   :  { %4343 = vmatpush1.bf16.msra.mxu0 %v5626_v48  ;;  %4180 = vmatprep.subr.bf16.mxu1 %v5633_v49  ;;  %v1469_v48 = vld [vmem:[#allocation7 + $0xcd8] sm:$0xff]  ;;  %v5689_v10 = vcombine.high %v1468_v46, %v1472_v47 }
 0x35d   :  { %4344 = vmatprep.subr.bf16.mxu0 %v5635_v52  ;;  %v1473_v49 = vld [vmem:[#allocation7 + $0xcf8] sm:$0xff]  ;;  %v5680_v52 = vcombine.low %v1460_v39, %v1464_v20  ;;  %v5720_v20 = vcombine.low %v1500_v2, %v1504_v3 }
 0x35e   :  { %v5691_v53 = vcombine.high %v1469_v48, %v1473_v49 }
 0x35f   :  { %4181 = vmatpush1.bf16.msra.mxu1 %v5632_v1  ;;  %v1477_v1 = vld [vmem:[#allocation7 + $0xd18] sm:$0xff] }
 0x360   :  { %4345 = vmatpush1.bf16.msra.mxu0 %v5634_v18  ;;  %4182 = vmatprep.subr.bf16.mxu1 %v5641_v12  ;;  %v1481_v18 = vld [vmem:[#allocation7 + $0xd38] sm:$0xff]  ;;  %v5688_v12 = vcombine.low %v1468_v46, %v1472_v47 }
 0x361   :  { %4346 = vmatprep.subr.bf16.mxu0 %v5643_v14  ;;  %v5690_v14 = vcombine.low %v1469_v48, %v1473_v49  ;;  %v6075_v46 = vld [vmem:[#allocation12 + $0xc8] sm:$0xff]   ;;  %v6078_v49 = vld [vmem:[#allocation12 + $0x50] sm:$0xff]  }
 0x362   :  { %v6076_v47 = vld [vmem:[#allocation12 + $0x8] sm:$0xff]  }
 0x363   :  { %4183 = vmatpush1.bf16.msra.mxu1 %v5640_v15  ;;  %v1489_v15 = vld [vmem:[#allocation7 + $0xd78] sm:$0xff] }
 0x364   :  { %4347 = vmatpush1.bf16.msra.mxu0 %v5642_v11  ;;  %4184 = vmatprep.subr.bf16.mxu1 %v5649_v60  ;;  %v5696_v11 = vcombine.low %v1476_v55, %v1480_v58  ;;  %v5698_v60 = vcombine.low %v1477_v1, %v1481_v18  ;;  %v5707_v5 = vcombine.high %v1485_v21, %v1489_v15  ;;  %v6077_v48 = vld [vmem:[#allocation12 + $0x88] sm:$0xff]   ;;  %v6083_v55 = vld [vmem:[#allocation12 + $0xd8] sm:$0xff]  }
 0x365   :  { %4348 = vmatprep.subr.bf16.mxu0 %v5651_v17  ;;  %v5705_v17 = vcombine.high %v1484_v50, %v1488_v19  ;;  %v6084_v58 = vld [vmem:[#allocation12 + $0x18] sm:$0xff]  }
 0x367   :  { %4185 = vmatpush1.bf16.msra.mxu1 %v5648_v27  ;;  %v1497_v27 = vld [vmem:[#allocation7 + $0xdb8] sm:$0xff] }
 0x368   :  { %4349 = vmatpush1.bf16.msra.mxu0 %v5650_v30  ;;  %4186 = vmatprep.subr.bf16.mxu1 %v5657_v31  ;;  %v5704_v30 = vcombine.low %v1484_v50, %v1488_v19  ;;  %v5706_v31 = vcombine.low %v1485_v21, %v1489_v15  ;;  %v5715_v63 = vcombine.high %v1493_v59, %v1497_v27  ;;  %v6092_v50 = vld [vmem:[#allocation12 + $0x28] sm:$0xff]   ;;  %v6094_v21 = vld [vmem:[#allocation12 + $0x70] sm:$0xff]  }
 0x369   :  { %4350 = vmatprep.subr.bf16.mxu0 %v5659_v61  ;;  %v5713_v61 = vcombine.high %v1492_v23, %v1496_v7  ;;  %v6093_v19 = vld [vmem:[#allocation12 + $0xa8] sm:$0xff]   ;;  %v6095_v15 = vld [vmem:[#allocation12 + $0xf0] sm:$0xff]   ;;  %v6100_v23 = vld [vmem:[#allocation12 + $0x38] sm:$0xff]  }
 0x36a   :  { %v6101_v7 = vld [vmem:[#allocation12 + $0xb8] sm:$0xff]  }
 0x36b   :  { %4187 = vmatpush1.bf16.msra.mxu1 %v5656_v4 }
 0x36c   :  { %4351 = vmatpush1.bf16.msra.mxu0 %v5658_v32  ;;  %4197 = vmatprep.subr.bf16.mxu1 %v5665_v33  ;;  %v1501_v33 = vld [vmem:[#allocation7 + $0xdd8] sm:$0xff] }
 0x36d   :  { %4361 = vmatprep.subr.bf16.mxu0 %v5667_v9  ;;  %v1505_v9 = vld [vmem:[#allocation7 + $0xdf8] sm:$0xff] }
 0x36e   :  { %4189 = vmatmul.mubr.bf16.vlgmr.msra.gmra.mrb[16].mxu1 %v6908_v43  ;;  %v5723_v39 = vcombine.high %v1501_v33, %v1505_v9 }
 0x36f   :  { %4353 = vmatmul.mubr.bf16.vlgmr.msra.gmra.mrb[20].mxu0 %v6908_v43  ;;  %4198 = vmatpush1.bf16.msra.mxu1 %v5664_v36  ;;  %v5682_v43 = vcombine.low %v1461_v40, %v1465_v41  ;;  %v5722_v40 = vcombine.low %v1501_v33, %v1505_v9  ;;  %v6070_v41 = vld [vmem:[#allocation12 + $0x40] sm:$0xff]  }
 0x370   :  { %4362 = vmatpush1.bf16.msra.mxu0 %v5666_v37  ;;  %4199 = vmatprep.subr.bf16.mxu1 %v5673_v22  ;;  %v5714_v37 = vcombine.low %v1493_v59, %v1497_v27  ;;  %v5721_v22 = vcombine.high %v1500_v2, %v1504_v3  ;;  %v6471_v59 = vmov 0.0   ;;  %v4402_v27 = vld [vmem:[#allocation9] sm:$0xff] }
 0x371   :  { %4363 = vmatprep.subr.bf16.mxu0 %v5675_v38  ;;  %4229 = vmatprep.mubr.bf16.mxu1 %v6470_v0  ;;  %v4419_v2 = vrot.slane %v4402_v27, %v6829_v57 }
 0x372   :  { %4393 = vmatprep.mubr.bf16.mxu0 %v6470_v0  ;;  %v5699_v0 = vcombine.high %v1477_v1, %v1481_v18  ;;  %v6086_v1 = vld [vmem:[#allocation12 + $0x60] sm:$0xff]  }
 0x373   :  { %4200 = vmatpush1.bf16.msra.mxu1 %v5672_v42  ;;  %v6071_v42 = vld [vmem:[#allocation12 + $0xc0] sm:$0xff]  }
 0x374   :  { %4364 = vmatpush1.bf16.msra.mxu0 %v5674_v44  ;;  %4201 = vmatprep.subr.bf16.mxu1 %v5681_v45  ;;  %v6072_v44 = vld [vmem:[#allocation12] sm:$0xff]  }
 0x375   :  { %4365 = vmatprep.subr.bf16.mxu0 %v5683_v13  ;;  %v6073_v45 = vld [vmem:[#allocation12 + $0x80] sm:$0xff]   ;;  %v6074_v13 = vld [vmem:[#allocation12 + $0x48] sm:$0xff]  }
 0x376   :  { %v6087_v18 = vld [vmem:[#allocation12 + $0xe0] sm:$0xff]  }
 0x377   :  { %4202 = vmatpush1.bf16.msra.mxu1 %v5680_v52  ;;  %v6079_v52 = vld [vmem:[#allocation12 + $0xd0] sm:$0xff]  }
 0x378   :  { %4366 = vmatpush1.bf16.msra.mxu0 %v5682_v43  ;;  %4203 = vmatprep.subr.bf16.mxu1 %v5689_v10  ;;  %v6080_v43 = vld [vmem:[#allocation12 + $0x10] sm:$0xff]  }
 0x379   :  { %4367 = vmatprep.subr.bf16.mxu0 %v5691_v53  ;;  %v6081_v10 = vld [vmem:[#allocation12 + $0x90] sm:$0xff]   ;;  %v6082_v53 = vld [vmem:[#allocation12 + $0x58] sm:$0xff]  }
 0x37b   :  { %4204 = vmatpush1.bf16.msra.mxu1 %v5688_v12  ;;  %v6088_v12 = vld [vmem:[#allocation12 + $0x20] sm:$0xff]  }
 0x37c   :  { %4368 = vmatpush1.bf16.msra.mxu0 %v5690_v14  ;;  %4205 = vmatprep.subr.bf16.mxu1 %v5697_v54  ;;  %v6089_v14 = vld [vmem:[#allocation12 + $0xa0] sm:$0xff]   ;;  %v6090_v54 = vld [vmem:[#allocation12 + $0x68] sm:$0xff]  }
 0x37d   :  { %4369 = vmatprep.subr.bf16.mxu0 %v5699_v0  ;;  %v6091_v0 = vld [vmem:[#allocation12 + $0xe8] sm:$0xff]  }
 0x37f   :  { %4206 = vmatpush1.bf16.msra.mxu1 %v5696_v11  ;;  %v6096_v11 = vld [vmem:[#allocation12 + $0x30] sm:$0xff]  }
 0x380   :  { %4370 = vmatpush1.bf16.msra.mxu0 %v5698_v60  ;;  %4207 = vmatprep.subr.bf16.mxu1 %v5705_v17  ;;  %v6097_v60 = vld [vmem:[#allocation12 + $0xb0] sm:$0xff]   ;;  %v6098_v17 = vld [vmem:[#allocation12 + $0x78] sm:$0xff]  }
 0x381   :  { %v6934_v62 = vpop.f32.mrb[12].mxu1  ;;  %4371 = vmatprep.subr.bf16.mxu0 %v5707_v5  ;;  %v6099_v5 = vld [vmem:[#allocation12 + $0xf8] sm:$0xff]  }
 0x382   :  { %v6936_v4 = vpop.f32.mrb[16].mxu0  ;;  %v6938_v32 = vpop.f32.mrb[13].mxu1 }
 0x383   :  { %v6940_v34 = vpop.f32.mrb[17].mxu0  ;;  %v3907_v6 = vpop.f32.mrb[14].mxu1  ;;  %4208 = vmatpush1.bf16.msra.mxu1 %v5704_v30  ;;  %v4407_v30 = vrot.slane %v4402_v27, %v6798_v24 }
 0x384   :  { %v4071_v35 = vpop.f32.mrb[18].mxu0  ;;  %4372 = vmatpush1.bf16.msra.mxu0 %v5706_v31  ;;  %v3908_v36 = vpop.f32.mrb[15].mxu1  ;;  %4209 = vmatprep.subr.bf16.mxu1 %v5713_v61  ;;  %v4452_v31 = vld [vmem:[#allocation10] sm:$0xff]  ;;  %v4415_v61 = vrot.slane %v4402_v27, %v6789_v8 }
 0x385   :  { %v4072_v38 = vpop.f32.mrb[19].mxu0  ;;  %4373 = vmatprep.subr.bf16.mxu0 %v5715_v63  ;;  %v4411_v63 = vrot.slane %v4402_v27, %v6827_v56  ;;  %v4457_v3 = vrot.slane %v4452_v31, %v6798_v24  ;;  %v4444_v33 = vmul.f32 %v4407_v30, %v6934_v62  ;;  %v4465_v9 = vrot.slane %v4452_v31, %v6789_v8  ;;  %v6108_v30 = vld [vmem:[#allocation15 + $0x30] sm:$0xff]  }
 0x386   :  { %v4461_v6 = vrot.slane %v4452_v31, %v6827_v56  ;;  %v4446_v35 = vmul.f32 %v4415_v61, %v6936_v4  ;;  %v4447_v38 = vmul.f32 %v4419_v2, %v6940_v34  ;;  %v4469_v24 = vrot.slane %v4452_v31, %v6829_v57  ;;  %v6110_v61 = vld [vmem:[#allocation18] sm:$0xff]   ;;  %v6112_v2 = vld [vmem:[#allocation18 + $0x10] sm:$0xff]  }
 0x387   :  { %4210 = vmatpush1.bf16.msra.mxu1 %v5712_v16  ;;  %v4423_v16 = vrot.slane %v4402_v27, %v6800_v25  ;;  %v4445_v36 = vmul.f32 %v4411_v63, %v6938_v32  ;;  %v4473_v62 = vrot.slane %v4452_v31, %v6800_v25  ;;  %v4435_v8 = vrot.slane %v4402_v27, %v6807_v29  ;;  %v6111_v63 = vld [vmem:[#allocation18 + $0x8] sm:$0xff]  }
 0x388   :  { %4374 = vmatpush1.bf16.msra.mxu0 %v5714_v37  ;;  %4211 = vmatprep.subr.bf16.mxu1 %v5721_v22  ;;  %v4431_v37 = vrot.slane %v4402_v27, %v6802_v26  ;;  %v4427_v22 = vrot.slane %v4402_v27, %v6805_v28  ;;  %v4481_v56 = vrot.slane %v4452_v31, %v6802_v26  ;;  %v6107_v27 = vld [vmem:[#allocation15 + $0x28] sm:$0xff]  }
 0x389   :  { %4375 = vmatprep.subr.bf16.mxu0 %v5723_v39  ;;  %v4494_v4 = vadd.f32 %v4457_v3, %v4444_v33  ;;  %v4497_v25 = vadd.f32 %v4469_v24, %v4447_v38  ;;  %v6113_v3 = vld [vmem:[#allocation18 + $0x18] sm:$0xff]   ;;  %v6114_v33 = vld [vmem:[#allocation18 + $0x20] sm:$0xff]  }
 0x38b   :  { %4212 = vmatpush1.bf16.msra.mxu1 %v5720_v20  ;;  %v4477_v20 = vrot.slane %v4452_v31, %v6805_v28 }
 0x38c   :  { %4376 = vmatpush1.bf16.msra.mxu0 %v5722_v40  ;;  %5784 = vmatprep.subr.bf16.mxu1 %v6070_v41 }
 0x38d   :  { %5806 = vmatprep.subr.bf16.mxu0 %v6071_v42  ;;  %v4485_v42 = vrot.slane %v4452_v31, %v6807_v29  ;;  %v6109_v31 = vld [vmem:[#allocation15 + $0x38] sm:$0xff]  }
 0x38e   :  { %4230 = vmatmul.mubr.bf16.vlgmr.msra.gmra.mrb[16].mxu1 %v6916_v51 }
 0x38f   :  { %4394 = vmatmul.mubr.bf16.vlgmr.msra.gmra.mrb[20].mxu0 %v6916_v51  ;;  %5785 = vmatpush3.bf16.msra.mxu1 %v6072_v44  ;;  %v6085_v51 = vld [vmem:[#allocation12 + $0x98] sm:$0xff]   ;;  %v4496_v44 = vadd.f32 %v4465_v9, %v4446_v35  ;;  %v6115_v9 = vld [vmem:[#allocation18 + $0x28] sm:$0xff]   ;;  %v5724_v35 = vld [vmem:[#allocation13] ss:$0 sm:$0xff] }
 0x390   :  { %5807 = vmatpush3.bf16.msra.mxu0 %v6073_v45  ;;  %5786 = vmatprep.subr.bf16.mxu1 %v6074_v13  ;;  %v4495_v45 = vadd.f32 %v4461_v6, %v4445_v36 }
 0x391   :  { %5808 = vmatprep.subr.bf16.mxu0 %v6075_v46 }
 0x393   :  { %5787 = vmatpush3.bf16.msra.mxu1 %v6076_v47 }
 0x394   :  { %5809 = vmatpush3.bf16.msra.mxu0 %v6077_v48  ;;  %5788 = vmatprep.subr.bf16.mxu1 %v6078_v49 }
 0x395   :  { %5810 = vmatprep.subr.bf16.mxu0 %v6079_v52 }
 0x397   :  { %5789 = vmatpush3.bf16.msra.mxu1 %v6080_v43 }
 0x398   :  { %5811 = vmatpush3.bf16.msra.mxu0 %v6081_v10  ;;  %5790 = vmatprep.subr.bf16.mxu1 %v6082_v53  ;;  %v4502_v10 = vmax.f32 %v4494_v4, 0.0 }
 0x399   :  { %5812 = vmatprep.subr.bf16.mxu0 %v6083_v55 }
 0x39b   :  { %5791 = vmatpush3.bf16.msra.mxu1 %v6084_v58  ;;  %v4504_v58 = vmax.f32 %v4496_v44, 0.0  ;;  %v6119_v44 = vld [vmem:[#allocation21 + $0x8] sm:$0xff]  }
 0x39c   :  { %5813 = vmatpush3.bf16.msra.mxu0 %v6085_v51  ;;  %5792 = vmatprep.subr.bf16.mxu1 %v6086_v1  ;;  %v4503_v51 = vmax.f32 %v4495_v45, 0.0  ;;  %v6120_v45 = vld [vmem:[#allocation21 + $0x10] sm:$0xff]  }
 0x39d   :  { %5814 = vmatprep.subr.bf16.mxu0 %v6087_v18  ;;  %v4505_v18 = vmax.f32 %v4497_v25, 0.0 }
 0x39f   :  { %5793 = vmatpush3.bf16.msra.mxu1 %v6088_v12 }
 0x3a0   :  { %5815 = vmatpush3.bf16.msra.mxu0 %v6089_v14  ;;  %5794 = vmatprep.subr.bf16.mxu1 %v6090_v54 }
 0x3a1   :  { %5816 = vmatprep.subr.bf16.mxu0 %v6091_v0 }
 0x3a3   :  { %5795 = vmatpush3.bf16.msra.mxu1 %v6092_v50 }
 0x3a4   :  { %5817 = vmatpush3.bf16.msra.mxu0 %v6093_v19  ;;  %5796 = vmatprep.subr.bf16.mxu1 %v6094_v21  ;;  %v6102_v21 = vld [vmem:[#allocation15] sm:$0xff]  }
 0x3a5   :  { %5818 = vmatprep.subr.bf16.mxu0 %v6095_v15 }
 0x3a7   :  { %5797 = vmatpush3.bf16.msra.mxu1 %v6096_v11 }
 0x3a8   :  { %5819 = vmatpush3.bf16.msra.mxu0 %v6097_v60  ;;  %5798 = vmatprep.subr.bf16.mxu1 %v6098_v17  ;;  %v6103_v17 = vld [vmem:[#allocation15 + $0x8] sm:$0xff]  }
 0x3a9   :  { %5820 = vmatprep.subr.bf16.mxu0 %v6099_v5  ;;  %v6104_v5 = vld [vmem:[#allocation15 + $0x10] sm:$0xff]  }
 0x3ab   :  { %5799 = vmatpush3.bf16.msra.mxu1 %v6100_v23  ;;  %v6105_v23 = vld [vmem:[#allocation15 + $0x18] sm:$0xff]  }
 0x3ac   :  { %5821 = vmatpush3.bf16.msra.mxu0 %v6101_v7  ;;  %5855 = vmatprep.subr.bf16.mxu1 %v6471_v59  ;;  %v6106_v7 = vld [vmem:[#allocation15 + $0x20] sm:$0xff]  }
 0x3ad   :  { %5875 = vmatprep.subr.bf16.mxu0 %v6471_v59 }
 0x461   :  { %v4231_v39 = vpop.f32.mrb[16].mxu1 }
 0x462   :  { %v4448_v40 = vmul.f32 %v4423_v16, %v4231_v39  ;;  %v4395_v32 = vpop.f32.mrb[20].mxu0  ;;  %v4233_v41 = vpop.f32.mrb[17].mxu1 }
 0x463   :  { %v4450_v34 = vmul.f32 %v4431_v37, %v4395_v32  ;;  %v4449_v13 = vmul.f32 %v4427_v22, %v4233_v41  ;;  %v4397_v57 = vpop.f32.mrb[21].mxu0  ;;  %v4235_v46 = vpop.f32.mrb[18].mxu1  ;;  %v6116_v32 = vld [vmem:[#allocation18 + $0x30] sm:$0xff]   ;;  %v6117_v41 = vld [vmem:[#allocation18 + $0x38] sm:$0xff]  }
 0x464   :  { %v4498_v47 = vadd.f32 %v4473_v62, %v4448_v40  ;;  %v4451_v48 = vmul.f32 %v4435_v8, %v4397_v57  ;;  %v4399_v49 = vpop.f32.mrb[22].mxu0  ;;  %v4236_v52 = vpop.f32.mrb[19].mxu1  ;;  %v6123_v57 = vld [vmem:[#allocation21 + $0x28] sm:$0xff]   ;;  %v5757_v46 = vld [vmem:[#allocation16] ss:$0 sm:$0xff] }
 0x465   :  { %v4500_v26 = vadd.f32 %v4481_v56, %v4450_v34  ;;  %v4499_v43 = vadd.f32 %v4477_v20, %v4449_v13  ;;  %v4400_v28 = vpop.f32.mrb[23].mxu0  ;;  %v6121_v34 = vld [vmem:[#allocation21 + $0x18] sm:$0xff]   ;;  %v6122_v13 = vld [vmem:[#allocation21 + $0x20] sm:$0xff]  }
 0x466   :  { %v4506_v53 = vmax.f32 %v4498_v47, 0.0  ;;  %v4501_v55 = vadd.f32 %v4485_v42, %v4451_v48  ;;  %v6118_v42 = vld [vmem:[#allocation21] sm:$0xff]   ;;  %v6124_v28 = vld [vmem:[#allocation21 + $0x30] sm:$0xff]  }
 0x467   :  { %v4508_v29 = vmax.f32 %v4500_v26, 0.0  ;;  %v4507_v1 = vmax.f32 %v4499_v43, 0.0 }
 0x468   :  { %v4510_v12 = vmax.f32 %v4502_v10, %v4506_v53  ;;  %v4509_v14 = vmax.f32 %v4501_v55, 0.0  ;;  %v6125_v10 = vld [vmem:[#allocation21 + $0x38] sm:$0xff]  }
 0x469   :  { %v4512_v54 = vmax.f32 %v4504_v58, %v4508_v29  ;;  %v4511_v0 = vmax.f32 %v4503_v51, %v4507_v1  ;;  %v5766_v53 = vld [vmem:[#allocation19] ss:$0 sm:$0xff] }
 0x46a   :  { %v4513_v50 = vmax.f32 %v4505_v18, %v4509_v14  ;;  %v4514_v15 = vpack.c.bf16 %v4510_v12, %v4510_v12  ;;  %v5775_v14 = vld [vmem:[#allocation22] ss:$0 sm:$0xff] }
 0x46b   :  { %v4515_v19 = vpack.c.bf16 %v4511_v0, %v4511_v0  ;;  %v4516_v60 = vpack.c.bf16 %v4512_v54, %v4512_v54 }
 0x46c   :  { %v4517_v11 = vpack.c.bf16 %v4513_v50, %v4513_v50 }
 0x46d   :  { %4813 = vmatprep.mubr.bf16.mxu1 %v4515_v19 }
 0x46e   :  { %4853 = vmatprep.mubr.bf16.mxu0 %v4517_v11  ;;  %4814 = vmatmul.mubr.bf16.vlgmr.msra.gmra.mrb[20].mxu1 %v4514_v15 }
 0x46f   :  { %4854 = vmatmul.mubr.bf16.vlgmr.msra.gmra.mrb[24].mxu0 %v4516_v60  ;;  %5856 = vmatpush3.bf16.msra.mxu1 %v6102_v21 }
 0x470   :  { %5857 = vmatprep.subr.bf16.mxu1 %v6471_v59  ;;  %5871 = vmatprep.mubr.msk.bf16.mxu1 %vm6472_vm1, %v6471_v59 }
 0x471   :  { %5891 = vmatprep.mubr.msk.bf16.mxu0 %vm6472_vm1, %v6471_v59  ;;  %5876 = vmatpush3.bf16.msra.mxu0 %v6110_v61 }
 0x472   :  { %5877 = vmatprep.subr.bf16.mxu0 %v6471_v59 }
 0x473   :  { %5858 = vmatpush3.bf16.msra.mxu1 %v6103_v17 }
 0x474   :  { %5859 = vmatprep.subr.bf16.mxu1 %v6471_v59 }
 0x475   :  { %5878 = vmatpush3.bf16.msra.mxu0 %v6111_v63 }
 0x476   :  { %5879 = vmatprep.subr.bf16.mxu0 %v6471_v59 }
 0x477   :  { %5860 = vmatpush3.bf16.msra.mxu1 %v6104_v5 }
 0x478   :  { %5861 = vmatprep.subr.bf16.mxu1 %v6471_v59 }
 0x479   :  { %5880 = vmatpush3.bf16.msra.mxu0 %v6112_v2 }
 0x47a   :  { %5881 = vmatprep.subr.bf16.mxu0 %v6471_v59 }
 0x47b   :  { %5862 = vmatpush3.bf16.msra.mxu1 %v6105_v23 }
 0x47c   :  { %5863 = vmatprep.subr.bf16.mxu1 %v6471_v59 }
 0x47d   :  { %5882 = vmatpush3.bf16.msra.mxu0 %v6113_v3 }
 0x47e   :  { %5883 = vmatprep.subr.bf16.mxu0 %v6471_v59 }
 0x47f   :  { %5864 = vmatpush3.bf16.msra.mxu1 %v6106_v7 }
 0x480   :  { %5865 = vmatprep.subr.bf16.mxu1 %v6471_v59 }
 0x481   :  { %5884 = vmatpush3.bf16.msra.mxu0 %v6114_v33 }
 0x482   :  { %5885 = vmatprep.subr.bf16.mxu0 %v6471_v59 }
 0x483   :  { %5866 = vmatpush3.bf16.msra.mxu1 %v6107_v27 }
 0x484   :  { %5867 = vmatprep.subr.bf16.mxu1 %v6471_v59 }
 0x485   :  { %5886 = vmatpush3.bf16.msra.mxu0 %v6115_v9 }
 0x486   :  { %5887 = vmatprep.subr.bf16.mxu0 %v6471_v59 }
 0x487   :  { %5868 = vmatpush3.bf16.msra.mxu1 %v6108_v30 }
 0x488   :  { %5869 = vmatprep.subr.bf16.mxu1 %v6471_v59 }
 0x489   :  { %5888 = vmatpush3.bf16.msra.mxu0 %v6116_v32 }
 0x48a   :  { %5889 = vmatprep.subr.bf16.mxu0 %v6471_v59 }
 0x48b   :  { %5870 = vmatpush3.bf16.msra.mxu1 %v6109_v31 }
 0x48c   :  { %5895 = vmatprep.subr.bf16.mxu1 %v6471_v59 }
 0x48d   :  { %5890 = vmatpush3.bf16.msra.mxu0 %v6117_v41 }
 0x541   :  { %v5800_v6 = vpop.f32.mrb[20].mxu1 }
 0x542   :  { %v5822_v16 = vpop.f32.mrb[24].mxu0  ;;  %v5801_v36 = vpop.f32.mrb[21].mxu1 }
 0x543   :  { %v5802_v37 = vadd.f32 %v5801_v36, %v5800_v6  ;;  %v5823_v22 = vpop.f32.mrb[25].mxu0  ;;  %v5803_v38 = vpop.f32.mrb[22].mxu1 }
 0x544   :  { %v5824_v24 = vadd.f32 %v5823_v22, %v5822_v16  ;;  %v5825_v62 = vpop.f32.mrb[26].mxu0  ;;  %v5804_v8 = vpop.f32.mrb[23].mxu1 }
 0x545   :  { %v4816_v39 = vadd.f32 %v5802_v37, %v5724_v35  ;;  %v5826_v56 = vpop.f32.mrb[27].mxu0 }
 0x547   :  { %v4856_v20 = vadd.f32 %v5824_v24, %v4816_v39 }
 0x549   :  { %v4861_v4 = vmax.f32 %v4856_v20, 0.0 }
 0x54b   :  { %v4862_v40 = vpack.c.bf16 %v4861_v4, %v4861_v4 }
 0x54d   :  { %5872 = vmatmul.mubr.bf16.vlgmr.msra.gmra.mrb[24].mxu1 %v4862_v40 }
 0x54e   :  { %5911 = vmatprep.mubr.msk.bf16.mxu1 %vm6472_vm1, %v6471_v59  ;;  %5896 = vmatpush3.bf16.msra.mxu1 %v6118_v42 }
 0x54f   :  { %5897 = vmatprep.subr.bf16.mxu1 %v6471_v59 }
 0x552   :  { %5898 = vmatpush3.bf16.msra.mxu1 %v6119_v44 }
 0x553   :  { %5899 = vmatprep.subr.bf16.mxu1 %v6471_v59 }
 0x556   :  { %5900 = vmatpush3.bf16.msra.mxu1 %v6120_v45 }
 0x557   :  { %5901 = vmatprep.subr.bf16.mxu1 %v6471_v59 }
 0x55a   :  { %5902 = vmatpush3.bf16.msra.mxu1 %v6121_v34 }
 0x55b   :  { %5903 = vmatprep.subr.bf16.mxu1 %v6471_v59 }
 0x55e   :  { %5904 = vmatpush3.bf16.msra.mxu1 %v6122_v13 }
 0x55f   :  { %5905 = vmatprep.subr.bf16.mxu1 %v6471_v59 }
 0x562   :  { %5906 = vmatpush3.bf16.msra.mxu1 %v6123_v57 }
 0x563   :  { %5907 = vmatprep.subr.bf16.mxu1 %v6471_v59 }
 0x566   :  { %5908 = vmatpush3.bf16.msra.mxu1 %v6124_v28 }
 0x567   :  { %5909 = vmatprep.subr.bf16.mxu1 %v6471_v59 }
 0x56a   :  { %5910 = vmatpush3.bf16.msra.mxu1 %v6125_v10 }
 0x620   :  { %v4968_v25 = vpop.f32.mrb[24].mxu1 }
 0x621   :  { %v4969_v47 = vadd.f32 %v5757_v46, %v4968_v25  ;;  %v5873_v48 = vpop.f32.mrb[25].mxu1 }
 0x622   :  { %v4971_v49 = vpop.f32.mrb[26].mxu1 }
 0x623   :  { %v4974_v52 = vmax.f32 %v4969_v47, 0.0  ;;  %v5874_v26 = vpop.f32.mrb[27].mxu1 }
 0x625   :  { %v4975_v43 = vpack.c.bf16 %v4974_v52, %v4974_v52 }
 0x627   :  { %5892 = vmatmul.mubr.bf16.vlgmr.msra.gmra.mrb[28].mxu0 %v4975_v43 }
 0x6fa   :  { %v5081_v55 = vpop.f32.mrb[28].mxu0 }
 0x6fb   :  { %v5082_v58 = vadd.f32 %v5766_v53, %v5081_v55  ;;  %v5893_v51 = vpop.f32.mrb[29].mxu0 }
 0x6fc   :  { %v5084_v29 = vpop.f32.mrb[30].mxu0 }
 0x6fd   :  { %v5087_v1 = vmax.f32 %v5082_v58, 0.0  ;;  %v5894_v18 = vpop.f32.mrb[31].mxu0 }
 0x6ff   :  { %v5088_v12 = vpack.c.bf16 %v5087_v1, %v5087_v1 }
 0x701   :  { %5912 = vmatmul.mubr.bf16.vlgmr.msra.gmra.mrb[28].mxu1 %v5088_v12 }
 0x7d4   :  { %v5194_v54 = vpop.f32.mrb[28].mxu1 }
 0x7d5   :  { %v5195_v0 = vadd.f32 %v5775_v14, %v5194_v54  ;;  %v5913_v50 = vpop.f32.mrb[29].mxu1 }
 0x7d6   :  { %v5197_v19 = vpop.f32.mrb[30].mxu1 }
 0x7d7   :  { %5200 = vst [vmem:[%s7012_s15] sm:$0xff] %v5195_v0  ;;  %v5914_v59 = vpop.f32.mrb[31].mxu1 }
 0x7d8   :  { %5205 = vsyncpa [#allocation3], 1 }
 0x7d9   :  { %5206 = vsyncpa [#allocation5], 1 }
 0x7da   :  { %5207 = vsyncpa [#allocation8], 1 }
 0x7db   :  { %5208 = vsyncpa [#allocation11], 1 }
 0x7dc   :  { %5209 = vsyncpa [#allocation14], 1 }
 0x7dd   :  { %5210 = vsyncpa [#allocation17], 1 }
 0x7de   :  { %5211 = vsyncpa [#allocation20], 1 }
 0x7df   :  { %5212 = vsyncpa [#allocation23], 1 }

</bundles_post_ra>
